<compile_context>
chip_gen: v6e
topology: v6e:2x2x1
jax: 0.10.0
libtpu: 0.0.40
codegen_flags: <defaults>
</compile_context>

<pallas_src>
import functools
import math

import jax
import jax.numpy as jnp
from jax.experimental import pallas as pl
from jax.experimental.pallas import tpu as pltpu

F32 = jnp.float32
BF16 = jnp.bfloat16

# ----------------------------- model config ---------------------------------
VOCAB = 512          # vocab size (miniature)
MAX_POS = 32         # max position embeddings
HIDDEN = 128         # hidden size (lane-dense)
HEADS = 4
DH = HIDDEN // HEADS  # head dim = 32
INTER = 4 * HIDDEN    # MLP intermediate = 512
LAYERS = 2
PROJ = 128            # projection_dim (lane-dense)
EOS_ID = VOCAB - 1
BOS_ID = VOCAB - 2
LN_EPS = 1e-5


# ============================ kernel helpers =================================

def _layer_norm(x, gamma, beta, eps):
    mu = jnp.mean(x, axis=-1, keepdims=True)
    var = jnp.mean(jnp.square(x - mu), axis=-1, keepdims=True)
    return (x - mu) * jax.lax.rsqrt(var + eps) * gamma + beta


# ============================== fused kernel =================================
# Single invocation (no grid): the (B*S, D) residual stream stays in registers/VMEM,
# all layer weights are resident, and the final LN / EOS pooling / projection are
# fused at the end of the body.

def _clip_text_kernel(eos_ref, x_ref,
                      ln1_ref, wqkv_ref, bqkv_ref, wo_ref, bo_ref,
                      ln2_ref, wfc1_ref, bfc1_ref, wfc2_ref, bfc2_ref,
                      lnf_ref, wproj_ref,
                      lhs_ref, te_ref,
                      *, batch, seq, heads, head_dim, layers, eps):
    x = x_ref[...].astype(jnp.float32)                 # (B*S, D) residual stream, f32
    bs, d = x.shape

    # Block-diagonal causal mask over the folded (batch*seq) axis, hoisted out of
    # the layer loop. seq is a power of two here -> batch id via shift (no int div).
    row = jax.lax.broadcasted_iota(jnp.int32, (bs, bs), 0)
    col = jax.lax.broadcasted_iota(jnp.int32, (bs, bs), 1)
    if (seq & (seq - 1)) == 0:
        shift = seq.bit_length() - 1
        rb = jax.lax.shift_right_logical(row, shift)
        cb = jax.lax.shift_right_logical(col, shift)
    else:  # generic fallback
        rb = row // seq
        cb = col // seq
    mask = jnp.logical_and(rb == cb, col <= row)

    for l in range(layers):                            # static unroll (tiny L)
        # ---------------- self-attention (causal), pre-LN ----------------
        ln1 = ln1_ref[l]                               # (2, D): [gamma; beta]
        h = _layer_norm(x, ln1[0:1], ln1[1:2], eps)
        # Fused QKV matmul, lane-dense N=3D. 1/sqrt(dh) already folded into wq.
        qkv = jnp.dot(h.astype(BF16), wqkv_ref[l],
                      preferred_element_type=jnp.float32) + bqkv_ref[l]   # (BS, 3D) f32
        wo_l = wo_ref[l]                               # (D, D) bf16
        attn = jnp.zeros((bs, d), jnp.float32)
        for hd in range(heads):                        # static unroll, H=4
            lo, hi = hd * head_dim, (hd + 1) * head_dim
            qh = qkv[:, lo:hi].astype(BF16)
            kh = qkv[:, d + lo:d + hi].astype(BF16)
            vh = qkv[:, 2 * d + lo:2 * d + hi].astype(BF16)
            s = jnp.dot(qh, kh.T, preferred_element_type=jnp.float32)     # (BS, BS)
            s = jnp.where(mask, s, -1e30)
            s = s - jnp.max(s, axis=-1, keepdims=True)
            p = jnp.exp(s)
            p = p * pl.reciprocal(jnp.sum(p, axis=-1, keepdims=True), approx=True)
            oh = jnp.dot(p.astype(BF16), vh, preferred_element_type=jnp.float32)
            # Accumulate each head straight through its rows of wo — no lane concat.
            attn = attn + jnp.dot(oh.astype(BF16), wo_l[lo:hi, :],
                                  preferred_element_type=jnp.float32)
        x = x + attn + bo_ref[l]

        # ---------------- MLP (quick_gelu), pre-LN ----------------
        ln2 = ln2_ref[l]
        h = _layer_norm(x, ln2[0:1], ln2[1:2], eps)
        f = jnp.dot(h.astype(BF16), wfc1_ref[l],
                    preferred_element_type=jnp.float32) + bfc1_ref[l]     # (BS, I)
        f = f * jax.nn.sigmoid(1.702 * f)              # quick_gelu
        f = jnp.dot(f.astype(BF16), wfc2_ref[l],
                    preferred_element_type=jnp.float32) + bfc2_ref[l]     # (BS, D)
        x = x + f

    # ---------------- final LayerNorm -> last_hidden_state ----------------
    lnf = lnf_ref[...]                                 # (2, D)
    y = _layer_norm(x, lnf[0:1], lnf[1:2], eps)
    lhs_ref[...] = y.astype(lhs_ref.dtype)

    # -------- EOS pooling (dynamic sublane slice from the just-written VMEM
    #          output ref; EOS indices come from SMEM) + text_projection --------
    rows = [lhs_ref[pl.ds(b * seq + eos_ref[b], 1), :] for b in range(batch)]
    pooled = jnp.concatenate(rows, axis=0).astype(jnp.float32)            # (B, D)
    te = jnp.dot(pooled.astype(BF16), wproj_ref[...],
                 preferred_element_type=jnp.float32)                      # (B, P)
    te_ref[...] = te.astype(te_ref.dtype)


# ================================ forward ====================================

def clip_text_forward(params, input_ids):
    B, S = input_ids.shape
    D = HIDDEN

    # Token-id gather + positional add stay in XLA (data-dependent gather).
    x = jnp.take(params["tok_emb"], input_ids, axis=0) + params["pos_emb"][None, :S]
    x = x.astype(jnp.float32).reshape(B * S, D)

    # HF CLIPTextModelWithProjection pooling: hidden state at the first EOS token.
    eos_idx = jnp.argmax((input_ids == EOS_ID).astype(jnp.int32),
                         axis=-1).astype(jnp.int32)

    kernel = functools.partial(_clip_text_kernel, batch=B, seq=S, heads=HEADS,
                               head_dim=DH, layers=LAYERS, eps=LN_EPS)
    vmem = pl.BlockSpec(memory_space=pltpu.MemorySpace.VMEM)
    smem = pl.BlockSpec(memory_space=pltpu.MemorySpace.SMEM)

    lhs, te = pl.pallas_call(
        kernel,
        out_shape=(jax.ShapeDtypeStruct((B * S, D), jnp.float32),   # last_hidden (flat)
                   jax.ShapeDtypeStruct((B, PROJ), jnp.float32)),   # text_embeds
        in_specs=[smem] + [vmem] * 13,
        out_specs=(vmem, vmem),
        compiler_params=pltpu.CompilerParams(vmem_limit_bytes=16 * 1024 * 1024),
    )(eos_idx, x,
      params["ln1"], params["wqkv"], params["bqkv"], params["wo"], params["bo"],
      params["ln2"], params["wfc1"], params["bfc1"], params["wfc2"], params["bfc2"],
      params["lnf"], params["wproj"])

    return te, lhs.reshape(B, S, D)


# ============================ deterministic init =============================

def init_params(key):
    kit = iter(jax.random.split(key, 8))

    def w(shape, scale=0.02):
        return scale * jax.random.normal(next(kit), shape, F32)

    ln_stack = jnp.stack([jnp.ones((LAYERS, HIDDEN), F32),
                          jnp.zeros((LAYERS, HIDDEN), F32)], axis=1)   # (L, 2, D)

    wqkv = w((LAYERS, HIDDEN, 3 * HIDDEN))
    # Load-time preprocessing: fold the 1/sqrt(head_dim) attention scale into the
    # Q columns of the fused QKV weight (bias is zero, so no bias fold needed).
    wqkv = wqkv.at[:, :, :HIDDEN].multiply(1.0 / math.sqrt(DH))

    return dict(
        tok_emb=w((VOCAB, HIDDEN)),
        pos_emb=w((MAX_POS, HIDDEN)),
        ln1=ln_stack,
        wqkv=wqkv.astype(BF16),                        # fused QKV (lane-dense N=3D)
        bqkv=jnp.zeros((LAYERS, 1, 3 * HIDDEN), F32),
        wo=w((LAYERS, HIDDEN, HIDDEN)).astype(BF16),
        bo=jnp.zeros((LAYERS, 1, HIDDEN), F32),
        ln2=jnp.array(ln_stack),
        wfc1=w((LAYERS, HIDDEN, INTER)).astype(BF16),
        bfc1=jnp.zeros((LAYERS, 1, INTER), F32),
        wfc2=w((LAYERS, INTER, HIDDEN)).astype(BF16),
        bfc2=jnp.zeros((LAYERS, 1, HIDDEN), F32),
        lnf=jnp.stack([jnp.ones((HIDDEN,), F32), jnp.zeros((HIDDEN,), F32)]),  # (2, D)
        wproj=w((HIDDEN, PROJ)).astype(BF16),          # text_projection (no bias in CLIP)
    )


# ================================= main ======================================

if __name__ == "__main__":
    key = jax.random.PRNGKey(0)
    pkey, ikey = jax.random.split(key)
    params = init_params(pkey)

    B, S = 2, 16
    ids = jax.random.randint(ikey, (B, S), 2, VOCAB - 2, dtype=jnp.int32)
    ids = ids.at[:, 0].set(BOS_ID)
    ids = ids.at[0, S - 1].set(EOS_ID)     # seq 0: EOS at last position
    ids = ids.at[1, 12:].set(EOS_ID)       # seq 1: EOS at pos 12, EOS-padded after

    fwd = jax.jit(clip_text_forward)
    text_embeds, last_hidden = fwd(params, ids)
    jax.block_until_ready((text_embeds, last_hidden))

    assert text_embeds.shape == (B, PROJ)
    assert last_hidden.shape == (B, S, HIDDEN)
    assert bool(jnp.isfinite(text_embeds).all())
    assert bool(jnp.isfinite(last_hidden).all())
    print("KERNEL_OK")
</pallas_src>

<mosaic_0001>
module attributes {stable_mosaic.version = 11 : i64} {
  func.func @_clip_text_kernel(%arg0: memref<2xi32, #tpu.memory_space<smem>>, %arg1: memref<32x128xf32, #tpu.memory_space<vmem>>, %arg2: memref<2x2x128xf32, #tpu.memory_space<vmem>>, %arg3: memref<2x128x384xbf16, #tpu.memory_space<vmem>>, %arg4: memref<2x1x384xf32, #tpu.memory_space<vmem>>, %arg5: memref<2x128x128xbf16, #tpu.memory_space<vmem>>, %arg6: memref<2x1x128xf32, #tpu.memory_space<vmem>>, %arg7: memref<2x2x128xf32, #tpu.memory_space<vmem>>, %arg8: memref<2x128x512xbf16, #tpu.memory_space<vmem>>, %arg9: memref<2x1x512xf32, #tpu.memory_space<vmem>>, %arg10: memref<2x512x128xbf16, #tpu.memory_space<vmem>>, %arg11: memref<2x1x128xf32, #tpu.memory_space<vmem>>, %arg12: memref<2x128xf32, #tpu.memory_space<vmem>>, %arg13: memref<128x128xbf16, #tpu.memory_space<vmem>>, %arg14: memref<32x128xf32, #tpu.memory_space<vmem>>, %arg15: memref<2x128xf32, #tpu.memory_space<vmem>>) attributes {dimension_semantics = [], scalar_prefetch = 0 : i64, scratch_operands = 0 : i64, tpu.core_type = #tpu.core_type<tc>} {
    %c0 = arith.constant 0 : index
    %c0_0 = arith.constant 0 : index
    %0 = vector.load %arg1[%c0, %c0_0] : memref<32x128xf32, #tpu.memory_space<vmem>>, vector<32x128xf32>
    %1 = tpu.iota {dimensions = array<i32: 0>} : vector<32x32xi32>
    %2 = tpu.iota {dimensions = array<i32: 1>} : vector<32x32xi32>
    %c4_i32 = arith.constant 4 : i32
    %3 = vector.broadcast %c4_i32 : i32 to vector<32x32xi32>
    %4 = arith.shrui %1, %3 : vector<32x32xi32>
    %c4_i32_1 = arith.constant 4 : i32
    %5 = vector.broadcast %c4_i32_1 : i32 to vector<32x32xi32>
    %6 = arith.shrui %2, %5 : vector<32x32xi32>
    %7 = arith.cmpi eq, %4, %6 : vector<32x32xi32>
    %8 = arith.cmpi sle, %2, %1 : vector<32x32xi32>
    %9 = arith.andi %7, %8 : vector<32x32xi1>
    %c0_2 = arith.constant 0 : index
    %c0_3 = arith.constant 0 : index
    %c0_4 = arith.constant 0 : index
    %10 = vector.load %arg2[%c0_2, %c0_3, %c0_4] : memref<2x2x128xf32, #tpu.memory_space<vmem>>, vector<1x2x128xf32>
    %11 = vector.shape_cast %10 : vector<1x2x128xf32> to vector<2x128xf32>
    %12 = vector.extract_strided_slice %11 {offsets = [0, 0], sizes = [1, 128], strides = [1, 1]} : vector<2x128xf32> to vector<1x128xf32>
    %13 = vector.extract_strided_slice %11 {offsets = [1, 0], sizes = [1, 128], strides = [1, 1]} : vector<2x128xf32> to vector<1x128xf32>
    %cst = arith.constant dense<0.000000e+00> : vector<32xf32>
    %14 = vector.multi_reduction <add>, %0, %cst [1] : vector<32x128xf32> to vector<32xf32>
    %15 = vector.shape_cast %14 : vector<32xf32> to vector<32x1xf32>
    %cst_5 = arith.constant 1.280000e+02 : f32
    %16 = vector.broadcast %cst_5 : f32 to vector<32x1xf32>
    %17 = arith.divf %15, %16 : vector<32x1xf32>
    %18 = vector.broadcast %17 : vector<32x1xf32> to vector<32x128xf32>
    %19 = arith.subf %0, %18 : vector<32x128xf32>
    %20 = arith.mulf %19, %19 : vector<32x128xf32>
    %cst_6 = arith.constant dense<0.000000e+00> : vector<32xf32>
    %21 = vector.multi_reduction <add>, %20, %cst_6 [1] : vector<32x128xf32> to vector<32xf32>
    %22 = vector.shape_cast %21 : vector<32xf32> to vector<32x1xf32>
    %cst_7 = arith.constant 1.280000e+02 : f32
    %23 = vector.broadcast %cst_7 : f32 to vector<32x1xf32>
    %24 = arith.divf %22, %23 : vector<32x1xf32>
    %25 = vector.broadcast %17 : vector<32x1xf32> to vector<32x128xf32>
    %26 = arith.subf %0, %25 : vector<32x128xf32>
    %cst_8 = arith.constant 9.99999974E-6 : f32
    %27 = vector.broadcast %cst_8 : f32 to vector<32x1xf32>
    %28 = arith.addf %24, %27 : vector<32x1xf32>
    %29 = math.rsqrt %28 : vector<32x1xf32>
    %30 = vector.broadcast %29 : vector<32x1xf32> to vector<32x128xf32>
    %31 = arith.mulf %26, %30 : vector<32x128xf32>
    %32 = vector.broadcast %12 : vector<1x128xf32> to vector<32x128xf32>
    %33 = arith.mulf %31, %32 : vector<32x128xf32>
    %34 = vector.broadcast %13 : vector<1x128xf32> to vector<32x128xf32>
    %35 = arith.addf %33, %34 : vector<32x128xf32>
    %36 = arith.truncf %35 : vector<32x128xf32> to vector<32x128xbf16>
    %c0_9 = arith.constant 0 : index
    %c0_10 = arith.constant 0 : index
    %c0_11 = arith.constant 0 : index
    %37 = vector.load %arg3[%c0_9, %c0_10, %c0_11] : memref<2x128x384xbf16, #tpu.memory_space<vmem>>, vector<1x128x384xbf16>
    %38 = vector.shape_cast %37 : vector<1x128x384xbf16> to vector<128x384xbf16>
    %cst_12 = arith.constant dense<0.000000e+00> : vector<32x384xf32>
    %39 = tpu.matmul %36, %38, %cst_12 {dimension_numbers = #tpu.dot_dimension_numbers<[1], [0], [0], [1], [0, 0, 1, 1], [], []>} : vector<32x128xbf16>, vector<128x384xbf16>, vector<32x384xf32> -> vector<32x384xf32>
    %c0_13 = arith.constant 0 : index
    %c0_14 = arith.constant 0 : index
    %c0_15 = arith.constant 0 : index
    %40 = vector.load %arg4[%c0_13, %c0_14, %c0_15] : memref<2x1x384xf32, #tpu.memory_space<vmem>>, vector<1x1x384xf32>
    %41 = vector.shape_cast %40 : vector<1x1x384xf32> to vector<1x384xf32>
    %42 = vector.broadcast %41 : vector<1x384xf32> to vector<32x384xf32>
    %43 = arith.addf %39, %42 : vector<32x384xf32>
    %c0_16 = arith.constant 0 : index
    %c0_17 = arith.constant 0 : index
    %c0_18 = arith.constant 0 : index
    %44 = vector.load %arg5[%c0_16, %c0_17, %c0_18] : memref<2x128x128xbf16, #tpu.memory_space<vmem>>, vector<1x128x128xbf16>
    %45 = vector.shape_cast %44 : vector<1x128x128xbf16> to vector<128x128xbf16>
    %cst_19 = arith.constant 0.000000e+00 : f32
    %46 = vector.broadcast %cst_19 : f32 to vector<32x128xf32>
    %47 = vector.extract_strided_slice %43 {offsets = [0, 0], sizes = [32, 32], strides = [1, 1]} : vector<32x384xf32> to vector<32x32xf32>
    %48 = arith.truncf %47 : vector<32x32xf32> to vector<32x32xbf16>
    %49 = vector.extract_strided_slice %43 {offsets = [0, 128], sizes = [32, 32], strides = [1, 1]} : vector<32x384xf32> to vector<32x32xf32>
    %50 = arith.truncf %49 : vector<32x32xf32> to vector<32x32xbf16>
    %51 = vector.extract_strided_slice %43 {offsets = [0, 256], sizes = [32, 32], strides = [1, 1]} : vector<32x384xf32> to vector<32x32xf32>
    %52 = arith.truncf %51 : vector<32x32xf32> to vector<32x32xbf16>
    %53 = tpu.transpose %50, [1, 0] : vector<32x32xbf16> -> vector<32x32xbf16>
    %cst_20 = arith.constant dense<0.000000e+00> : vector<32x32xf32>
    %54 = tpu.matmul %48, %53, %cst_20 {dimension_numbers = #tpu.dot_dimension_numbers<[1], [0], [0], [1], [0, 0, 1, 1], [], []>} : vector<32x32xbf16>, vector<32x32xbf16>, vector<32x32xf32> -> vector<32x32xf32>
    %cst_21 = arith.constant -1.000000e+30 : f32
    %55 = vector.broadcast %cst_21 : f32 to vector<32x32xf32>
    %56 = arith.select %9, %54, %55 : vector<32x32xi1>, vector<32x32xf32>
    %cst_22 = arith.constant dense<0xFF800000> : vector<32xf32>
    %57 = vector.multi_reduction <maximumf>, %56, %cst_22 [1] : vector<32x32xf32> to vector<32xf32>
    %58 = vector.shape_cast %57 : vector<32xf32> to vector<32x1xf32>
    %59 = vector.broadcast %58 : vector<32x1xf32> to vector<32x32xf32>
    %60 = arith.subf %56, %59 : vector<32x32xf32>
    %61 = math.exp %60 : vector<32x32xf32>
    %cst_23 = arith.constant dense<0.000000e+00> : vector<32xf32>
    %62 = vector.multi_reduction <add>, %61, %cst_23 [1] : vector<32x32xf32> to vector<32xf32>
    %63 = vector.shape_cast %62 : vector<32xf32> to vector<32x1xf32>
    %64 = tpu.reciprocal %63 {approx = true} : vector<32x1xf32> -> vector<32x1xf32>
    %65 = vector.broadcast %64 : vector<32x1xf32> to vector<32x32xf32>
    %66 = arith.mulf %61, %65 : vector<32x32xf32>
    %67 = arith.truncf %66 : vector<32x32xf32> to vector<32x32xbf16>
    %cst_24 = arith.constant dense<0.000000e+00> : vector<32x32xf32>
    %68 = tpu.matmul %67, %52, %cst_24 {dimension_numbers = #tpu.dot_dimension_numbers<[1], [0], [0], [1], [0, 0, 1, 1], [], []>} : vector<32x32xbf16>, vector<32x32xbf16>, vector<32x32xf32> -> vector<32x32xf32>
    %69 = arith.truncf %68 : vector<32x32xf32> to vector<32x32xbf16>
    %70 = vector.extract_strided_slice %45 {offsets = [0, 0], sizes = [32, 128], strides = [1, 1]} : vector<128x128xbf16> to vector<32x128xbf16>
    %cst_25 = arith.constant dense<0.000000e+00> : vector<32x128xf32>
    %71 = tpu.matmul %69, %70, %cst_25 {dimension_numbers = #tpu.dot_dimension_numbers<[1], [0], [0], [1], [0, 0, 1, 1], [], []>} : vector<32x32xbf16>, vector<32x128xbf16>, vector<32x128xf32> -> vector<32x128xf32>
    %72 = arith.addf %46, %71 : vector<32x128xf32>
    %73 = vector.extract_strided_slice %43 {offsets = [0, 32], sizes = [32, 32], strides = [1, 1]} : vector<32x384xf32> to vector<32x32xf32>
    %74 = arith.truncf %73 : vector<32x32xf32> to vector<32x32xbf16>
    %75 = vector.extract_strided_slice %43 {offsets = [0, 160], sizes = [32, 32], strides = [1, 1]} : vector<32x384xf32> to vector<32x32xf32>
    %76 = arith.truncf %75 : vector<32x32xf32> to vector<32x32xbf16>
    %77 = vector.extract_strided_slice %43 {offsets = [0, 288], sizes = [32, 32], strides = [1, 1]} : vector<32x384xf32> to vector<32x32xf32>
    %78 = arith.truncf %77 : vector<32x32xf32> to vector<32x32xbf16>
    %79 = tpu.transpose %76, [1, 0] : vector<32x32xbf16> -> vector<32x32xbf16>
    %cst_26 = arith.constant dense<0.000000e+00> : vector<32x32xf32>
    %80 = tpu.matmul %74, %79, %cst_26 {dimension_numbers = #tpu.dot_dimension_numbers<[1], [0], [0], [1], [0, 0, 1, 1], [], []>} : vector<32x32xbf16>, vector<32x32xbf16>, vector<32x32xf32> -> vector<32x32xf32>
    %cst_27 = arith.constant -1.000000e+30 : f32
    %81 = vector.broadcast %cst_27 : f32 to vector<32x32xf32>
    %82 = arith.select %9, %80, %81 : vector<32x32xi1>, vector<32x32xf32>
    %cst_28 = arith.constant dense<0xFF800000> : vector<32xf32>
    %83 = vector.multi_reduction <maximumf>, %82, %cst_28 [1] : vector<32x32xf32> to vector<32xf32>
    %84 = vector.shape_cast %83 : vector<32xf32> to vector<32x1xf32>
    %85 = vector.broadcast %84 : vector<32x1xf32> to vector<32x32xf32>
    %86 = arith.subf %82, %85 : vector<32x32xf32>
    %87 = math.exp %86 : vector<32x32xf32>
    %cst_29 = arith.constant dense<0.000000e+00> : vector<32xf32>
    %88 = vector.multi_reduction <add>, %87, %cst_29 [1] : vector<32x32xf32> to vector<32xf32>
    %89 = vector.shape_cast %88 : vector<32xf32> to vector<32x1xf32>
    %90 = tpu.reciprocal %89 {approx = true} : vector<32x1xf32> -> vector<32x1xf32>
    %91 = vector.broadcast %90 : vector<32x1xf32> to vector<32x32xf32>
    %92 = arith.mulf %87, %91 : vector<32x32xf32>
    %93 = arith.truncf %92 : vector<32x32xf32> to vector<32x32xbf16>
    %cst_30 = arith.constant dense<0.000000e+00> : vector<32x32xf32>
    %94 = tpu.matmul %93, %78, %cst_30 {dimension_numbers = #tpu.dot_dimension_numbers<[1], [0], [0], [1], [0, 0, 1, 1], [], []>} : vector<32x32xbf16>, vector<32x32xbf16>, vector<32x32xf32> -> vector<32x32xf32>
    %95 = arith.truncf %94 : vector<32x32xf32> to vector<32x32xbf16>
    %96 = vector.extract_strided_slice %45 {offsets = [32, 0], sizes = [32, 128], strides = [1, 1]} : vector<128x128xbf16> to vector<32x128xbf16>
    %cst_31 = arith.constant dense<0.000000e+00> : vector<32x128xf32>
    %97 = tpu.matmul %95, %96, %cst_31 {dimension_numbers = #tpu.dot_dimension_numbers<[1], [0], [0], [1], [0, 0, 1, 1], [], []>} : vector<32x32xbf16>, vector<32x128xbf16>, vector<32x128xf32> -> vector<32x128xf32>
    %98 = arith.addf %72, %97 : vector<32x128xf32>
    %99 = vector.extract_strided_slice %43 {offsets = [0, 64], sizes = [32, 32], strides = [1, 1]} : vector<32x384xf32> to vector<32x32xf32>
    %100 = arith.truncf %99 : vector<32x32xf32> to vector<32x32xbf16>
    %101 = vector.extract_strided_slice %43 {offsets = [0, 192], sizes = [32, 32], strides = [1, 1]} : vector<32x384xf32> to vector<32x32xf32>
    %102 = arith.truncf %101 : vector<32x32xf32> to vector<32x32xbf16>
    %103 = vector.extract_strided_slice %43 {offsets = [0, 320], sizes = [32, 32], strides = [1, 1]} : vector<32x384xf32> to vector<32x32xf32>
    %104 = arith.truncf %103 : vector<32x32xf32> to vector<32x32xbf16>
    %105 = tpu.transpose %102, [1, 0] : vector<32x32xbf16> -> vector<32x32xbf16>
    %cst_32 = arith.constant dense<0.000000e+00> : vector<32x32xf32>
    %106 = tpu.matmul %100, %105, %cst_32 {dimension_numbers = #tpu.dot_dimension_numbers<[1], [0], [0], [1], [0, 0, 1, 1], [], []>} : vector<32x32xbf16>, vector<32x32xbf16>, vector<32x32xf32> -> vector<32x32xf32>
    %cst_33 = arith.constant -1.000000e+30 : f32
    %107 = vector.broadcast %cst_33 : f32 to vector<32x32xf32>
    %108 = arith.select %9, %106, %107 : vector<32x32xi1>, vector<32x32xf32>
    %cst_34 = arith.constant dense<0xFF800000> : vector<32xf32>
    %109 = vector.multi_reduction <maximumf>, %108, %cst_34 [1] : vector<32x32xf32> to vector<32xf32>
    %110 = vector.shape_cast %109 : vector<32xf32> to vector<32x1xf32>
    %111 = vector.broadcast %110 : vector<32x1xf32> to vector<32x32xf32>
    %112 = arith.subf %108, %111 : vector<32x32xf32>
    %113 = math.exp %112 : vector<32x32xf32>
    %cst_35 = arith.constant dense<0.000000e+00> : vector<32xf32>
    %114 = vector.multi_reduction <add>, %113, %cst_35 [1] : vector<32x32xf32> to vector<32xf32>
    %115 = vector.shape_cast %114 : vector<32xf32> to vector<32x1xf32>
    %116 = tpu.reciprocal %115 {approx = true} : vector<32x1xf32> -> vector<32x1xf32>
    %117 = vector.broadcast %116 : vector<32x1xf32> to vector<32x32xf32>
    %118 = arith.mulf %113, %117 : vector<32x32xf32>
    %119 = arith.truncf %118 : vector<32x32xf32> to vector<32x32xbf16>
    %cst_36 = arith.constant dense<0.000000e+00> : vector<32x32xf32>
    %120 = tpu.matmul %119, %104, %cst_36 {dimension_numbers = #tpu.dot_dimension_numbers<[1], [0], [0], [1], [0, 0, 1, 1], [], []>} : vector<32x32xbf16>, vector<32x32xbf16>, vector<32x32xf32> -> vector<32x32xf32>
    %121 = arith.truncf %120 : vector<32x32xf32> to vector<32x32xbf16>
    %122 = vector.extract_strided_slice %45 {offsets = [64, 0], sizes = [32, 128], strides = [1, 1]} : vector<128x128xbf16> to vector<32x128xbf16>
    %cst_37 = arith.constant dense<0.000000e+00> : vector<32x128xf32>
    %123 = tpu.matmul %121, %122, %cst_37 {dimension_numbers = #tpu.dot_dimension_numbers<[1], [0], [0], [1], [0, 0, 1, 1], [], []>} : vector<32x32xbf16>, vector<32x128xbf16>, vector<32x128xf32> -> vector<32x128xf32>
    %124 = arith.addf %98, %123 : vector<32x128xf32>
    %125 = vector.extract_strided_slice %43 {offsets = [0, 96], sizes = [32, 32], strides = [1, 1]} : vector<32x384xf32> to vector<32x32xf32>
    %126 = arith.truncf %125 : vector<32x32xf32> to vector<32x32xbf16>
    %127 = vector.extract_strided_slice %43 {offsets = [0, 224], sizes = [32, 32], strides = [1, 1]} : vector<32x384xf32> to vector<32x32xf32>
    %128 = arith.truncf %127 : vector<32x32xf32> to vector<32x32xbf16>
    %129 = vector.extract_strided_slice %43 {offsets = [0, 352], sizes = [32, 32], strides = [1, 1]} : vector<32x384xf32> to vector<32x32xf32>
    %130 = arith.truncf %129 : vector<32x32xf32> to vector<32x32xbf16>
    %131 = tpu.transpose %128, [1, 0] : vector<32x32xbf16> -> vector<32x32xbf16>
    %cst_38 = arith.constant dense<0.000000e+00> : vector<32x32xf32>
    %132 = tpu.matmul %126, %131, %cst_38 {dimension_numbers = #tpu.dot_dimension_numbers<[1], [0], [0], [1], [0, 0, 1, 1], [], []>} : vector<32x32xbf16>, vector<32x32xbf16>, vector<32x32xf32> -> vector<32x32xf32>
    %cst_39 = arith.constant -1.000000e+30 : f32
    %133 = vector.broadcast %cst_39 : f32 to vector<32x32xf32>
    %134 = arith.select %9, %132, %133 : vector<32x32xi1>, vector<32x32xf32>
    %cst_40 = arith.constant dense<0xFF800000> : vector<32xf32>
    %135 = vector.multi_reduction <maximumf>, %134, %cst_40 [1] : vector<32x32xf32> to vector<32xf32>
    %136 = vector.shape_cast %135 : vector<32xf32> to vector<32x1xf32>
    %137 = vector.broadcast %136 : vector<32x1xf32> to vector<32x32xf32>
    %138 = arith.subf %134, %137 : vector<32x32xf32>
    %139 = math.exp %138 : vector<32x32xf32>
    %cst_41 = arith.constant dense<0.000000e+00> : vector<32xf32>
    %140 = vector.multi_reduction <add>, %139, %cst_41 [1] : vector<32x32xf32> to vector<32xf32>
    %141 = vector.shape_cast %140 : vector<32xf32> to vector<32x1xf32>
    %142 = tpu.reciprocal %141 {approx = true} : vector<32x1xf32> -> vector<32x1xf32>
    %143 = vector.broadcast %142 : vector<32x1xf32> to vector<32x32xf32>
    %144 = arith.mulf %139, %143 : vector<32x32xf32>
    %145 = arith.truncf %144 : vector<32x32xf32> to vector<32x32xbf16>
    %cst_42 = arith.constant dense<0.000000e+00> : vector<32x32xf32>
    %146 = tpu.matmul %145, %130, %cst_42 {dimension_numbers = #tpu.dot_dimension_numbers<[1], [0], [0], [1], [0, 0, 1, 1], [], []>} : vector<32x32xbf16>, vector<32x32xbf16>, vector<32x32xf32> -> vector<32x32xf32>
    %147 = arith.truncf %146 : vector<32x32xf32> to vector<32x32xbf16>
    %148 = vector.extract_strided_slice %45 {offsets = [96, 0], sizes = [32, 128], strides = [1, 1]} : vector<128x128xbf16> to vector<32x128xbf16>
    %cst_43 = arith.constant dense<0.000000e+00> : vector<32x128xf32>
    %149 = tpu.matmul %147, %148, %cst_43 {dimension_numbers = #tpu.dot_dimension_numbers<[1], [0], [0], [1], [0, 0, 1, 1], [], []>} : vector<32x32xbf16>, vector<32x128xbf16>, vector<32x128xf32> -> vector<32x128xf32>
    %150 = arith.addf %124, %149 : vector<32x128xf32>
    %151 = arith.addf %0, %150 : vector<32x128xf32>
    %c0_44 = arith.constant 0 : index
    %c0_45 = arith.constant 0 : index
    %c0_46 = arith.constant 0 : index
    %152 = vector.load %arg6[%c0_44, %c0_45, %c0_46] : memref<2x1x128xf32, #tpu.memory_space<vmem>>, vector<1x1x128xf32>
    %153 = vector.shape_cast %152 : vector<1x1x128xf32> to vector<1x128xf32>
    %154 = vector.broadcast %153 : vector<1x128xf32> to vector<32x128xf32>
    %155 = arith.addf %151, %154 : vector<32x128xf32>
    %c0_47 = arith.constant 0 : index
    %c0_48 = arith.constant 0 : index
    %c0_49 = arith.constant 0 : index
    %156 = vector.load %arg7[%c0_47, %c0_48, %c0_49] : memref<2x2x128xf32, #tpu.memory_space<vmem>>, vector<1x2x128xf32>
    %157 = vector.shape_cast %156 : vector<1x2x128xf32> to vector<2x128xf32>
    %158 = vector.extract_strided_slice %157 {offsets = [0, 0], sizes = [1, 128], strides = [1, 1]} : vector<2x128xf32> to vector<1x128xf32>
    %159 = vector.extract_strided_slice %157 {offsets = [1, 0], sizes = [1, 128], strides = [1, 1]} : vector<2x128xf32> to vector<1x128xf32>
    %cst_50 = arith.constant dense<0.000000e+00> : vector<32xf32>
    %160 = vector.multi_reduction <add>, %155, %cst_50 [1] : vector<32x128xf32> to vector<32xf32>
    %161 = vector.shape_cast %160 : vector<32xf32> to vector<32x1xf32>
    %cst_51 = arith.constant 1.280000e+02 : f32
    %162 = vector.broadcast %cst_51 : f32 to vector<32x1xf32>
    %163 = arith.divf %161, %162 : vector<32x1xf32>
    %164 = vector.broadcast %163 : vector<32x1xf32> to vector<32x128xf32>
    %165 = arith.subf %155, %164 : vector<32x128xf32>
    %166 = arith.mulf %165, %165 : vector<32x128xf32>
    %cst_52 = arith.constant dense<0.000000e+00> : vector<32xf32>
    %167 = vector.multi_reduction <add>, %166, %cst_52 [1] : vector<32x128xf32> to vector<32xf32>
    %168 = vector.shape_cast %167 : vector<32xf32> to vector<32x1xf32>
    %cst_53 = arith.constant 1.280000e+02 : f32
    %169 = vector.broadcast %cst_53 : f32 to vector<32x1xf32>
    %170 = arith.divf %168, %169 : vector<32x1xf32>
    %171 = vector.broadcast %163 : vector<32x1xf32> to vector<32x128xf32>
    %172 = arith.subf %155, %171 : vector<32x128xf32>
    %cst_54 = arith.constant 9.99999974E-6 : f32
    %173 = vector.broadcast %cst_54 : f32 to vector<32x1xf32>
    %174 = arith.addf %170, %173 : vector<32x1xf32>
    %175 = math.rsqrt %174 : vector<32x1xf32>
    %176 = vector.broadcast %175 : vector<32x1xf32> to vector<32x128xf32>
    %177 = arith.mulf %172, %176 : vector<32x128xf32>
    %178 = vector.broadcast %158 : vector<1x128xf32> to vector<32x128xf32>
    %179 = arith.mulf %177, %178 : vector<32x128xf32>
    %180 = vector.broadcast %159 : vector<1x128xf32> to vector<32x128xf32>
    %181 = arith.addf %179, %180 : vector<32x128xf32>
    %182 = arith.truncf %181 : vector<32x128xf32> to vector<32x128xbf16>
    %c0_55 = arith.constant 0 : index
    %c0_56 = arith.constant 0 : index
    %c0_57 = arith.constant 0 : index
    %183 = vector.load %arg8[%c0_55, %c0_56, %c0_57] : memref<2x128x512xbf16, #tpu.memory_space<vmem>>, vector<1x128x512xbf16>
    %184 = vector.shape_cast %183 : vector<1x128x512xbf16> to vector<128x512xbf16>
    %cst_58 = arith.constant dense<0.000000e+00> : vector<32x512xf32>
    %185 = tpu.matmul %182, %184, %cst_58 {dimension_numbers = #tpu.dot_dimension_numbers<[1], [0], [0], [1], [0, 0, 1, 1], [], []>} : vector<32x128xbf16>, vector<128x512xbf16>, vector<32x512xf32> -> vector<32x512xf32>
    %c0_59 = arith.constant 0 : index
    %c0_60 = arith.constant 0 : index
    %c0_61 = arith.constant 0 : index
    %186 = vector.load %arg9[%c0_59, %c0_60, %c0_61] : memref<2x1x512xf32, #tpu.memory_space<vmem>>, vector<1x1x512xf32>
    %187 = vector.shape_cast %186 : vector<1x1x512xf32> to vector<1x512xf32>
    %188 = vector.broadcast %187 : vector<1x512xf32> to vector<32x512xf32>
    %189 = arith.addf %185, %188 : vector<32x512xf32>
    %cst_62 = arith.constant 1.702000e+00 : f32
    %190 = vector.broadcast %cst_62 : f32 to vector<32x512xf32>
    %191 = arith.mulf %190, %189 : vector<32x512xf32>
    %192 = arith.negf %191 : vector<32x512xf32>
    %193 = math.exp %192 : vector<32x512xf32>
    %cst_63 = arith.constant 1.000000e+00 : f32
    %194 = vector.broadcast %cst_63 : f32 to vector<32x512xf32>
    %195 = arith.addf %194, %193 : vector<32x512xf32>
    %196 = arith.divf %194, %195 : vector<32x512xf32>
    %197 = arith.mulf %189, %196 : vector<32x512xf32>
    %198 = arith.truncf %197 : vector<32x512xf32> to vector<32x512xbf16>
    %c0_64 = arith.constant 0 : index
    %c0_65 = arith.constant 0 : index
    %c0_66 = arith.constant 0 : index
    %199 = vector.load %arg10[%c0_64, %c0_65, %c0_66] : memref<2x512x128xbf16, #tpu.memory_space<vmem>>, vector<1x512x128xbf16>
    %200 = vector.shape_cast %199 : vector<1x512x128xbf16> to vector<512x128xbf16>
    %cst_67 = arith.constant dense<0.000000e+00> : vector<32x128xf32>
    %201 = tpu.matmul %198, %200, %cst_67 {dimension_numbers = #tpu.dot_dimension_numbers<[1], [0], [0], [1], [0, 0, 1, 1], [], []>} : vector<32x512xbf16>, vector<512x128xbf16>, vector<32x128xf32> -> vector<32x128xf32>
    %c0_68 = arith.constant 0 : index
    %c0_69 = arith.constant 0 : index
    %c0_70 = arith.constant 0 : index
    %202 = vector.load %arg11[%c0_68, %c0_69, %c0_70] : memref<2x1x128xf32, #tpu.memory_space<vmem>>, vector<1x1x128xf32>
    %203 = vector.shape_cast %202 : vector<1x1x128xf32> to vector<1x128xf32>
    %204 = vector.broadcast %203 : vector<1x128xf32> to vector<32x128xf32>
    %205 = arith.addf %201, %204 : vector<32x128xf32>
    %206 = arith.addf %155, %205 : vector<32x128xf32>
    %c1 = arith.constant 1 : index
    %c0_71 = arith.constant 0 : index
    %c0_72 = arith.constant 0 : index
    %207 = vector.load %arg2[%c1, %c0_71, %c0_72] : memref<2x2x128xf32, #tpu.memory_space<vmem>>, vector<1x2x128xf32>
    %208 = vector.shape_cast %207 : vector<1x2x128xf32> to vector<2x128xf32>
    %209 = vector.extract_strided_slice %208 {offsets = [0, 0], sizes = [1, 128], strides = [1, 1]} : vector<2x128xf32> to vector<1x128xf32>
    %210 = vector.extract_strided_slice %208 {offsets = [1, 0], sizes = [1, 128], strides = [1, 1]} : vector<2x128xf32> to vector<1x128xf32>
    %cst_73 = arith.constant dense<0.000000e+00> : vector<32xf32>
    %211 = vector.multi_reduction <add>, %206, %cst_73 [1] : vector<32x128xf32> to vector<32xf32>
    %212 = vector.shape_cast %211 : vector<32xf32> to vector<32x1xf32>
    %cst_74 = arith.constant 1.280000e+02 : f32
    %213 = vector.broadcast %cst_74 : f32 to vector<32x1xf32>
    %214 = arith.divf %212, %213 : vector<32x1xf32>
    %215 = vector.broadcast %214 : vector<32x1xf32> to vector<32x128xf32>
    %216 = arith.subf %206, %215 : vector<32x128xf32>
    %217 = arith.mulf %216, %216 : vector<32x128xf32>
    %cst_75 = arith.constant dense<0.000000e+00> : vector<32xf32>
    %218 = vector.multi_reduction <add>, %217, %cst_75 [1] : vector<32x128xf32> to vector<32xf32>
    %219 = vector.shape_cast %218 : vector<32xf32> to vector<32x1xf32>
    %cst_76 = arith.constant 1.280000e+02 : f32
    %220 = vector.broadcast %cst_76 : f32 to vector<32x1xf32>
    %221 = arith.divf %219, %220 : vector<32x1xf32>
    %222 = vector.broadcast %214 : vector<32x1xf32> to vector<32x128xf32>
    %223 = arith.subf %206, %222 : vector<32x128xf32>
    %cst_77 = arith.constant 9.99999974E-6 : f32
    %224 = vector.broadcast %cst_77 : f32 to vector<32x1xf32>
    %225 = arith.addf %221, %224 : vector<32x1xf32>
    %226 = math.rsqrt %225 : vector<32x1xf32>
    %227 = vector.broadcast %226 : vector<32x1xf32> to vector<32x128xf32>
    %228 = arith.mulf %223, %227 : vector<32x128xf32>
    %229 = vector.broadcast %209 : vector<1x128xf32> to vector<32x128xf32>
    %230 = arith.mulf %228, %229 : vector<32x128xf32>
    %231 = vector.broadcast %210 : vector<1x128xf32> to vector<32x128xf32>
    %232 = arith.addf %230, %231 : vector<32x128xf32>
    %233 = arith.truncf %232 : vector<32x128xf32> to vector<32x128xbf16>
    %c1_78 = arith.constant 1 : index
    %c0_79 = arith.constant 0 : index
    %c0_80 = arith.constant 0 : index
    %234 = vector.load %arg3[%c1_78, %c0_79, %c0_80] : memref<2x128x384xbf16, #tpu.memory_space<vmem>>, vector<1x128x384xbf16>
    %235 = vector.shape_cast %234 : vector<1x128x384xbf16> to vector<128x384xbf16>
    %cst_81 = arith.constant dense<0.000000e+00> : vector<32x384xf32>
    %236 = tpu.matmul %233, %235, %cst_81 {dimension_numbers = #tpu.dot_dimension_numbers<[1], [0], [0], [1], [0, 0, 1, 1], [], []>} : vector<32x128xbf16>, vector<128x384xbf16>, vector<32x384xf32> -> vector<32x384xf32>
    %c1_82 = arith.constant 1 : index
    %c0_83 = arith.constant 0 : index
    %c0_84 = arith.constant 0 : index
    %237 = vector.load %arg4[%c1_82, %c0_83, %c0_84] : memref<2x1x384xf32, #tpu.memory_space<vmem>>, vector<1x1x384xf32>
    %238 = vector.shape_cast %237 : vector<1x1x384xf32> to vector<1x384xf32>
    %239 = vector.broadcast %238 : vector<1x384xf32> to vector<32x384xf32>
    %240 = arith.addf %236, %239 : vector<32x384xf32>
    %c1_85 = arith.constant 1 : index
    %c0_86 = arith.constant 0 : index
    %c0_87 = arith.constant 0 : index
    %241 = vector.load %arg5[%c1_85, %c0_86, %c0_87] : memref<2x128x128xbf16, #tpu.memory_space<vmem>>, vector<1x128x128xbf16>
    %242 = vector.shape_cast %241 : vector<1x128x128xbf16> to vector<128x128xbf16>
    %cst_88 = arith.constant 0.000000e+00 : f32
    %243 = vector.broadcast %cst_88 : f32 to vector<32x128xf32>
    %244 = vector.extract_strided_slice %240 {offsets = [0, 0], sizes = [32, 32], strides = [1, 1]} : vector<32x384xf32> to vector<32x32xf32>
    %245 = arith.truncf %244 : vector<32x32xf32> to vector<32x32xbf16>
    %246 = vector.extract_strided_slice %240 {offsets = [0, 128], sizes = [32, 32], strides = [1, 1]} : vector<32x384xf32> to vector<32x32xf32>
    %247 = arith.truncf %246 : vector<32x32xf32> to vector<32x32xbf16>
    %248 = vector.extract_strided_slice %240 {offsets = [0, 256], sizes = [32, 32], strides = [1, 1]} : vector<32x384xf32> to vector<32x32xf32>
    %249 = arith.truncf %248 : vector<32x32xf32> to vector<32x32xbf16>
    %250 = tpu.transpose %247, [1, 0] : vector<32x32xbf16> -> vector<32x32xbf16>
    %cst_89 = arith.constant dense<0.000000e+00> : vector<32x32xf32>
    %251 = tpu.matmul %245, %250, %cst_89 {dimension_numbers = #tpu.dot_dimension_numbers<[1], [0], [0], [1], [0, 0, 1, 1], [], []>} : vector<32x32xbf16>, vector<32x32xbf16>, vector<32x32xf32> -> vector<32x32xf32>
    %cst_90 = arith.constant -1.000000e+30 : f32
    %252 = vector.broadcast %cst_90 : f32 to vector<32x32xf32>
    %253 = arith.select %9, %251, %252 : vector<32x32xi1>, vector<32x32xf32>
    %cst_91 = arith.constant dense<0xFF800000> : vector<32xf32>
    %254 = vector.multi_reduction <maximumf>, %253, %cst_91 [1] : vector<32x32xf32> to vector<32xf32>
    %255 = vector.shape_cast %254 : vector<32xf32> to vector<32x1xf32>
    %256 = vector.broadcast %255 : vector<32x1xf32> to vector<32x32xf32>
    %257 = arith.subf %253, %256 : vector<32x32xf32>
    %258 = math.exp %257 : vector<32x32xf32>
    %cst_92 = arith.constant dense<0.000000e+00> : vector<32xf32>
    %259 = vector.multi_reduction <add>, %258, %cst_92 [1] : vector<32x32xf32> to vector<32xf32>
    %260 = vector.shape_cast %259 : vector<32xf32> to vector<32x1xf32>
    %261 = tpu.reciprocal %260 {approx = true} : vector<32x1xf32> -> vector<32x1xf32>
    %262 = vector.broadcast %261 : vector<32x1xf32> to vector<32x32xf32>
    %263 = arith.mulf %258, %262 : vector<32x32xf32>
    %264 = arith.truncf %263 : vector<32x32xf32> to vector<32x32xbf16>
    %cst_93 = arith.constant dense<0.000000e+00> : vector<32x32xf32>
    %265 = tpu.matmul %264, %249, %cst_93 {dimension_numbers = #tpu.dot_dimension_numbers<[1], [0], [0], [1], [0, 0, 1, 1], [], []>} : vector<32x32xbf16>, vector<32x32xbf16>, vector<32x32xf32> -> vector<32x32xf32>
    %266 = arith.truncf %265 : vector<32x32xf32> to vector<32x32xbf16>
    %267 = vector.extract_strided_slice %242 {offsets = [0, 0], sizes = [32, 128], strides = [1, 1]} : vector<128x128xbf16> to vector<32x128xbf16>
    %cst_94 = arith.constant dense<0.000000e+00> : vector<32x128xf32>
    %268 = tpu.matmul %266, %267, %cst_94 {dimension_numbers = #tpu.dot_dimension_numbers<[1], [0], [0], [1], [0, 0, 1, 1], [], []>} : vector<32x32xbf16>, vector<32x128xbf16>, vector<32x128xf32> -> vector<32x128xf32>
    %269 = arith.addf %243, %268 : vector<32x128xf32>
    %270 = vector.extract_strided_slice %240 {offsets = [0, 32], sizes = [32, 32], strides = [1, 1]} : vector<32x384xf32> to vector<32x32xf32>
    %271 = arith.truncf %270 : vector<32x32xf32> to vector<32x32xbf16>
    %272 = vector.extract_strided_slice %240 {offsets = [0, 160], sizes = [32, 32], strides = [1, 1]} : vector<32x384xf32> to vector<32x32xf32>
    %273 = arith.truncf %272 : vector<32x32xf32> to vector<32x32xbf16>
    %274 = vector.extract_strided_slice %240 {offsets = [0, 288], sizes = [32, 32], strides = [1, 1]} : vector<32x384xf32> to vector<32x32xf32>
    %275 = arith.truncf %274 : vector<32x32xf32> to vector<32x32xbf16>
    %276 = tpu.transpose %273, [1, 0] : vector<32x32xbf16> -> vector<32x32xbf16>
    %cst_95 = arith.constant dense<0.000000e+00> : vector<32x32xf32>
    %277 = tpu.matmul %271, %276, %cst_95 {dimension_numbers = #tpu.dot_dimension_numbers<[1], [0], [0], [1], [0, 0, 1, 1], [], []>} : vector<32x32xbf16>, vector<32x32xbf16>, vector<32x32xf32> -> vector<32x32xf32>
    %cst_96 = arith.constant -1.000000e+30 : f32
    %278 = vector.broadcast %cst_96 : f32 to vector<32x32xf32>
    %279 = arith.select %9, %277, %278 : vector<32x32xi1>, vector<32x32xf32>
    %cst_97 = arith.constant dense<0xFF800000> : vector<32xf32>
    %280 = vector.multi_reduction <maximumf>, %279, %cst_97 [1] : vector<32x32xf32> to vector<32xf32>
    %281 = vector.shape_cast %280 : vector<32xf32> to vector<32x1xf32>
    %282 = vector.broadcast %281 : vector<32x1xf32> to vector<32x32xf32>
    %283 = arith.subf %279, %282 : vector<32x32xf32>
    %284 = math.exp %283 : vector<32x32xf32>
    %cst_98 = arith.constant dense<0.000000e+00> : vector<32xf32>
    %285 = vector.multi_reduction <add>, %284, %cst_98 [1] : vector<32x32xf32> to vector<32xf32>
    %286 = vector.shape_cast %285 : vector<32xf32> to vector<32x1xf32>
    %287 = tpu.reciprocal %286 {approx = true} : vector<32x1xf32> -> vector<32x1xf32>
    %288 = vector.broadcast %287 : vector<32x1xf32> to vector<32x32xf32>
    %289 = arith.mulf %284, %288 : vector<32x32xf32>
    %290 = arith.truncf %289 : vector<32x32xf32> to vector<32x32xbf16>
    %cst_99 = arith.constant dense<0.000000e+00> : vector<32x32xf32>
    %291 = tpu.matmul %290, %275, %cst_99 {dimension_numbers = #tpu.dot_dimension_numbers<[1], [0], [0], [1], [0, 0, 1, 1], [], []>} : vector<32x32xbf16>, vector<32x32xbf16>, vector<32x32xf32> -> vector<32x32xf32>
    %292 = arith.truncf %291 : vector<32x32xf32> to vector<32x32xbf16>
    %293 = vector.extract_strided_slice %242 {offsets = [32, 0], sizes = [32, 128], strides = [1, 1]} : vector<128x128xbf16> to vector<32x128xbf16>
    %cst_100 = arith.constant dense<0.000000e+00> : vector<32x128xf32>
    %294 = tpu.matmul %292, %293, %cst_100 {dimension_numbers = #tpu.dot_dimension_numbers<[1], [0], [0], [1], [0, 0, 1, 1], [], []>} : vector<32x32xbf16>, vector<32x128xbf16>, vector<32x128xf32> -> vector<32x128xf32>
    %295 = arith.addf %269, %294 : vector<32x128xf32>
    %296 = vector.extract_strided_slice %240 {offsets = [0, 64], sizes = [32, 32], strides = [1, 1]} : vector<32x384xf32> to vector<32x32xf32>
    %297 = arith.truncf %296 : vector<32x32xf32> to vector<32x32xbf16>
    %298 = vector.extract_strided_slice %240 {offsets = [0, 192], sizes = [32, 32], strides = [1, 1]} : vector<32x384xf32> to vector<32x32xf32>
    %299 = arith.truncf %298 : vector<32x32xf32> to vector<32x32xbf16>
    %300 = vector.extract_strided_slice %240 {offsets = [0, 320], sizes = [32, 32], strides = [1, 1]} : vector<32x384xf32> to vector<32x32xf32>
    %301 = arith.truncf %300 : vector<32x32xf32> to vector<32x32xbf16>
    %302 = tpu.transpose %299, [1, 0] : vector<32x32xbf16> -> vector<32x32xbf16>
    %cst_101 = arith.constant dense<0.000000e+00> : vector<32x32xf32>
    %303 = tpu.matmul %297, %302, %cst_101 {dimension_numbers = #tpu.dot_dimension_numbers<[1], [0], [0], [1], [0, 0, 1, 1], [], []>} : vector<32x32xbf16>, vector<32x32xbf16>, vector<32x32xf32> -> vector<32x32xf32>
    %cst_102 = arith.constant -1.000000e+30 : f32
    %304 = vector.broadcast %cst_102 : f32 to vector<32x32xf32>
    %305 = arith.select %9, %303, %304 : vector<32x32xi1>, vector<32x32xf32>
    %cst_103 = arith.constant dense<0xFF800000> : vector<32xf32>
    %306 = vector.multi_reduction <maximumf>, %305, %cst_103 [1] : vector<32x32xf32> to vector<32xf32>
    %307 = vector.shape_cast %306 : vector<32xf32> to vector<32x1xf32>
    %308 = vector.broadcast %307 : vector<32x1xf32> to vector<32x32xf32>
    %309 = arith.subf %305, %308 : vector<32x32xf32>
    %310 = math.exp %309 : vector<32x32xf32>
    %cst_104 = arith.constant dense<0.000000e+00> : vector<32xf32>
    %311 = vector.multi_reduction <add>, %310, %cst_104 [1] : vector<32x32xf32> to vector<32xf32>
    %312 = vector.shape_cast %311 : vector<32xf32> to vector<32x1xf32>
    %313 = tpu.reciprocal %312 {approx = true} : vector<32x1xf32> -> vector<32x1xf32>
    %314 = vector.broadcast %313 : vector<32x1xf32> to vector<32x32xf32>
    %315 = arith.mulf %310, %314 : vector<32x32xf32>
    %316 = arith.truncf %315 : vector<32x32xf32> to vector<32x32xbf16>
    %cst_105 = arith.constant dense<0.000000e+00> : vector<32x32xf32>
    %317 = tpu.matmul %316, %301, %cst_105 {dimension_numbers = #tpu.dot_dimension_numbers<[1], [0], [0], [1], [0, 0, 1, 1], [], []>} : vector<32x32xbf16>, vector<32x32xbf16>, vector<32x32xf32> -> vector<32x32xf32>
    %318 = arith.truncf %317 : vector<32x32xf32> to vector<32x32xbf16>
    %319 = vector.extract_strided_slice %242 {offsets = [64, 0], sizes = [32, 128], strides = [1, 1]} : vector<128x128xbf16> to vector<32x128xbf16>
    %cst_106 = arith.constant dense<0.000000e+00> : vector<32x128xf32>
    %320 = tpu.matmul %318, %319, %cst_106 {dimension_numbers = #tpu.dot_dimension_numbers<[1], [0], [0], [1], [0, 0, 1, 1], [], []>} : vector<32x32xbf16>, vector<32x128xbf16>, vector<32x128xf32> -> vector<32x128xf32>
    %321 = arith.addf %295, %320 : vector<32x128xf32>
    %322 = vector.extract_strided_slice %240 {offsets = [0, 96], sizes = [32, 32], strides = [1, 1]} : vector<32x384xf32> to vector<32x32xf32>
    %323 = arith.truncf %322 : vector<32x32xf32> to vector<32x32xbf16>
    %324 = vector.extract_strided_slice %240 {offsets = [0, 224], sizes = [32, 32], strides = [1, 1]} : vector<32x384xf32> to vector<32x32xf32>
    %325 = arith.truncf %324 : vector<32x32xf32> to vector<32x32xbf16>
    %326 = vector.extract_strided_slice %240 {offsets = [0, 352], sizes = [32, 32], strides = [1, 1]} : vector<32x384xf32> to vector<32x32xf32>
    %327 = arith.truncf %326 : vector<32x32xf32> to vector<32x32xbf16>
    %328 = tpu.transpose %325, [1, 0] : vector<32x32xbf16> -> vector<32x32xbf16>
    %cst_107 = arith.constant dense<0.000000e+00> : vector<32x32xf32>
    %329 = tpu.matmul %323, %328, %cst_107 {dimension_numbers = #tpu.dot_dimension_numbers<[1], [0], [0], [1], [0, 0, 1, 1], [], []>} : vector<32x32xbf16>, vector<32x32xbf16>, vector<32x32xf32> -> vector<32x32xf32>
    %cst_108 = arith.constant -1.000000e+30 : f32
    %330 = vector.broadcast %cst_108 : f32 to vector<32x32xf32>
    %331 = arith.select %9, %329, %330 : vector<32x32xi1>, vector<32x32xf32>
    %cst_109 = arith.constant dense<0xFF800000> : vector<32xf32>
    %332 = vector.multi_reduction <maximumf>, %331, %cst_109 [1] : vector<32x32xf32> to vector<32xf32>
    %333 = vector.shape_cast %332 : vector<32xf32> to vector<32x1xf32>
    %334 = vector.broadcast %333 : vector<32x1xf32> to vector<32x32xf32>
    %335 = arith.subf %331, %334 : vector<32x32xf32>
    %336 = math.exp %335 : vector<32x32xf32>
    %cst_110 = arith.constant dense<0.000000e+00> : vector<32xf32>
    %337 = vector.multi_reduction <add>, %336, %cst_110 [1] : vector<32x32xf32> to vector<32xf32>
    %338 = vector.shape_cast %337 : vector<32xf32> to vector<32x1xf32>
    %339 = tpu.reciprocal %338 {approx = true} : vector<32x1xf32> -> vector<32x1xf32>
    %340 = vector.broadcast %339 : vector<32x1xf32> to vector<32x32xf32>
    %341 = arith.mulf %336, %340 : vector<32x32xf32>
    %342 = arith.truncf %341 : vector<32x32xf32> to vector<32x32xbf16>
    %cst_111 = arith.constant dense<0.000000e+00> : vector<32x32xf32>
    %343 = tpu.matmul %342, %327, %cst_111 {dimension_numbers = #tpu.dot_dimension_numbers<[1], [0], [0], [1], [0, 0, 1, 1], [], []>} : vector<32x32xbf16>, vector<32x32xbf16>, vector<32x32xf32> -> vector<32x32xf32>
    %344 = arith.truncf %343 : vector<32x32xf32> to vector<32x32xbf16>
    %345 = vector.extract_strided_slice %242 {offsets = [96, 0], sizes = [32, 128], strides = [1, 1]} : vector<128x128xbf16> to vector<32x128xbf16>
    %cst_112 = arith.constant dense<0.000000e+00> : vector<32x128xf32>
    %346 = tpu.matmul %344, %345, %cst_112 {dimension_numbers = #tpu.dot_dimension_numbers<[1], [0], [0], [1], [0, 0, 1, 1], [], []>} : vector<32x32xbf16>, vector<32x128xbf16>, vector<32x128xf32> -> vector<32x128xf32>
    %347 = arith.addf %321, %346 : vector<32x128xf32>
    %348 = arith.addf %206, %347 : vector<32x128xf32>
    %c1_113 = arith.constant 1 : index
    %c0_114 = arith.constant 0 : index
    %c0_115 = arith.constant 0 : index
    %349 = vector.load %arg6[%c1_113, %c0_114, %c0_115] : memref<2x1x128xf32, #tpu.memory_space<vmem>>, vector<1x1x128xf32>
    %350 = vector.shape_cast %349 : vector<1x1x128xf32> to vector<1x128xf32>
    %351 = vector.broadcast %350 : vector<1x128xf32> to vector<32x128xf32>
    %352 = arith.addf %348, %351 : vector<32x128xf32>
    %c1_116 = arith.constant 1 : index
    %c0_117 = arith.constant 0 : index
    %c0_118 = arith.constant 0 : index
    %353 = vector.load %arg7[%c1_116, %c0_117, %c0_118] : memref<2x2x128xf32, #tpu.memory_space<vmem>>, vector<1x2x128xf32>
    %354 = vector.shape_cast %353 : vector<1x2x128xf32> to vector<2x128xf32>
    %355 = vector.extract_strided_slice %354 {offsets = [0, 0], sizes = [1, 128], strides = [1, 1]} : vector<2x128xf32> to vector<1x128xf32>
    %356 = vector.extract_strided_slice %354 {offsets = [1, 0], sizes = [1, 128], strides = [1, 1]} : vector<2x128xf32> to vector<1x128xf32>
    %cst_119 = arith.constant dense<0.000000e+00> : vector<32xf32>
    %357 = vector.multi_reduction <add>, %352, %cst_119 [1] : vector<32x128xf32> to vector<32xf32>
    %358 = vector.shape_cast %357 : vector<32xf32> to vector<32x1xf32>
    %cst_120 = arith.constant 1.280000e+02 : f32
    %359 = vector.broadcast %cst_120 : f32 to vector<32x1xf32>
    %360 = arith.divf %358, %359 : vector<32x1xf32>
    %361 = vector.broadcast %360 : vector<32x1xf32> to vector<32x128xf32>
    %362 = arith.subf %352, %361 : vector<32x128xf32>
    %363 = arith.mulf %362, %362 : vector<32x128xf32>
    %cst_121 = arith.constant dense<0.000000e+00> : vector<32xf32>
    %364 = vector.multi_reduction <add>, %363, %cst_121 [1] : vector<32x128xf32> to vector<32xf32>
    %365 = vector.shape_cast %364 : vector<32xf32> to vector<32x1xf32>
    %cst_122 = arith.constant 1.280000e+02 : f32
    %366 = vector.broadcast %cst_122 : f32 to vector<32x1xf32>
    %367 = arith.divf %365, %366 : vector<32x1xf32>
    %368 = vector.broadcast %360 : vector<32x1xf32> to vector<32x128xf32>
    %369 = arith.subf %352, %368 : vector<32x128xf32>
    %cst_123 = arith.constant 9.99999974E-6 : f32
    %370 = vector.broadcast %cst_123 : f32 to vector<32x1xf32>
    %371 = arith.addf %367, %370 : vector<32x1xf32>
    %372 = math.rsqrt %371 : vector<32x1xf32>
    %373 = vector.broadcast %372 : vector<32x1xf32> to vector<32x128xf32>
    %374 = arith.mulf %369, %373 : vector<32x128xf32>
    %375 = vector.broadcast %355 : vector<1x128xf32> to vector<32x128xf32>
    %376 = arith.mulf %374, %375 : vector<32x128xf32>
    %377 = vector.broadcast %356 : vector<1x128xf32> to vector<32x128xf32>
    %378 = arith.addf %376, %377 : vector<32x128xf32>
    %379 = arith.truncf %378 : vector<32x128xf32> to vector<32x128xbf16>
    %c1_124 = arith.constant 1 : index
    %c0_125 = arith.constant 0 : index
    %c0_126 = arith.constant 0 : index
    %380 = vector.load %arg8[%c1_124, %c0_125, %c0_126] : memref<2x128x512xbf16, #tpu.memory_space<vmem>>, vector<1x128x512xbf16>
    %381 = vector.shape_cast %380 : vector<1x128x512xbf16> to vector<128x512xbf16>
    %cst_127 = arith.constant dense<0.000000e+00> : vector<32x512xf32>
    %382 = tpu.matmul %379, %381, %cst_127 {dimension_numbers = #tpu.dot_dimension_numbers<[1], [0], [0], [1], [0, 0, 1, 1], [], []>} : vector<32x128xbf16>, vector<128x512xbf16>, vector<32x512xf32> -> vector<32x512xf32>
    %c1_128 = arith.constant 1 : index
    %c0_129 = arith.constant 0 : index
    %c0_130 = arith.constant 0 : index
    %383 = vector.load %arg9[%c1_128, %c0_129, %c0_130] : memref<2x1x512xf32, #tpu.memory_space<vmem>>, vector<1x1x512xf32>
    %384 = vector.shape_cast %383 : vector<1x1x512xf32> to vector<1x512xf32>
    %385 = vector.broadcast %384 : vector<1x512xf32> to vector<32x512xf32>
    %386 = arith.addf %382, %385 : vector<32x512xf32>
    %cst_131 = arith.constant 1.702000e+00 : f32
    %387 = vector.broadcast %cst_131 : f32 to vector<32x512xf32>
    %388 = arith.mulf %387, %386 : vector<32x512xf32>
    %389 = arith.negf %388 : vector<32x512xf32>
    %390 = math.exp %389 : vector<32x512xf32>
    %cst_132 = arith.constant 1.000000e+00 : f32
    %391 = vector.broadcast %cst_132 : f32 to vector<32x512xf32>
    %392 = arith.addf %391, %390 : vector<32x512xf32>
    %393 = arith.divf %391, %392 : vector<32x512xf32>
    %394 = arith.mulf %386, %393 : vector<32x512xf32>
    %395 = arith.truncf %394 : vector<32x512xf32> to vector<32x512xbf16>
    %c1_133 = arith.constant 1 : index
    %c0_134 = arith.constant 0 : index
    %c0_135 = arith.constant 0 : index
    %396 = vector.load %arg10[%c1_133, %c0_134, %c0_135] : memref<2x512x128xbf16, #tpu.memory_space<vmem>>, vector<1x512x128xbf16>
    %397 = vector.shape_cast %396 : vector<1x512x128xbf16> to vector<512x128xbf16>
    %cst_136 = arith.constant dense<0.000000e+00> : vector<32x128xf32>
    %398 = tpu.matmul %395, %397, %cst_136 {dimension_numbers = #tpu.dot_dimension_numbers<[1], [0], [0], [1], [0, 0, 1, 1], [], []>} : vector<32x512xbf16>, vector<512x128xbf16>, vector<32x128xf32> -> vector<32x128xf32>
    %c1_137 = arith.constant 1 : index
    %c0_138 = arith.constant 0 : index
    %c0_139 = arith.constant 0 : index
    %399 = vector.load %arg11[%c1_137, %c0_138, %c0_139] : memref<2x1x128xf32, #tpu.memory_space<vmem>>, vector<1x1x128xf32>
    %400 = vector.shape_cast %399 : vector<1x1x128xf32> to vector<1x128xf32>
    %401 = vector.broadcast %400 : vector<1x128xf32> to vector<32x128xf32>
    %402 = arith.addf %398, %401 : vector<32x128xf32>
    %403 = arith.addf %352, %402 : vector<32x128xf32>
    %c0_140 = arith.constant 0 : index
    %c0_141 = arith.constant 0 : index
    %404 = vector.load %arg12[%c0_140, %c0_141] : memref<2x128xf32, #tpu.memory_space<vmem>>, vector<2x128xf32>
    %405 = vector.extract_strided_slice %404 {offsets = [0, 0], sizes = [1, 128], strides = [1, 1]} : vector<2x128xf32> to vector<1x128xf32>
    %406 = vector.extract_strided_slice %404 {offsets = [1, 0], sizes = [1, 128], strides = [1, 1]} : vector<2x128xf32> to vector<1x128xf32>
    %cst_142 = arith.constant dense<0.000000e+00> : vector<32xf32>
    %407 = vector.multi_reduction <add>, %403, %cst_142 [1] : vector<32x128xf32> to vector<32xf32>
    %408 = vector.shape_cast %407 : vector<32xf32> to vector<32x1xf32>
    %cst_143 = arith.constant 1.280000e+02 : f32
    %409 = vector.broadcast %cst_143 : f32 to vector<32x1xf32>
    %410 = arith.divf %408, %409 : vector<32x1xf32>
    %411 = vector.broadcast %410 : vector<32x1xf32> to vector<32x128xf32>
    %412 = arith.subf %403, %411 : vector<32x128xf32>
    %413 = arith.mulf %412, %412 : vector<32x128xf32>
    %cst_144 = arith.constant dense<0.000000e+00> : vector<32xf32>
    %414 = vector.multi_reduction <add>, %413, %cst_144 [1] : vector<32x128xf32> to vector<32xf32>
    %415 = vector.shape_cast %414 : vector<32xf32> to vector<32x1xf32>
    %cst_145 = arith.constant 1.280000e+02 : f32
    %416 = vector.broadcast %cst_145 : f32 to vector<32x1xf32>
    %417 = arith.divf %415, %416 : vector<32x1xf32>
    %418 = vector.broadcast %410 : vector<32x1xf32> to vector<32x128xf32>
    %419 = arith.subf %403, %418 : vector<32x128xf32>
    %cst_146 = arith.constant 9.99999974E-6 : f32
    %420 = vector.broadcast %cst_146 : f32 to vector<32x1xf32>
    %421 = arith.addf %417, %420 : vector<32x1xf32>
    %422 = math.rsqrt %421 : vector<32x1xf32>
    %423 = vector.broadcast %422 : vector<32x1xf32> to vector<32x128xf32>
    %424 = arith.mulf %419, %423 : vector<32x128xf32>
    %425 = vector.broadcast %405 : vector<1x128xf32> to vector<32x128xf32>
    %426 = arith.mulf %424, %425 : vector<32x128xf32>
    %427 = vector.broadcast %406 : vector<1x128xf32> to vector<32x128xf32>
    %428 = arith.addf %426, %427 : vector<32x128xf32>
    %c0_147 = arith.constant 0 : index
    %c0_148 = arith.constant 0 : index
    %429 = vector.load %arg14[%c0_147, %c0_148] : memref<32x128xf32, #tpu.memory_space<vmem>>, vector<32x128xf32>
    tpu.vector_store %arg14[%c0_147, %c0_148], %428 {strides = array<i32>} : memref<32x128xf32, #tpu.memory_space<vmem>>, vector<32x128xf32>,
    %c0_149 = arith.constant 0 : index
    %430 = memref.load %arg0[%c0_149] : memref<2xi32, #tpu.memory_space<smem>>
    %c0_i32 = arith.constant 0 : i32
    %431 = arith.addi %c0_i32, %430 : i32
    %432 = arith.index_cast %431 : i32 to index
    %c0_150 = arith.constant 0 : index
    %433 = vector.load %arg14[%432, %c0_150] : memref<32x128xf32, #tpu.memory_space<vmem>>, vector<1x128xf32>
    %c1_151 = arith.constant 1 : index
    %434 = memref.load %arg0[%c1_151] : memref<2xi32, #tpu.memory_space<smem>>
    %c16_i32 = arith.constant 16 : i32
    %435 = arith.addi %c16_i32, %434 : i32
    %436 = arith.index_cast %435 : i32 to index
    %c0_152 = arith.constant 0 : index
    %437 = vector.load %arg14[%436, %c0_152] : memref<32x128xf32, #tpu.memory_space<vmem>>, vector<1x128xf32>
    %438 = tpu.concatenate %433, %437 in 0 : vector<1x128xf32>, vector<1x128xf32> -> vector<2x128xf32>
    %439 = arith.truncf %438 : vector<2x128xf32> to vector<2x128xbf16>
    %c0_153 = arith.constant 0 : index
    %c0_154 = arith.constant 0 : index
    %440 = vector.load %arg13[%c0_153, %c0_154] : memref<128x128xbf16, #tpu.memory_space<vmem>>, vector<128x128xbf16>
    %cst_155 = arith.constant dense<0.000000e+00> : vector<2x128xf32>
    %441 = tpu.matmul %439, %440, %cst_155 {dimension_numbers = #tpu.dot_dimension_numbers<[1], [0], [0], [1], [0, 0, 1, 1], [], []>} : vector<2x128xbf16>, vector<128x128xbf16>, vector<2x128xf32> -> vector<2x128xf32>
    %c0_156 = arith.constant 0 : index
    %c0_157 = arith.constant 0 : index
    %442 = vector.load %arg15[%c0_156, %c0_157] : memref<2x128xf32, #tpu.memory_space<vmem>>, vector<2x128xf32>
    tpu.vector_store %arg15[%c0_156, %c0_157], %441 {strides = array<i32>} : memref<2x128xf32, #tpu.memory_space<vmem>>, vector<2x128xf32>,
    return
  }
}

</mosaic_0001>

<bundles_post_ra>
// kernel: clip_text_forward.1
= control target key start
LH: loop header
LB: loop body
LE: loop exit
PB: predicated region body
PF: predicated region fallthrough
CT: control target
= control target key end

     0   :  { %21 = vsyncpa [#allocation5], 0  ;;  %s7482_s0 = inlined_call_operand.vmem [shape: s32[2], index: 0, kind: input, shape index: {}]   ;;  %s7483_s1 = inlined_call_operand.vmem [shape: f32[32,128], index: 1, kind: input, shape index: {}]   ;;  %s7484_s2 = inlined_call_operand.vmem [shape: f32[2,2,128], index: 2, kind: input, shape index: {}]   ;;  %s7485_s3 = inlined_call_operand.vmem [shape: bf16[2,128,384], index: 3, kind: input, shape index: {}]   ;;  %s7486_s4 = inlined_call_operand.vmem [shape: f32[2,1,384], index: 4, kind: input, shape index: {}]   ;;  %s7487_s5 = inlined_call_operand.hbm [shape: bf16[2,128,128], index: 5, kind: input, shape index: {}]   ;;  %s7488_s6 = inlined_call_operand.vmem [shape: f32[2,1,128], index: 6, kind: input, shape index: {}]   ;;  %s7489_s7 = inlined_call_operand.vmem [shape: f32[2,2,128], index: 7, kind: input, shape index: {}]   ;;  %s7490_s8 = inlined_call_operand.hbm [shape: bf16[2,128,512], index: 8, kind: input, shape index: {}]   ;;  %s7491_s9 = inlined_call_operand.vmem [shape: f32[2,1,512], index: 9, kind: input, shape index: {}]   ;;  %s7492_s10 = inlined_call_operand.hbm [shape: bf16[2,512,128], index: 10, kind: input, shape index: {}]   ;;  %s7493_s11 = inlined_call_operand.vmem [shape: f32[2,1,128], index: 11, kind: input, shape index: {}]   ;;  %s7494_s12 = inlined_call_operand.vmem [shape: f32[2,128], index: 12, kind: input, shape index: {}]   ;;  %s7495_s13 = inlined_call_operand.vmem [shape: bf16[128,128], index: 13, kind: input, shape index: {}]   ;;  %s7496_s14 = inlined_call_operand.hbm [shape: f32[32,128], index: 14, kind: output, shape index: {0}]   ;;  %s7497_s15 = inlined_call_operand.hbm [shape: f32[2,128], index: 15, kind: output, shape index: {1}]  }
   0x1   :  { %22 = vsyncpa [#allocation3], 0 }
   0x2   :  { %23 = vsyncpa [#allocation8], 0 }
   0x3   :  { %24 = vsyncpa [#allocation4], 0 }
   0x4   :  { %25 = vsyncpa [#allocation12], 0  ;;  %s6399_s18 = smov [#allocation7]   ;;  %s32_s22 = sshll.u32 %s7482_s0, 4  ;;  %s33_s22 = int_to_ptr.vmem [resolvable:$true] %s32_s22 }
   0x5   :  { %s65_s19 = sshll.u32 %s6399_s18, 4  ;;  %s66_s19 = int_to_ptr.vmem [resolvable:$true] %s65_s19 }
   0x6   :  { %s6285_s23 = scalar_lea.vmem %s66_s19, 8192  ;;  %p6290_p1 = scmp.lt.s32.totalorder %s66_s19, %s66_s19 }
   0x7   :  { %p6286_p0 = scmp.ne.s32.totalorder %s66_s19, %s6285_s23  ;;  %p6291_p2 = scmp.lt.s32.totalorder %s6285_s23, %s6285_s23 }
   0x9   :  { %p6292_p3 = por %p6291_p2, %p6290_p1 }
   0xb   :  { %p6293_p4 = pnand %p6292_p3, %p6286_p0 }
   0xd   :  { %6296 = shalt.err (!%p6293_p4)
}
   0xe   :  { %s6400_s24 = smov 256   ;;  %s6401_s25 = smov 16  }
   0xf   :  { %71 = dma.hbm_to_vmem [thread:$0]  %s7490_s8, 8192, %s66_s19, [#allocation8], %s6400_s24, %s6400_s24, %s6401_s25  }
  0x10   :  { %s6297_s28 = scalar_lea.vmem %s33_s22, 16  ;;  %p6302_p6 = scmp.lt.s32.totalorder %s33_s22, %s33_s22 }
  0x11   :  { %p6298_p5 = scmp.ne.s32.totalorder %s33_s22, %s6297_s28  ;;  %p6303_p7 = scmp.lt.s32.totalorder %s6297_s28, %s6297_s28 }
  0x13   :  { %p6304_p8 = por %p6303_p7, %p6302_p6 }
  0x15   :  { %p6305_p9 = pnand %p6304_p8, %p6298_p5 }
  0x17   :  { %6308 = shalt.err (!%p6305_p9)
}
  0x18   :  { %s6402_s0 = smov [#allocation2]   ;;  %s6403_s29 = smov [#allocation6]  }
  0x19   :  { %35 = dma.vmem_to_smem %s33_s22, 16, %s6402_s0, [#allocation5]  }
  0x1a   :  { %s49_s30 = sshll.u32 %s6403_s29, 4  ;;  %s50_s30 = int_to_ptr.vmem [resolvable:$true] %s49_s30 }
  0x1b   :  { %s6317_s16 = scalar_lea.vmem %s50_s30, 2048  ;;  %p6322_p11 = scmp.lt.s32.totalorder %s50_s30, %s50_s30 }
  0x1c   :  { %p6318_p10 = scmp.ne.s32.totalorder %s50_s30, %s6317_s16  ;;  %p6323_p12 = scmp.lt.s32.totalorder %s6317_s16, %s6317_s16 }
  0x1e   :  { %p6324_p13 = por %p6323_p12, %p6322_p11 }
  0x20   :  { %p6325_p0 = pnand %p6324_p13, %p6318_p10 }
  0x22   :  { %6328 = shalt.err (!%p6325_p0)
}
  0x23   :  { %s6404_s8 = smov 64   ;;  %s6405_s17 = smov 4  }
  0x24   :  { %55 = dma.hbm_to_vmem [thread:$0]  %s7487_s5, 2048, %s50_s30, [#allocation3], %s6404_s8, %s6404_s8, %s6405_s17  }
  0x25   :  { %s6406_s20 = smov [#allocation9]  }
  0x26   :  { %s79_s21 = sshll.u32 %s6406_s20, 4  ;;  %s80_s21 = int_to_ptr.vmem [resolvable:$true] %s79_s21 }
  0x27   :  { %s6337_s22 = scalar_lea.vmem %s80_s21, 8192  ;;  %p6342_p2 = scmp.lt.s32.totalorder %s80_s21, %s80_s21 }
  0x28   :  { %p6338_p1 = scmp.ne.s32.totalorder %s80_s21, %s6337_s22  ;;  %p6343_p3 = scmp.lt.s32.totalorder %s6337_s22, %s6337_s22 }
  0x2a   :  { %p6344_p4 = por %p6343_p3, %p6342_p2 }
  0x2c   :  { %p6345_p5 = pnand %p6344_p4, %p6338_p1 }
  0x2e   :  { %6348 = shalt.err (!%p6345_p5)
}
  0x2f   :  { %85 = dma.hbm_to_vmem [thread:$0]  %s7492_s10, 8192, %s80_s21, [#allocation8], %s6404_s8, %s6404_s8, %s6405_s17  }
  0x30   :  { %6389 = dma.done.wait [#allocation5], 16  }
  0x31   :  { %6390 = vsyncadd [#allocation5], 4294967280 }
  0x32   :  { %6391 = dma.done.wait [#allocation3], 2048  }
  0x33   :  { %6392 = vsyncadd [#allocation3], 4294965248 }
  0x34   :  { %6393 = dma.done.wait [#allocation8], 16384  }
  0x35   :  { %6394 = vsyncadd [#allocation8], 4294950912 }
  0x36   :  { %104 = sfence }
  0x37   :  { %v106_v0 = vld [vmem:[%s7483_s1] sm:$0xff]  ;;  %v108_v1 = vld [vmem:[%s7483_s1 + $0x10] sm:$0xff]  ;;  %v107_v2 = vld [vmem:[%s7483_s1 + $0x8] sm:$0xff]  ;;  %v6407_v39 = vmov 0   ;;  %v110_v54 = vlaneseq  ;;  %vm499_vm0 = vcmask 261120   ;;  %s6408_s10 = smov 96  }
  0x38   :  { %135 = vadd.xlane.f32.xlu0 %v106_v0  ;;  %139 = vadd.xlane.f32.xlu1 %v108_v1  ;;  %v109_v3 = vld [vmem:[%s7483_s1 + $0x18] sm:$0xff]  ;;  %v5731_v5 = vld [vmem:[%s7485_s3 + $0xa8] ss:$12 sps:$4 sm:$0xff]   ;;  %v5740_v28 = vld [vmem:[%s7485_s3 + $0x64] ss:$12 sps:$4 sm:$0xff]   ;;  %s6409_s29 = smov 32  }
  0x39   :  { %v5729_v4 = vld [vmem:[%s7485_s3 + $0xac] ss:$12 sps:$4 sm:$0xff]   ;;  %v5732_v22 = vld [vmem:[%s7485_s3 + $0x94] ss:$12 sps:$4 sm:$0xff]   ;;  %v5734_v23 = vld [vmem:[%s7485_s3 + $0xb0] ss:$12 sps:$4 sm:$0xff]   ;;  %407 = vmatprep.mubr.bf16.mxu0 %v6407_v39 }
  0x3a   :  { %375 = vmatprep.subr.bf16.mxu0 %v5729_v4  ;;  %v5735_v24 = vld [vmem:[%s7485_s3 + $0x90] ss:$12 sps:$4 sm:$0xff]   ;;  %5444 = vmatprep.subr.bf16.mxu1 %v5734_v23  ;;  %v5738_v26 = vld [vmem:[%s7485_s3 + $0x98] ss:$12 sps:$4 sm:$0xff]   ;;  %v5742_v29 = vld [vmem:[%s7485_s3 + $0x80] ss:$12 sps:$4 sm:$0xff]  }
  0x3b   :  { %376 = vmatpush1.bf16.msra.mxu0 %v5731_v5  ;;  %5445 = vmatpush3.bf16.msra.mxu1 %v5734_v23  ;;  %v5736_v25 = vld [vmem:[%s7485_s3 + $0x7c] ss:$12 sps:$4 sm:$0xff]   ;;  %v5739_v27 = vld [vmem:[%s7485_s3 + $0x78] ss:$12 sps:$4 sm:$0xff]   ;;  %v5743_v30 = vld [vmem:[%s7485_s3 + $0x60] ss:$12 sps:$4 sm:$0xff]  }
  0x3c   :  { %137 = vadd.xlane.f32.xlu0 %v107_v2  ;;  %141 = vadd.xlane.f32.xlu1 %v109_v3  ;;  %v5744_v31 = vld [vmem:[%s7485_s3 + $0x4c] ss:$12 sps:$4 sm:$0xff]   ;;  %v5746_v32 = vld [vmem:[%s7485_s3 + $0x68] ss:$12 sps:$4 sm:$0xff]   ;;  %v5750_v35 = vld [vmem:[%s7485_s3 + $0x50] ss:$12 sps:$4 sm:$0xff]  }
  0x3d   :  { %377 = vmatprep.subr.bf16.mxu0 %v5732_v22  ;;  %5446 = vmatprep.subr.bf16.mxu1 %v5738_v26  ;;  %v5747_v33 = vld [vmem:[%s7485_s3 + $0x48] ss:$12 sps:$4 sm:$0xff]   ;;  %v5751_v36 = vld [vmem:[%s7485_s3 + $0x30] ss:$12 sps:$4 sm:$0xff]   ;;  %v5754_v38 = vld [vmem:[%s7485_s3 + $0x38] ss:$12 sps:$4 sm:$0xff]  }
  0x3e   :  { %v5748_v34 = vld [vmem:[%s7485_s3 + $0x34] ss:$12 sps:$4 sm:$0xff]   ;;  %v5752_v37 = vld [vmem:[%s7485_s3 + $0x1c] ss:$12 sps:$4 sm:$0xff]   ;;  %v5755_v40 = vld [vmem:[%s7485_s3 + $0x18] ss:$12 sps:$4 sm:$0xff]  }
  0x3f   :  { %378 = vmatpush1.bf16.msra.mxu0 %v5735_v24  ;;  %5447 = vmatpush3.bf16.msra.mxu1 %v5738_v26  ;;  %v5756_v41 = vld [vmem:[%s7485_s3 + $0x4] ss:$12 sps:$4 sm:$0xff]   ;;  %v5758_v42 = vld [vmem:[%s7485_s3 + $0x20] ss:$12 sps:$4 sm:$0xff]   ;;  %v5760_v44 = vld [vmem:[%s7485_s3 + $0x8] ss:$12 sps:$4 sm:$0xff]  }
  0x40   :  { %379 = vmatprep.subr.bf16.mxu0 %v5736_v25  ;;  %5448 = vmatprep.subr.bf16.mxu1 %v5742_v29  ;;  %v5759_v43 = vld [vmem:[%s7485_s3] ss:$12 sps:$4 sm:$0xff]   ;;  %v6614_v58 = vshrl.u32 %v110_v54, 7  ;;  %vm6411_vm13 = vmmov 0   ;;  %vm4739_vm14 = vcmask 1040384  }
  0x41   :  { %v134_v60 = vld [vmem:[%s7484_s2] sm:$0x3] }
  0x42   :  { %v6617_v59 = vsub.s32 0, %v6614_v58 }
  0x43   :  { %380 = vmatpush1.bf16.msra.mxu0 %v5739_v27  ;;  %5449 = vmatpush3.bf16.msra.mxu1 %v5742_v29 }
  0x44   :  { %381 = vmatprep.subr.bf16.mxu0 %v5740_v28  ;;  %5450 = vmatprep.subr.bf16.mxu1 %v5746_v32  ;;  %v183_v63 = vrot.slane %v134_v60, %v6617_v59 }
  0x47   :  { %382 = vmatpush1.bf16.msra.mxu0 %v5743_v30  ;;  %5451 = vmatpush3.bf16.msra.mxu1 %v5746_v32 }
  0x48   :  { %383 = vmatprep.subr.bf16.mxu0 %v5744_v31  ;;  %5452 = vmatprep.subr.bf16.mxu1 %v5750_v35 }
  0x4b   :  { %384 = vmatpush1.bf16.msra.mxu0 %v5747_v33  ;;  %5453 = vmatpush3.bf16.msra.mxu1 %v5750_v35 }
  0x4c   :  { %385 = vmatprep.subr.bf16.mxu0 %v5748_v34  ;;  %5454 = vmatprep.subr.bf16.mxu1 %v5754_v38 }
  0x4f   :  { %386 = vmatpush1.bf16.msra.mxu0 %v5751_v36  ;;  %5455 = vmatpush3.bf16.msra.mxu1 %v5754_v38  ;;  %v6642_v38 = vsub.s32 2, %v6614_v58 }
  0x50   :  { %387 = vmatprep.subr.bf16.mxu0 %v5752_v37  ;;  %5456 = vmatprep.subr.bf16.mxu1 %v5758_v42 }
  0x53   :  { %388 = vmatpush1.bf16.msra.mxu0 %v5755_v40  ;;  %5457 = vmatpush3.bf16.msra.mxu1 %v5758_v42 }
  0x54   :  { %389 = vmatprep.subr.bf16.mxu0 %v5756_v41  ;;  %5458 = vmatprep.subr.bf16.mxu1 %v5760_v44 }
  0x57   :  { %390 = vmatpush1.bf16.msra.mxu0 %v5759_v43  ;;  %5459 = vmatpush3.bf16.msra.mxu1 %v5760_v44 }
  0xc1   :  { %v136_v6 = vpop.xlane.xlu0 %135  ;;  %v140_v7 = vpop.xlane.xlu1 %139 }
  0xc2   :  { %v144_v8 = vmul.f32 0.0078125, %v136_v6  ;;  %v146_v9 = vmul.f32 0.0078125, %v140_v7 }
  0xc4   :  { %v6530_v10 = vsub.f32 %v106_v0, %v144_v8  ;;  %v6532_v11 = vsub.f32 %v108_v1, %v146_v9  ;;  %v6625_v0 = vsub.s32 1, %v6614_v58 }
  0xc5   :  { %v138_v12 = vpop.xlane.xlu0 %137  ;;  %v142_v13 = vpop.xlane.xlu1 %141 }
  0xc6   :  { %v145_v14 = vmul.f32 0.0078125, %v138_v12  ;;  %v152_v15 = vmul.f32 %v6530_v10, %v6530_v10  ;;  %v147_v16 = vmul.f32 0.0078125, %v142_v13  ;;  %v154_v17 = vmul.f32 %v6532_v11, %v6532_v11 }
  0xc7   :  { %v191_v5 = vrot.slane %v134_v60, %v6625_v0  ;;  %v116_v60 = vand.u32 127, %v110_v54 }
  0xc8   :  { %156 = vadd.xlane.f32.xlu0 %v152_v15  ;;  %v6538_v18 = vsub.f32 %v107_v2, %v145_v14  ;;  %v6540_v19 = vsub.f32 %v109_v3, %v147_v16 }
  0xc9   :  { %vm126_vm2 = vcmp.le.s32.totalorder %v116_v60, %v6614_v58 }
  0xca   :  { %v153_v20 = vmul.f32 %v6538_v18, %v6538_v18  ;;  %v155_v21 = vmul.f32 %v6540_v19, %v6540_v19 }
  0xcc   :  { %160 = vadd.xlane.f32.xlu0 %v154_v17  ;;  %158 = vadd.xlane.f32.xlu1 %v153_v20 }
  0xd0   :  { %162 = vadd.xlane.f32.xlu1 %v155_v21 }
 0x151   :  { %v157_v45 = vpop.xlane.xlu0 %156 }
 0x152   :  { %v164_v46 = vmul.f32 0.0078125, %v157_v45 }
 0x154   :  { %v168_v47 = vadd.f32 1e-05, %v164_v46 }
 0x155   :  { %v159_v48 = vpop.xlane.xlu1 %158  ;;  %v161_v49 = vpop.xlane.xlu0 %160 }
 0x156   :  { %5977 = vrsqrt.f32 %v168_v47  ;;  %v165_v50 = vmul.f32 0.0078125, %v159_v48  ;;  %v166_v51 = vmul.f32 0.0078125, %v161_v49 }
 0x158   :  { %v169_v52 = vadd.f32 1e-05, %v165_v50  ;;  %v170_v53 = vadd.f32 1e-05, %v166_v51 }
 0x159   :  { %v163_v55 = vpop.xlane.xlu1 %162 }
 0x15a   :  { %5979 = vrsqrt.f32 %v169_v52  ;;  %v167_v56 = vmul.f32 0.0078125, %v163_v55 }
 0x15b   :  { %5981 = vrsqrt.f32 %v170_v53 }
 0x15c   :  { %v171_v57 = vadd.f32 1e-05, %v167_v56 }
 0x15e   :  { %5983 = vrsqrt.f32 %v171_v57  ;;  %v113_v57 = vadd.s32 16, %v6614_v58 }
 0x160   :  { %vm128_vm4 = vcmp.le.s32.totalorder %v116_v60, %v113_v57 }
 0x163   :  { %v5978_v61 = vpop.eup %5977 }
 0x164   :  { %v176_v62 = vmul.f32 %v5978_v61, %v6530_v10  ;;  %v117_v61 = vshrl.u32 %v6614_v58, 4 }
 0x166   :  { %v184_v4 = vmul.f32 %v183_v63, %v176_v62  ;;  %v112_v62 = vadd.s32 8, %v6614_v58 }
 0x167   :  { %v5980_v1 = vpop.eup %5979 }
 0x168   :  { %v5982_v2 = vpop.eup %5981  ;;  %v177_v3 = vmul.f32 %v5980_v1, %v6538_v18  ;;  %v192_v9 = vadd.f32 %v191_v5, %v184_v4  ;;  %v121_v1 = vshrl.u32 %v116_v60, 4  ;;  %vm127_vm7 = vcmp.le.s32.totalorder %v116_v60, %v112_v62 }
 0x169   :  { %v178_v6 = vmul.f32 %v5982_v2, %v6532_v11  ;;  %v230_v11 = vld [vmem:[%s7486_s4] sm:$0x7]  ;;  %v114_v2 = vadd.s32 24, %v6614_v58 }
 0x16a   :  { %v185_v7 = vmul.f32 %v183_v63, %v177_v3  ;;  %v235_v21 = vrot.slane %v230_v11, %v6617_v59  ;;  %v239_v31 = vrot.slane %v230_v11, %v6625_v0  ;;  %v243_v44 = vrot.slane %v230_v11, %v6642_v38 }
 0x16b   :  { %v5984_v8 = vpop.eup %5983  ;;  %v186_v13 = vmul.f32 %v183_v63, %v178_v6  ;;  %vm122_vm1 = vcmp.eq.s32.totalorder %v117_v61, %v121_v1  ;;  %v118_v3 = vshrl.u32 %v112_v62, 4  ;;  %v120_v4 = vshrl.u32 %v114_v2, 4 }
 0x16c   :  { %v193_v12 = vadd.f32 %v191_v5, %v185_v7  ;;  %v179_v10 = vmul.f32 %v5984_v8, %v6540_v19  ;;  %vm6675_vm5 = vmand %vm122_vm1, %vm126_vm2  ;;  %vm129_vm10 = vcmp.le.s32.totalorder %v116_v60, %v114_v2 }
 0x16d   :  { %v194_v16 = vadd.f32 %v191_v5, %v186_v13  ;;  %vm123_vm6 = vcmp.eq.s32.totalorder %v118_v3, %v121_v1  ;;  %vm125_vm9 = vcmp.eq.s32.totalorder %v120_v4, %v121_v1 }
 0x16e   :  { %v196_v14 = vpack.c.bf16 %v193_v12, %v192_v9  ;;  %v187_v15 = vmul.f32 %v183_v63, %v179_v10  ;;  %v119_v63 = vshrl.u32 %v113_v57, 4  ;;  %vm6686_vm11 = vmand %vm123_vm6, %vm127_vm7 }
 0x16f   :  { %vm6692_vm12 = vmand %vm125_vm9, %vm129_vm10 }
 0x170   :  { %408 = vmatmul.mubr.bf16.vlgmr.msra.gmra.mxu0 %v196_v14  ;;  %5460 = vmatprep.mubr.bf16.mxu1 %v196_v14  ;;  %v195_v17 = vadd.f32 %v191_v5, %v187_v15  ;;  %vm124_vm3 = vcmp.eq.s32.totalorder %v119_v63, %v121_v1 }
 0x171   :  { %417 = vmatprep.mubr.bf16.mxu0 %v6407_v39  ;;  %vm6679_vm8 = vmand %vm124_vm3, %vm128_vm4 }
 0x172   :  { %v197_v18 = vpack.c.bf16 %v195_v17, %v194_v16 }
 0x174   :  { %5461 = vmatmul.mubr.bf16.vlgmr.msra.gmra.mxu1 %v197_v18 }
 0x178   :  { %418 = vmatmul.mubr.bf16.gmra.mxu0 %v197_v18 }
 0x230   :  { %v409_v20 = vpop.f32.mrf.mxu0 }
 0x231   :  { %v410_v23 = vadd.f32 %v409_v20, %v235_v21 }
 0x232   :  { %v411_v19 = vpop.f32.mrf.mxu0 }
 0x233   :  { %v412_v37 = vadd.f32 %v411_v19, %v239_v31 }
 0x234   :  { %v413_v22 = vpop.f32.mrf.mxu0  ;;  %v5462_v29 = vpop.f32.mrf.mxu1 }
 0x235   :  { %v414_v24 = vadd.f32 %v413_v22, %v235_v21  ;;  %v471_v46 = vadd.f32 %v5462_v29, %v243_v44 }
 0x236   :  { %v415_v25 = vpop.f32.mrf.mxu0  ;;  %v462_v36 = vpop.f32.mrf.mxu1 }
 0x237   :  { %v6636_v26 = vpack.c.bf16 %v414_v24, %v410_v23  ;;  %v416_v33 = vadd.f32 %v415_v25, %v239_v31  ;;  %v463_v53 = vadd.f32 %v462_v36, %v243_v44 }
 0x238   :  { %v419_v27 = vpop.f32.mrf.mxu0  ;;  %v5463_v43 = vpop.f32.mrf.mxu1 }
 0x239   :  { %5468 = vmatprep.mubr.msk.bf16.mxu1 %vm499_vm0, %v6636_v26  ;;  %v6646_v41 = vpack.c.bf16 %v416_v33, %v412_v37  ;;  %v474_v45 = vadd.f32 %v5463_v43, %v243_v44  ;;  %v420_v51 = vadd.f32 %v419_v27, %v235_v21 }
 0x23a   :  { %v421_v28 = vpop.f32.mrf.mxu0  ;;  %v465_v49 = vpop.f32.mrf.mxu1 }
 0x23b   :  { %v422_v34 = vadd.f32 %v421_v28, %v239_v31  ;;  %v6655_v47 = vpack.c.bf16 %v474_v45, %v471_v46  ;;  %v507_v48 = vsel %vm499_vm0, %v6646_v41, 0  ;;  %v466_v52 = vadd.f32 %v465_v49, %v243_v44 }
 0x23c   :  { %v423_v30 = vpop.f32.mrf.mxu0 }
 0x23d   :  { %v424_v50 = vadd.f32 %v423_v30, %v235_v21  ;;  %v6662_v56 = vpack.c.bf16 %v466_v52, %v463_v53 }
 0x23e   :  { %v425_v32 = vpop.f32.mrf.mxu0 }
 0x23f   :  { %v426_v35 = vadd.f32 %v425_v32, %v239_v31  ;;  %v6660_v55 = vpack.c.bf16 %v424_v50, %v420_v51 }
 0x241   :  { %v6644_v40 = vpack.c.bf16 %v426_v35, %v422_v34 }
 0x243   :  { %5696 = vmatprep.subr.msk.bf16.mxu1 %vm499_vm0, %v6644_v40  ;;  %v510_v42 = vsel %vm499_vm0, %v6644_v40, 0 }
 0x244   :  { %5465 = vmatpush3.bf16.xpose.msra.mxu1 %v510_v42 }
 0x245   :  { %5697 = vmatprep.subr.msk.bf16.mxu1 %vm499_vm0, %v6646_v41 }
 0x24c   :  { %5467 = vmatpush3.bf16.xpose.msra.mxu1 %v507_v48 }
 0x24d   :  { %5472 = vmatprep.subr.bf16.mxu1 %v6655_v47 }
 0x253   :  { %5469 = vmatmul.mubr.msk.bf16.vlgmr.msra.gmra.mxu1 %vm499_vm0, %v6660_v55 }
 0x254   :  { %5473 = vmatpush3.bf16.msra.mxu1 %v6655_v47 }
 0x255   :  { %5474 = vmatprep.subr.bf16.mxu1 %v6662_v56 }
 0x258   :  { %5475 = vmatpush3.bf16.msra.mxu1 %v6662_v56 }
 0x313   :  { %v5470_v5 = vpop.f32.mrf.mxu1 }
 0x314   :  { %v563_v13 = vsel %vm6679_vm8, %v5470_v5, -1e+30 }
 0x315   :  { %v546_v7 = vpop.f32.mrf.mxu1  ;;  %v571_v17 = vsel %vm499_vm0, %v563_v13, -inf }
 0x316   :  { %v561_v8 = vsel %vm6675_vm5, %v546_v7, -1e+30 }
 0x317   :  { %v5471_v9 = vpop.f32.mrf.mxu1  ;;  %v565_v12 = vsel %vm499_vm0, %v561_v8, -inf }
 0x318   :  { %566 = vmax.xlane.f32.xlu0 %v565_v12  ;;  %v564_v11 = vsel %vm6692_vm12, %v5471_v9, -1e+30  ;;  %v5761_v9 = vld [vmem:[#allocation6 + $0x8] sm:$0xff]   ;;  %v5762_v12 = vld [vmem:[#allocation6] sm:$0xff]  }
 0x319   :  { %v549_v15 = vpop.f32.mrf.mxu1  ;;  %v574_v20 = vsel %vm499_vm0, %v564_v11, -inf }
 0x31a   :  { %v562_v16 = vsel %vm6686_vm11, %v549_v15, -1e+30 }
 0x31b   :  { %v568_v18 = vsel %vm499_vm0, %v562_v16, -inf }
 0x31c   :  { %572 = vmax.xlane.f32.xlu0 %v571_v17  ;;  %569 = vmax.xlane.f32.xlu1 %v568_v18 }
 0x320   :  { %575 = vmax.xlane.f32.xlu1 %v574_v20 }
 0x3a1   :  { %v567_v21 = vpop.xlane.xlu0 %566 }
 0x3a2   :  { %v577_v19 = vsub.f32 %v561_v8, %v567_v21 }
 0x3a4   :  { %v581_v27 = vmul.f32 1.442695, %v577_v19 }
 0x3a5   :  { %v573_v22 = vpop.xlane.xlu0 %572  ;;  %v570_v23 = vpop.xlane.xlu1 %569 }
 0x3a6   :  { %v579_v24 = vsub.f32 %v563_v13, %v573_v22  ;;  %v578_v25 = vsub.f32 %v562_v16, %v570_v23 }
 0x3a8   :  { %v585_v28 = vmul.f32 1.442695, %v579_v24  ;;  %v583_v29 = vmul.f32 1.442695, %v578_v25 }
 0x3a9   :  { %v576_v30 = vpop.xlane.xlu1 %575 }
 0x3aa   :  { %5985 = vpow2.f32 %v585_v28  ;;  %v580_v31 = vsub.f32 %v564_v11, %v576_v30 }
 0x3ab   :  { %5987 = vpow2.f32 %v583_v29 }
 0x3ac   :  { %5989 = vpow2.f32 %v581_v27  ;;  %v587_v32 = vmul.f32 1.442695, %v580_v31 }
 0x3ae   :  { %5991 = vpow2.f32 %v587_v32 }
 0x3b7   :  { %v5986_v33 = vpop.eup %5985 }
 0x3b8   :  { %v5988_v34 = vpop.eup %5987  ;;  %v595_v35 = vsel %vm499_vm0, %v5986_v33, 0.0 }
 0x3b9   :  { %v5990_v36 = vpop.eup %5989  ;;  %596 = vadd.xlane.f32.xlu0 %v595_v35  ;;  %v592_v37 = vsel %vm499_vm0, %v5988_v34, 0.0 }
 0x3ba   :  { %593 = vadd.xlane.f32.xlu1 %v592_v37  ;;  %v589_v43 = vsel %vm499_vm0, %v5990_v36, 0.0 }
 0x3bb   :  { %v5992_v42 = vpop.eup %5991 }
 0x3bc   :  { %v598_v44 = vsel %vm499_vm0, %v5992_v42, 0.0 }
 0x3bd   :  { %590 = vadd.xlane.f32.xlu0 %v589_v43 }
 0x3be   :  { %599 = vadd.xlane.f32.xlu1 %v598_v44 }
 0x3cf   :  { %676 = vrot.lane.b32.xlu1 %v6646_v41, %s6408_s10 }
 0x3d3   :  { %670 = vrot.lane.b32.xlu1 %v6636_v26, %s6408_s10  ;;  %678 = vrot.lane.b32.xlu0 %v6644_v40, %s6408_s10 }
 0x3d7   :  { %672 = vrot.lane.b32.xlu1 %v6660_v55, %s6408_s10 }
 0x442   :  { %v597_v45 = vpop.xlane.xlu0 %596 }
 0x443   :  { %v594_v46 = vpop.xlane.xlu1 %593 }
 0x444   :  { %5993 = vrcp.f32 %v594_v46 }
 0x445   :  { %5995 = vrcp.f32 %v597_v45 }
 0x446   :  { %v591_v48 = vpop.xlane.xlu0 %590 }
 0x447   :  { %5997 = vrcp.f32 %v591_v48  ;;  %v600_v49 = vpop.xlane.xlu1 %599 }
 0x448   :  { %5999 = vrcp.f32 %v600_v49 }
 0x44a   :  { %v679_v50 = vpop.permute.xlu0 %678 }
 0x44b   :  { %5698 = vmatprep.subr.msk.bf16.mxu1 %vm499_vm0, %v679_v50  ;;  %v677_v57 = vpop.permute.xlu1 %676  ;;  %v690_v5 = vsel %vm499_vm0, %v679_v50, 0 }
 0x44c   :  { %v687_v7 = vsel %vm499_vm0, %v677_v57, 0 }
 0x44f   :  { %v671_v4 = vpop.permute.xlu1 %670 }
 0x451   :  { %v5994_v51 = vpop.eup %5993 }
 0x452   :  { %v5996_v52 = vpop.eup %5995  ;;  %v606_v62 = vmul.f32 %v5994_v51, %v5988_v34 }
 0x453   :  { %v607_v63 = vmul.f32 %v5996_v52, %v5986_v33  ;;  %v673_v8 = vpop.permute.xlu1 %672 }
 0x454   :  { %v5998_v53 = vpop.eup %5997 }
 0x455   :  { %v6000_v60 = vpop.eup %5999  ;;  %v605_v61 = vmul.f32 %v5998_v53, %v5990_v36 }
 0x456   :  { %v608_v1 = vmul.f32 %v6000_v60, %v5992_v42 }
 0x457   :  { %v609_v2 = vpack.c.bf16 %v606_v62, %v605_v61 }
 0x458   :  { %v610_v3 = vpack.c.bf16 %v608_v1, %v607_v63 }
 0x459   :  { %5476 = vmatprep.mubr.msk.bf16.mxu1 %vm499_vm0, %v609_v2 }
 0x45a   :  { %5477 = vmatmul.mubr.msk.bf16.vlgmr.msra.gmra.mxu1 %vm499_vm0, %v610_v3  ;;  %v5763_v3 = vld [vmem:[#allocation6 + $0x18] sm:$0xff]  }
 0x45b   :  { %5481 = vmatpush3.bf16.xpose.msra.mxu1 %v690_v5  ;;  %5484 = vmatprep.mubr.msk.bf16.mxu1 %vm499_vm0, %v671_v4 }
 0x45c   :  { %5699 = vmatprep.subr.msk.bf16.mxu1 %vm499_vm0, %v677_v57 }
 0x463   :  { %5483 = vmatpush3.bf16.xpose.msra.mxu1 %v687_v7 }
 0x464   :  { %5504 = vmatprep.subr.bf16.mxu1 %v5761_v9 }
 0x46a   :  { %5485 = vmatmul.mubr.msk.bf16.vlgmr.msra.gmra.mxu1 %vm499_vm0, %v673_v8 }
 0x46b   :  { %5505 = vmatpush3.bf16.msra.mxu1 %v5761_v9 }
 0x46c   :  { %5506 = vmatprep.subr.bf16.mxu1 %v5762_v12 }
 0x46f   :  { %5507 = vmatpush3.bf16.msra.mxu1 %v5762_v12 }
 0x51a   :  { %v5478_v13 = vpop.f32.mrf.mxu1 }
 0x51c   :  { %v651_v15 = vpop.f32.mrf.mxu1 }
 0x51e   :  { %v5479_v16 = vpop.f32.mrf.mxu1 }
 0x51f   :  { %v667_v11 = vpack.c.bf16 %v5479_v16, %v5478_v13  ;;  %v5764_v16 = vld [vmem:[#allocation6 + $0x10] sm:$0xff]  }
 0x520   :  { %v654_v17 = vpop.f32.mrf.mxu1 }
 0x521   :  { %v666_v18 = vpack.c.bf16 %v654_v17, %v651_v15 }
 0x523   :  { %5508 = vmatprep.mubr.msk.bf16.mxu1 %vm499_vm0, %v666_v18 }
 0x524   :  { %5509 = vmatmul.mubr.msk.bf16.vlgmr.msra.gmra.mxu1 %vm499_vm0, %v667_v11 }
 0x52a   :  { %v5486_v20 = vpop.f32.mrf.mxu1 }
 0x52b   :  { %v743_v24 = vsel %vm6679_vm8, %v5486_v20, -1e+30 }
 0x52c   :  { %v726_v21 = vpop.f32.mrf.mxu1  ;;  %v751_v28 = vsel %vm499_vm0, %v743_v24, -inf }
 0x52d   :  { %v741_v19 = vsel %vm6675_vm5, %v726_v21, -1e+30 }
 0x52e   :  { %v5487_v22 = vpop.f32.mrf.mxu1  ;;  %v745_v23 = vsel %vm499_vm0, %v741_v19, -inf }
 0x52f   :  { %746 = vmax.xlane.f32.xlu0 %v745_v23  ;;  %v744_v30 = vsel %vm6692_vm12, %v5487_v22, -1e+30 }
 0x530   :  { %v729_v25 = vpop.f32.mrf.mxu1  ;;  %v754_v31 = vsel %vm499_vm0, %v744_v30, -inf }
 0x531   :  { %v742_v27 = vsel %vm6686_vm11, %v729_v25, -1e+30 }
 0x532   :  { %v748_v29 = vsel %vm499_vm0, %v742_v27, -inf }
 0x533   :  { %752 = vmax.xlane.f32.xlu0 %v751_v28  ;;  %749 = vmax.xlane.f32.xlu1 %v748_v29 }
 0x537   :  { %755 = vmax.xlane.f32.xlu0 %v754_v31 }
 0x5b8   :  { %v747_v32 = vpop.xlane.xlu0 %746 }
 0x5b9   :  { %v757_v33 = vsub.f32 %v741_v19, %v747_v32 }
 0x5bb   :  { %v761_v37 = vmul.f32 1.442695, %v757_v33 }
 0x5bc   :  { %v753_v34 = vpop.xlane.xlu0 %752  ;;  %v750_v35 = vpop.xlane.xlu1 %749 }
 0x5bd   :  { %v759_v36 = vsub.f32 %v743_v24, %v753_v34  ;;  %v758_v43 = vsub.f32 %v742_v27, %v750_v35 }
 0x5bf   :  { %v765_v42 = vmul.f32 1.442695, %v759_v36  ;;  %v763_v46 = vmul.f32 1.442695, %v758_v43 }
 0x5c0   :  { %v756_v44 = vpop.xlane.xlu0 %755 }
 0x5c1   :  { %6001 = vpow2.f32 %v765_v42  ;;  %v760_v45 = vsub.f32 %v744_v30, %v756_v44 }
 0x5c2   :  { %6003 = vpow2.f32 %v761_v37 }
 0x5c3   :  { %v767_v48 = vmul.f32 1.442695, %v760_v45 }
 0x5c5   :  { %6005 = vpow2.f32 %v767_v48 }
 0x5c6   :  { %6007 = vpow2.f32 %v763_v46 }
 0x5ce   :  { %v6002_v49 = vpop.eup %6001 }
 0x5cf   :  { %v775_v50 = vsel %vm499_vm0, %v6002_v49, 0.0  ;;  %v6004_v51 = vpop.eup %6003 }
 0x5d0   :  { %776 = vadd.xlane.f32.xlu0 %v775_v50  ;;  %v769_v53 = vsel %vm499_vm0, %v6004_v51, 0.0 }
 0x5d2   :  { %v6006_v52 = vpop.eup %6005 }
 0x5d3   :  { %v778_v57 = vsel %vm499_vm0, %v6006_v52, 0.0  ;;  %v6008_v60 = vpop.eup %6007 }
 0x5d4   :  { %770 = vadd.xlane.f32.xlu0 %v769_v53  ;;  %779 = vadd.xlane.f32.xlu1 %v778_v57  ;;  %v772_v61 = vsel %vm499_vm0, %v6008_v60, 0.0 }
 0x5d8   :  { %773 = vadd.xlane.f32.xlu1 %v772_v61 }
 0x5e9   :  { %793 = vrot.lane.b32.xlu1 %v6662_v56, %s6408_s10 }
 0x5ea   :  { %795 = vrot.lane.b32.xlu0 %v6655_v47, %s6408_s10 }
 0x5ed   :  { %996 = vrot.lane.b32.xlu1 %v6644_v40, %s6404_s8 }
 0x5ee   :  { %990 = vrot.lane.b32.xlu0 %v6636_v26, %s6404_s8 }
 0x5f1   :  { %994 = vrot.lane.b32.xlu1 %v6646_v41, %s6404_s8 }
 0x5f2   :  { %1249 = vrot.lane.b32.xlu0 %v6644_v40, %s6409_s29 }
 0x5f5   :  { %992 = vrot.lane.b32.xlu1 %v6660_v55, %s6404_s8 }
 0x5f6   :  { %1243 = vrot.lane.b32.xlu0 %v6636_v26, %s6409_s29 }
 0x5f9   :  { %1247 = vrot.lane.b32.xlu1 %v6646_v41, %s6409_s29 }
 0x5fd   :  { %1245 = vrot.lane.b32.xlu1 %v6660_v55, %s6409_s29 }
 0x659   :  { %v777_v62 = vpop.xlane.xlu0 %776 }
 0x65d   :  { %v771_v63 = vpop.xlane.xlu0 %770  ;;  %v780_v1 = vpop.xlane.xlu1 %779 }
 0x65e   :  { %6009 = vrcp.f32 %v780_v1 }
 0x65f   :  { %6011 = vrcp.f32 %v771_v63 }
 0x660   :  { %6013 = vrcp.f32 %v777_v62 }
 0x661   :  { %v796_v2 = vpop.permute.xlu0 %795  ;;  %v774_v40 = vpop.xlane.xlu1 %773 }
 0x662   :  { %6015 = vrcp.f32 %v774_v40  ;;  %5488 = vmatprep.subr.bf16.mxu0 %v796_v2 }
 0x663   :  { %5489 = vmatpush3.bf16.msra.mxu0 %v796_v2 }
 0x665   :  { %v794_v4 = vpop.permute.xlu1 %793  ;;  %v991_v23 = vpop.permute.xlu0 %990 }
 0x666   :  { %5490 = vmatprep.subr.bf16.mxu0 %v794_v4 }
 0x667   :  { %5491 = vmatpush3.bf16.msra.mxu0 %v794_v4 }
 0x668   :  { %5496 = vmatprep.subr.bf16.mxu0 %v5763_v3 }
 0x669   :  { %v997_v17 = vpop.permute.xlu1 %996  ;;  %v1250_v28 = vpop.permute.xlu0 %1249 }
 0x66a   :  { %v1008_v24 = vsel %vm499_vm0, %v997_v17, 0  ;;  %v1261_v31 = vsel %vm499_vm0, %v1250_v28, 0 }
 0x66b   :  { %v6010_v26 = vpop.eup %6009 }
 0x66c   :  { %v6012_v41 = vpop.eup %6011  ;;  %v788_v7 = vmul.f32 %v6010_v26, %v6006_v52 }
 0x66d   :  { %v6014_v5 = vpop.eup %6013  ;;  %v785_v8 = vmul.f32 %v6012_v41, %v6004_v51  ;;  %v995_v25 = vpop.permute.xlu1 %994 }
 0x66e   :  { %v787_v12 = vmul.f32 %v6014_v5, %v6002_v49  ;;  %v1005_v27 = vsel %vm499_vm0, %v995_v25, 0  ;;  %v1244_v30 = vpop.permute.xlu0 %1243 }
 0x66f   :  { %v6016_v55 = vpop.eup %6015 }
 0x670   :  { %v786_v9 = vmul.f32 %v6016_v55, %v6008_v60  ;;  %v790_v15 = vpack.c.bf16 %v788_v7, %v787_v12 }
 0x671   :  { %v993_v29 = vpop.permute.xlu1 %992 }
 0x672   :  { %v789_v13 = vpack.c.bf16 %v786_v9, %v785_v8 }
 0x674   :  { %5492 = vmatprep.mubr.msk.bf16.mxu0 %vm499_vm0, %v789_v13 }
 0x675   :  { %5493 = vmatmul.mubr.msk.bf16.vlgmr.msra.gmra.mxu0 %vm499_vm0, %v790_v15  ;;  %v1248_v32 = vpop.permute.xlu1 %1247 }
 0x676   :  { %5497 = vmatpush3.bf16.msra.mxu0 %v5763_v3  ;;  %v1258_v33 = vsel %vm499_vm0, %v1248_v32, 0 }
 0x677   :  { %5498 = vmatprep.subr.bf16.mxu0 %v5764_v16 }
 0x679   :  { %v1246_v34 = vpop.permute.xlu1 %1245 }
 0x67a   :  { %5499 = vmatpush3.bf16.msra.mxu0 %v5764_v16 }
 0x67b   :  { %5700 = vmatprep.subr.msk.bf16.mxu0 %vm499_vm0, %v997_v17 }
 0x735   :  { %v5494_v18 = vpop.f32.mrf.mxu0 }
 0x737   :  { %v839_v11 = vpop.f32.mrf.mxu0 }
 0x739   :  { %v5495_v20 = vpop.f32.mrf.mxu0 }
 0x73a   :  { %v855_v22 = vpack.c.bf16 %v5495_v20, %v5494_v18 }
 0x73b   :  { %v842_v21 = vpop.f32.mrf.mxu0 }
 0x73c   :  { %v854_v19 = vpack.c.bf16 %v842_v21, %v839_v11 }
 0x73e   :  { %5500 = vmatprep.mubr.msk.bf16.mxu0 %vm499_vm0, %v854_v19 }
 0x73f   :  { %5501 = vmatmul.mubr.msk.bf16.vlgmr.msra.gmra.mxu0 %vm499_vm0, %v855_v22 }
 0x740   :  { %5513 = vmatpush3.bf16.xpose.msra.mxu0 %v1008_v24  ;;  %5516 = vmatprep.mubr.msk.bf16.mxu0 %vm499_vm0, %v991_v23 }
 0x741   :  { %5701 = vmatprep.subr.msk.bf16.mxu0 %vm499_vm0, %v995_v25 }
 0x748   :  { %5515 = vmatpush3.bf16.xpose.msra.mxu0 %v1005_v27 }
 0x749   :  { %5702 = vmatprep.subr.msk.bf16.mxu0 %vm499_vm0, %v1250_v28 }
 0x74f   :  { %5517 = vmatmul.mubr.msk.bf16.vlgmr.msra.gmra.mxu0 %vm499_vm0, %v993_v29 }
 0x750   :  { %5537 = vmatpush3.bf16.xpose.msra.mxu0 %v1261_v31  ;;  %5540 = vmatprep.mubr.msk.bf16.mxu0 %vm499_vm0, %v1244_v30 }
 0x751   :  { %5703 = vmatprep.subr.msk.bf16.mxu0 %vm499_vm0, %v1248_v32 }
 0x758   :  { %5539 = vmatpush3.bf16.xpose.msra.mxu0 %v1258_v33 }
 0x75f   :  { %5541 = vmatmul.mubr.msk.bf16.vlgmr.msra.gmra.mxu0 %vm499_vm0, %v1246_v34 }
 0x760   :  { %1820 = vmatprep.mubr.bf16.mxu0 %v6407_v39 }
 0x7ff   :  { %v6778_v35 = vpop.f32.mrf.mxu0 }
 0x801   :  { %v6780_v36 = vpop.f32.mrf.mxu0 }
 0x803   :  { %v6782_v37 = vpop.f32.mrf.mxu0 }
 0x805   :  { %v6784_v42 = vpop.f32.mrf.mxu0 }
 0x80f   :  { %v5518_v43 = vpop.f32.mrf.mxu0 }
 0x810   :  { %v1061_v49 = vsel %vm6679_vm8, %v5518_v43, -1e+30 }
 0x811   :  { %v1044_v44 = vpop.f32.mrf.mxu0  ;;  %v1069_v52 = vsel %vm499_vm0, %v1061_v49, -inf }
 0x812   :  { %v1059_v45 = vsel %vm6675_vm5, %v1044_v44, -1e+30 }
 0x813   :  { %v5519_v46 = vpop.f32.mrf.mxu0  ;;  %v1063_v48 = vsel %vm499_vm0, %v1059_v45, -inf }
 0x814   :  { %1064 = vmax.xlane.f32.xlu0 %v1063_v48  ;;  %v1062_v57 = vsel %vm6692_vm12, %v5519_v46, -1e+30 }
 0x815   :  { %v1047_v50 = vpop.f32.mrf.mxu0  ;;  %v1072_v60 = vsel %vm499_vm0, %v1062_v57, -inf }
 0x816   :  { %v1060_v51 = vsel %vm6686_vm11, %v1047_v50, -1e+30 }
 0x817   :  { %v1066_v53 = vsel %vm499_vm0, %v1060_v51, -inf }
 0x818   :  { %1070 = vmax.xlane.f32.xlu0 %v1069_v52  ;;  %1067 = vmax.xlane.f32.xlu1 %v1066_v53 }
 0x81c   :  { %1073 = vmax.xlane.f32.xlu0 %v1072_v60 }
 0x81f   :  { %v5542_v18 = vpop.f32.mrf.mxu0 }
 0x820   :  { %v1314_v23 = vsel %vm6679_vm8, %v5542_v18, -1e+30  ;;  %v5766_v18 = vld [vmem:[#allocation6 + $0x20] sm:$0xff]  }
 0x821   :  { %v1297_v11 = vpop.f32.mrf.mxu0  ;;  %v1322_v25 = vsel %vm499_vm0, %v1314_v23, -inf }
 0x822   :  { %v1312_v24 = vsel %vm6675_vm5, %v1297_v11, -1e+30  ;;  %v5510_v11 = vpop.f32.mrf.mxu1 }
 0x823   :  { %v5543_v20 = vpop.f32.mrf.mxu0  ;;  %v1316_v27 = vsel %vm499_vm0, %v1312_v24, -inf }
 0x824   :  { %v1315_v28 = vsel %vm6692_vm12, %v5543_v20, -1e+30  ;;  %v975_v20 = vpop.f32.mrf.mxu1 }
 0x825   :  { %v1300_v21 = vpop.f32.mrf.mxu0  ;;  %v1325_v29 = vsel %vm499_vm0, %v1315_v28, -inf }
 0x826   :  { %v1313_v19 = vsel %vm6686_vm11, %v1300_v21, -1e+30  ;;  %v5511_v21 = vpop.f32.mrf.mxu1 }
 0x827   :  { %v1319_v22 = vsel %vm499_vm0, %v1313_v19, -inf }
 0x89d   :  { %v1065_v61 = vpop.xlane.xlu0 %1064 }
 0x89e   :  { %v1075_v62 = vsub.f32 %v1059_v45, %v1065_v61 }
 0x8a0   :  { %v1079_v40 = vmul.f32 1.442695, %v1075_v62 }
 0x8a1   :  { %v1071_v63 = vpop.xlane.xlu0 %1070  ;;  %v1068_v1 = vpop.xlane.xlu1 %1067 }
 0x8a2   :  { %v1077_v2 = vsub.f32 %v1061_v49, %v1071_v63  ;;  %v1076_v4 = vsub.f32 %v1060_v51, %v1068_v1 }
 0x8a4   :  { %v1083_v3 = vmul.f32 1.442695, %v1077_v2  ;;  %v1081_v5 = vmul.f32 1.442695, %v1076_v4 }
 0x8a5   :  { %v1074_v26 = vpop.xlane.xlu0 %1073 }
 0x8a6   :  { %6017 = vpow2.f32 %v1083_v3  ;;  %v1078_v41 = vsub.f32 %v1062_v57, %v1074_v26 }
 0x8a7   :  { %6019 = vpow2.f32 %v1079_v40 }
 0x8a8   :  { %v1085_v55 = vmul.f32 1.442695, %v1078_v41 }
 0x8aa   :  { %6021 = vpow2.f32 %v1085_v55 }
 0x8ab   :  { %6023 = vpow2.f32 %v1081_v5 }
 0x8b3   :  { %v6018_v7 = vpop.eup %6017 }
 0x8b4   :  { %v1093_v8 = vsel %vm499_vm0, %v6018_v7, 0.0  ;;  %v6020_v9 = vpop.eup %6019 }
 0x8b5   :  { %1094 = vadd.xlane.f32.xlu0 %v1093_v8  ;;  %v1087_v13 = vsel %vm499_vm0, %v6020_v9, 0.0 }
 0x8b7   :  { %v6022_v12 = vpop.eup %6021 }
 0x8b8   :  { %v1096_v15 = vsel %vm499_vm0, %v6022_v12, 0.0  ;;  %v6024_v16 = vpop.eup %6023 }
 0x8b9   :  { %1088 = vadd.xlane.f32.xlu0 %v1087_v13  ;;  %1097 = vadd.xlane.f32.xlu1 %v1096_v15  ;;  %v1090_v17 = vsel %vm499_vm0, %v6024_v16, 0.0 }
 0x8bd   :  { %1091 = vadd.xlane.f32.xlu1 %v1090_v17  ;;  %v5765_v17 = vld [vmem:[#allocation6 + $0x28] sm:$0xff]  }
 0x8ce   :  { %1109 = vrot.lane.b32.xlu1 %v6662_v56, %s6404_s8 }
 0x8cf   :  { %1111 = vrot.lane.b32.xlu0 %v6655_v47, %s6404_s8 }
 0x8ee   :  { %1320 = vmax.xlane.f32.xlu0 %v1319_v22 }
 0x8f2   :  { %1323 = vmax.xlane.f32.xlu0 %v1322_v25  ;;  %1317 = vmax.xlane.f32.xlu1 %v1316_v27 }
 0x8f6   :  { %1326 = vmax.xlane.f32.xlu1 %v1325_v29 }
 0x93e   :  { %v1095_v30 = vpop.xlane.xlu0 %1094 }
 0x942   :  { %v1089_v31 = vpop.xlane.xlu0 %1088  ;;  %v1098_v32 = vpop.xlane.xlu1 %1097 }
 0x943   :  { %6025 = vrcp.f32 %v1098_v32 }
 0x944   :  { %6027 = vrcp.f32 %v1089_v31 }
 0x945   :  { %6029 = vrcp.f32 %v1095_v30 }
 0x946   :  { %v1112_v33 = vpop.permute.xlu0 %1111  ;;  %v1092_v34 = vpop.xlane.xlu1 %1091 }
 0x947   :  { %6031 = vrcp.f32 %v1092_v34  ;;  %5520 = vmatprep.subr.bf16.mxu1 %v1112_v33 }
 0x948   :  { %5521 = vmatpush3.bf16.msra.mxu1 %v1112_v33 }
 0x94a   :  { %v1110_v43 = vpop.permute.xlu1 %1109 }
 0x94b   :  { %5522 = vmatprep.subr.bf16.mxu1 %v1110_v43 }
 0x94c   :  { %5523 = vmatpush3.bf16.msra.mxu1 %v1110_v43 }
 0x94d   :  { %5528 = vmatprep.subr.bf16.mxu1 %v5765_v17 }
 0x950   :  { %v6026_v44 = vpop.eup %6025 }
 0x951   :  { %v6028_v45 = vpop.eup %6027  ;;  %v1106_v49 = vmul.f32 %v6026_v44, %v6022_v12 }
 0x952   :  { %v6030_v46 = vpop.eup %6029  ;;  %v1103_v50 = vmul.f32 %v6028_v45, %v6020_v9 }
 0x953   :  { %v1105_v52 = vmul.f32 %v6030_v46, %v6018_v7 }
 0x954   :  { %v6032_v48 = vpop.eup %6031 }
 0x955   :  { %v1104_v51 = vmul.f32 %v6032_v48, %v6024_v16  ;;  %v1108_v57 = vpack.c.bf16 %v1106_v49, %v1105_v52  ;;  %v5767_v52 = vld [vmem:[#allocation6 + $0x38] sm:$0xff]  }
 0x957   :  { %v1107_v53 = vpack.c.bf16 %v1104_v51, %v1103_v50 }
 0x959   :  { %5524 = vmatprep.mubr.msk.bf16.mxu1 %vm499_vm0, %v1107_v53  ;;  %v5768_v53 = vld [vmem:[#allocation6 + $0x30] sm:$0xff]  }
 0x95a   :  { %5525 = vmatmul.mubr.msk.bf16.vlgmr.msra.gmra.mxu1 %vm499_vm0, %v1108_v57  ;;  %v984_v57 = vadd.f32 %v5510_v11, %v6778_v35 }
 0x95b   :  { %5529 = vmatpush3.bf16.msra.mxu1 %v5765_v17 }
 0x95c   :  { %5530 = vmatprep.subr.bf16.mxu1 %v5766_v18 }
 0x95f   :  { %5531 = vmatpush3.bf16.msra.mxu1 %v5766_v18  ;;  %v4939_v18 = vld [vmem:[%s7488_s6] ss:$0 sm:$0xff] }
 0x977   :  { %v1321_v60 = vpop.xlane.xlu0 %1320 }
 0x978   :  { %v1329_v2 = vsub.f32 %v1313_v19, %v1321_v60  ;;  %v978_v19 = vpop.f32.mrf.mxu1 }
 0x97a   :  { %v1334_v41 = vmul.f32 1.442695, %v1329_v2 }
 0x97b   :  { %v1324_v61 = vpop.xlane.xlu0 %1323  ;;  %v1318_v62 = vpop.xlane.xlu1 %1317 }
 0x97c   :  { %v1330_v63 = vsub.f32 %v1314_v23, %v1324_v61  ;;  %v1328_v1 = vsub.f32 %v1312_v24, %v1318_v62  ;;  %v976_v61 = vadd.f32 %v975_v20, %v6780_v36  ;;  %v6274_v20 = vld [vmem:[%s7483_s1 + $0x18] sm:$0xff] }
 0x97e   :  { %v1336_v40 = vmul.f32 1.442695, %v1330_v63  ;;  %v1332_v3 = vmul.f32 1.442695, %v1328_v1  ;;  %v987_v1 = vadd.f32 %v5511_v21, %v6782_v37 }
 0x97f   :  { %v1327_v4 = vpop.xlane.xlu1 %1326 }
 0x980   :  { %6033 = vpow2.f32 %v1336_v40  ;;  %v1331_v26 = vsub.f32 %v1315_v28, %v1327_v4 }
 0x981   :  { %6035 = vpow2.f32 %v1332_v3  ;;  %v979_v3 = vadd.f32 %v978_v19, %v6784_v42  ;;  %v6273_v42 = vld [vmem:[%s7483_s1] sm:$0xff] }
 0x982   :  { %v1338_v5 = vmul.f32 1.442695, %v1331_v26 }
 0x984   :  { %6037 = vpow2.f32 %v1338_v5 }
 0x985   :  { %6039 = vpow2.f32 %v1334_v41 }
 0x98d   :  { %v6034_v55 = vpop.eup %6033 }
 0x98e   :  { %v1346_v7 = vsel %vm499_vm0, %v6034_v55, 0.0  ;;  %v6036_v8 = vpop.eup %6035 }
 0x98f   :  { %1347 = vadd.xlane.f32.xlu0 %v1346_v7  ;;  %v1340_v12 = vsel %vm499_vm0, %v6036_v8, 0.0 }
 0x991   :  { %v6038_v9 = vpop.eup %6037 }
 0x992   :  { %v1349_v13 = vsel %vm499_vm0, %v6038_v9, 0.0  ;;  %v6040_v15 = vpop.eup %6039 }
 0x993   :  { %1341 = vadd.xlane.f32.xlu0 %v1340_v12  ;;  %1350 = vadd.xlane.f32.xlu1 %v1349_v13  ;;  %v1343_v16 = vsel %vm499_vm0, %v6040_v15, 0.0 }
 0x997   :  { %1344 = vadd.xlane.f32.xlu1 %v1343_v16 }
 0x9a8   :  { %1362 = vrot.lane.b32.xlu1 %v6662_v56, %s6409_s29 }
 0x9a9   :  { %1364 = vrot.lane.b32.xlu0 %v6655_v47, %s6409_s29 }
 0xa18   :  { %v1348_v22 = vpop.xlane.xlu0 %1347 }
 0xa1a   :  { %v5526_v23 = vpop.f32.mrf.mxu1 }
 0xa1c   :  { %v1155_v24 = vpop.f32.mrf.mxu1  ;;  %v1342_v25 = vpop.xlane.xlu0 %1341 }
 0xa1d   :  { %v1351_v27 = vpop.xlane.xlu1 %1350 }
 0xa1e   :  { %v5527_v28 = vpop.f32.mrf.mxu1  ;;  %6041 = vrcp.f32 %v1351_v27 }
 0xa1f   :  { %6043 = vrcp.f32 %v1342_v25  ;;  %v1171_v32 = vpack.c.bf16 %v5527_v28, %v5526_v23  ;;  %v6275_v23 = vld [vmem:[%s7483_s1 + $0x8] sm:$0xff]  ;;  %v6276_v25 = vld [vmem:[%s7483_s1 + $0x10] sm:$0xff] }
 0xa20   :  { %v1158_v29 = vpop.f32.mrf.mxu1  ;;  %v1365_v30 = vpop.permute.xlu0 %1364  ;;  %6045 = vrcp.f32 %v1348_v22 }
 0xa21   :  { %v1170_v31 = vpack.c.bf16 %v1158_v29, %v1155_v24  ;;  %v1345_v56 = vpop.xlane.xlu1 %1344  ;;  %5544 = vmatprep.subr.bf16.mxu1 %v1365_v30 }
 0xa22   :  { %6047 = vrcp.f32 %v1345_v56  ;;  %v5771_v56 = vld [vmem:[#allocation7 + $0xe4] ss:$16 sps:$4 sm:$0xff]  }
 0xa23   :  { %5532 = vmatprep.mubr.msk.bf16.mxu1 %vm499_vm0, %v1170_v31  ;;  %v5769_v31 = vld [vmem:[#allocation7 + $0xe0] ss:$16 sps:$4 sm:$0xff]   ;;  %1788 = vmatprep.subr.bf16.mxu0 %v5771_v56 }
 0xa24   :  { %5533 = vmatmul.mubr.msk.bf16.vlgmr.msra.gmra.mxu1 %vm499_vm0, %v1171_v32  ;;  %v5772_v32 = vld [vmem:[#allocation7 + $0xe8] ss:$16 sps:$4 sm:$0xff]   ;;  %1789 = vmatpush1.bf16.msra.mxu0 %v5769_v31 }
 0xa25   :  { %5545 = vmatpush3.bf16.msra.mxu1 %v1365_v30  ;;  %v1363_v47 = vpop.permute.xlu1 %1362 }
 0xa26   :  { %5546 = vmatprep.subr.bf16.mxu1 %v1363_v47 }
 0xa29   :  { %5547 = vmatpush3.bf16.msra.mxu1 %v1363_v47  ;;  %v5774_v47 = vld [vmem:[#allocation7 + $0xec] ss:$16 sps:$4 sm:$0xff]  }
 0xa2a   :  { %5552 = vmatprep.subr.bf16.mxu1 %v5767_v52 }
 0xa2b   :  { %v6042_v33 = vpop.eup %6041 }
 0xa2c   :  { %v6044_v34 = vpop.eup %6043  ;;  %v1359_v45 = vmul.f32 %v6042_v33, %v6038_v9 }
 0xa2d   :  { %v6046_v43 = vpop.eup %6045  ;;  %v1356_v46 = vmul.f32 %v6044_v34, %v6036_v8 }
 0xa2e   :  { %v1358_v49 = vmul.f32 %v6046_v43, %v6034_v55 }
 0xa2f   :  { %v6048_v44 = vpop.eup %6047 }
 0xa30   :  { %v1357_v48 = vmul.f32 %v6048_v44, %v6040_v15  ;;  %v1361_v51 = vpack.c.bf16 %v1359_v45, %v1358_v49 }
 0xa32   :  { %v1360_v50 = vpack.c.bf16 %v1357_v48, %v1356_v46 }
 0xa34   :  { %5548 = vmatprep.mubr.msk.bf16.mxu1 %vm499_vm0, %v1360_v50 }
 0xa35   :  { %5549 = vmatmul.mubr.msk.bf16.vlgmr.msra.gmra.mxu1 %vm499_vm0, %v1361_v51 }
 0xa36   :  { %5553 = vmatpush3.bf16.msra.mxu1 %v5767_v52 }
 0xa37   :  { %5554 = vmatprep.subr.bf16.mxu1 %v5768_v53 }
 0xa3a   :  { %5555 = vmatpush3.bf16.msra.mxu1 %v5768_v53 }
 0xa3b   :  { %1841 = vmatprep.subr.bf16.mxu1 %v5774_v47 }
 0xae4   :  { %v5534_v60 = vpop.f32.mrf.mxu1 }
 0xae5   :  { %v1241_v62 = vadd.f32 %v5534_v60, %v984_v57 }
 0xae6   :  { %v1224_v63 = vpop.f32.mrf.mxu1 }
 0xae7   :  { %v1239_v2 = vadd.f32 %v1224_v63, %v976_v61  ;;  %v5777_v63 = vld [vmem:[#allocation7 + $0xc4] ss:$16 sps:$4 sm:$0xff]  }
 0xae8   :  { %v5535_v40 = vpop.f32.mrf.mxu1  ;;  %1790 = vmatprep.subr.bf16.mxu0 %v5777_v63 }
 0xae9   :  { %v1242_v4 = vadd.f32 %v5535_v40, %v987_v1  ;;  %v5780_v1 = vld [vmem:[#allocation7 + $0xcc] ss:$16 sps:$4 sm:$0xff]   ;;  %v5778_v40 = vld [vmem:[#allocation7 + $0xc8] ss:$16 sps:$4 sm:$0xff]  }
 0xaea   :  { %v1227_v26 = vpop.f32.mrf.mxu1 }
 0xaeb   :  { %v1240_v41 = vadd.f32 %v1227_v26, %v979_v3  ;;  %v5783_v3 = vld [vmem:[#allocation7 + $0xa4] ss:$16 sps:$4 sm:$0xff]   ;;  %v5781_v26 = vld [vmem:[#allocation7 + $0xa0] ss:$16 sps:$4 sm:$0xff]  }
 0xaf5   :  { %v5550_v5 = vpop.f32.mrf.mxu1 }
 0xaf7   :  { %v1408_v55 = vpop.f32.mrf.mxu1 }
 0xaf9   :  { %v5551_v7 = vpop.f32.mrf.mxu1 }
 0xafa   :  { %v1424_v35 = vpack.c.bf16 %v5551_v7, %v5550_v5  ;;  %v5789_v5 = vld [vmem:[#allocation7 + $0x84] ss:$16 sps:$4 sm:$0xff]   ;;  %v5787_v7 = vld [vmem:[#allocation7 + $0x80] ss:$16 sps:$4 sm:$0xff]  }
 0xafb   :  { %v1411_v8 = vpop.f32.mrf.mxu1 }
 0xafc   :  { %v1423_v9 = vpack.c.bf16 %v1411_v8, %v1408_v55  ;;  %v5792_v55 = vld [vmem:[#allocation7 + $0x8c] ss:$16 sps:$4 sm:$0xff]   ;;  %v5790_v8 = vld [vmem:[#allocation7 + $0x88] ss:$16 sps:$4 sm:$0xff]  }
 0xafe   :  { %5556 = vmatprep.mubr.msk.bf16.mxu1 %vm499_vm0, %v1423_v9  ;;  %v5793_v9 = vld [vmem:[#allocation7 + $0x60] ss:$16 sps:$4 sm:$0xff]  }
 0xaff   :  { %5557 = vmatmul.mubr.msk.bf16.vlgmr.msra.gmra.mxu1 %vm499_vm0, %v1424_v35  ;;  %v5795_v35 = vld [vmem:[#allocation7 + $0x64] ss:$16 sps:$4 sm:$0xff]  }
 0xb00   :  { %1873 = vmatprep.mubr.bf16.mxu1 %v6407_v39  ;;  %1842 = vmatpush1.bf16.msra.mxu1 %v5772_v32 }
 0xb01   :  { %1843 = vmatprep.subr.bf16.mxu1 %v5780_v1 }
 0xb04   :  { %1844 = vmatpush1.bf16.msra.mxu1 %v5778_v40 }
 0xbbf   :  { %v5558_v36 = vpop.f32.mrf.mxu1 }
 0xbc0   :  { %v1494_v11 = vadd.f32 %v5558_v36, %v1241_v62  ;;  %v5796_v36 = vld [vmem:[#allocation7 + $0x68] ss:$16 sps:$4 sm:$0xff]  }
 0xbc1   :  { %v1477_v37 = vpop.f32.mrf.mxu1 }
 0xbc2   :  { %v1492_v12 = vadd.f32 %v1477_v37, %v1239_v2  ;;  %v1498_v27 = vadd.f32 %v6276_v25, %v1494_v11  ;;  %v5775_v2 = vld [vmem:[#allocation7 + $0xc0] ss:$16 sps:$4 sm:$0xff]   ;;  %v5798_v37 = vld [vmem:[#allocation7 + $0x6c] ss:$16 sps:$4 sm:$0xff]   ;;  %v5808_v11 = vld [vmem:[#allocation7 + $0x28] ss:$16 sps:$4 sm:$0xff]  }
 0xbc3   :  { %v5559_v13 = vpop.f32.mrf.mxu1  ;;  %1791 = vmatpush1.bf16.msra.mxu0 %v5775_v2 }
 0xbc4   :  { %v1496_v15 = vadd.f32 %v6273_v42, %v1492_v12  ;;  %v1495_v16 = vadd.f32 %v5559_v13, %v1242_v4  ;;  %v6863_v30 = vadd.f32 %v4939_v18, %v1498_v27  ;;  %v5786_v4 = vld [vmem:[#allocation7 + $0xac] ss:$16 sps:$4 sm:$0xff]   ;;  %1792 = vmatprep.subr.bf16.mxu0 %v5783_v3  ;;  %v5801_v12 = vld [vmem:[#allocation7 + $0x44] ss:$16 sps:$4 sm:$0xff]   ;;  %v5799_v42 = vld [vmem:[#allocation7 + $0x40] ss:$16 sps:$4 sm:$0xff]  }
 0xbc5   :  { %v1480_v17 = vpop.f32.mrf.mxu1  ;;  %1845 = vmatprep.subr.bf16.mxu1 %v5786_v4  ;;  %v5804_v13 = vld [vmem:[#allocation7 + $0x4c] ss:$16 sps:$4 sm:$0xff]  }
 0xbc6   :  { %v1499_v21 = vadd.f32 %v6274_v20, %v1495_v16  ;;  %v1493_v19 = vadd.f32 %v1480_v17, %v1240_v41  ;;  %v6848_v22 = vadd.f32 %v4939_v18, %v1496_v15  ;;  %v5784_v41 = vld [vmem:[#allocation7 + $0xa8] ss:$16 sps:$4 sm:$0xff]   ;;  %v5807_v16 = vld [vmem:[#allocation7 + $0x24] ss:$16 sps:$4 sm:$0xff]   ;;  %v5810_v17 = vld [vmem:[#allocation7 + $0x2c] ss:$16 sps:$4 sm:$0xff]  }
 0xbc7   :  { %1793 = vmatpush1.bf16.msra.mxu0 %v5781_v26  ;;  %1846 = vmatpush1.bf16.msra.mxu1 %v5784_v41  ;;  %v5802_v15 = vld [vmem:[#allocation7 + $0x48] ss:$16 sps:$4 sm:$0xff]   ;;  %v5813_v20 = vld [vmem:[#allocation7 + $0x4] ss:$16 sps:$4 sm:$0xff]  }
 0xbc8   :  { %v1497_v24 = vadd.f32 %v6275_v23, %v1493_v19  ;;  %1512 = vadd.xlane.f32.xlu1 %v6848_v22  ;;  %v6857_v28 = vadd.f32 %v4939_v18, %v1499_v21  ;;  %1794 = vmatprep.subr.bf16.mxu0 %v5789_v5  ;;  %v5816_v21 = vld [vmem:[#allocation7 + $0xc] ss:$16 sps:$4 sm:$0xff]   ;;  %v5811_v19 = vld [vmem:[#allocation7] ss:$16 sps:$4 sm:$0xff]   ;;  %v5814_v23 = vld [vmem:[#allocation7 + $0x8] ss:$16 sps:$4 sm:$0xff]  }
 0xbc9   :  { %1847 = vmatprep.subr.bf16.mxu1 %v5792_v55 }
 0xbca   :  { %v6859_v29 = vadd.f32 %v4939_v18, %v1497_v24  ;;  %v5805_v18 = vld [vmem:[#allocation7 + $0x20] ss:$16 sps:$4 sm:$0xff]  }
 0xbcb   :  { %1795 = vmatpush1.bf16.msra.mxu0 %v5787_v7  ;;  %1848 = vmatpush1.bf16.msra.mxu1 %v5790_v8 }
 0xbcc   :  { %1518 = vadd.xlane.f32.xlu1 %v6857_v28  ;;  %1514 = vadd.xlane.f32.xlu0 %v6859_v29 }
 0xbcd   :  { %1796 = vmatprep.subr.bf16.mxu0 %v5795_v35  ;;  %1849 = vmatprep.subr.bf16.mxu1 %v5798_v37  ;;  %v5818_v35 = vld [vmem:[#allocation9 + $0xf8] sm:$0xff]   ;;  %v5822_v37 = vld [vmem:[#allocation9 + $0xf0] sm:$0xff]  }
 0xbcf   :  { %1797 = vmatpush1.bf16.msra.mxu0 %v5793_v9  ;;  %1850 = vmatpush1.bf16.msra.mxu1 %v5796_v36  ;;  %v5817_v9 = vld [vmem:[#allocation9 + $0x78] sm:$0xff]  }
 0xbd0   :  { %1516 = vadd.xlane.f32.xlu0 %v6863_v30  ;;  %1798 = vmatprep.subr.bf16.mxu0 %v5801_v12  ;;  %v5819_v36 = vld [vmem:[#allocation9 + $0x38] sm:$0xff]   ;;  %v5823_v12 = vld [vmem:[#allocation9 + $0x30] sm:$0xff]  }
 0xbd1   :  { %1851 = vmatprep.subr.bf16.mxu1 %v5804_v13  ;;  %v5824_v13 = vld [vmem:[#allocation9 + $0xb0] sm:$0xff]  }
 0xbd3   :  { %1799 = vmatpush1.bf16.msra.mxu0 %v5799_v42  ;;  %1852 = vmatpush1.bf16.msra.mxu1 %v5802_v15  ;;  %v5825_v42 = vld [vmem:[#allocation9 + $0x68] sm:$0xff]  }
 0xbd4   :  { %1800 = vmatprep.subr.bf16.mxu0 %v5807_v16  ;;  %1853 = vmatprep.subr.bf16.mxu1 %v5810_v17  ;;  %v5826_v15 = vld [vmem:[#allocation9 + $0xe8] sm:$0xff]  }
 0xbd5   :  { %v5827_v16 = vld [vmem:[#allocation9 + $0x28] sm:$0xff]  }
 0xbd6   :  { %v5828_v17 = vld [vmem:[#allocation9 + $0xa8] sm:$0xff]  }
 0xbd7   :  { %1801 = vmatpush1.bf16.msra.mxu0 %v5805_v18  ;;  %1854 = vmatpush1.bf16.msra.mxu1 %v5808_v11  ;;  %v5829_v18 = vld [vmem:[#allocation9 + $0x60] sm:$0xff]  }
 0xbd8   :  { %1802 = vmatprep.subr.bf16.mxu0 %v5813_v20  ;;  %1855 = vmatprep.subr.bf16.mxu1 %v5816_v21  ;;  %v5830_v11 = vld [vmem:[#allocation9 + $0xe0] sm:$0xff]  }
 0xbd9   :  { %v5831_v20 = vld [vmem:[#allocation9 + $0x20] sm:$0xff]  }
 0xbda   :  { %v5832_v21 = vld [vmem:[#allocation9 + $0xa0] sm:$0xff]  }
 0xbdb   :  { %1803 = vmatpush1.bf16.msra.mxu0 %v5811_v19  ;;  %1856 = vmatpush1.bf16.msra.mxu1 %v5814_v23  ;;  %v5833_v19 = vld [vmem:[#allocation9 + $0x58] sm:$0xff]  }
 0xbdc   :  { %5265 = vmatprep.subr.bf16.mxu0 %v5817_v9  ;;  %5293 = vmatprep.subr.bf16.mxu1 %v5818_v35  ;;  %v5834_v23 = vld [vmem:[#allocation9 + $0xd8] sm:$0xff]  }
 0xc51   :  { %v1513_v33 = vpop.xlane.xlu1 %1512 }
 0xc52   :  { %v1520_v34 = vmul.f32 0.0078125, %v1513_v33 }
 0xc54   :  { %v6867_v43 = vsub.f32 %v6848_v22, %v1520_v34 }
 0xc55   :  { %v1519_v44 = vpop.xlane.xlu1 %1518  ;;  %v1515_v45 = vpop.xlane.xlu0 %1514 }
 0xc56   :  { %v1523_v46 = vmul.f32 0.0078125, %v1519_v44  ;;  %v1521_v48 = vmul.f32 0.0078125, %v1515_v45  ;;  %v1528_v49 = vmul.f32 %v6867_v43, %v6867_v43 }
 0xc58   :  { %v6872_v50 = vsub.f32 %v6859_v29, %v1521_v48  ;;  %1532 = vadd.xlane.f32.xlu0 %v1528_v49  ;;  %v6875_v52 = vsub.f32 %v6857_v28, %v1523_v46  ;;  %v1511_v48 = vld [vmem:[%s7489_s7] sm:$0x3] }
 0xc59   :  { %v1517_v51 = vpop.xlane.xlu0 %1516  ;;  %v1567_v63 = vrot.slane %v1511_v48, %v6625_v0 }
 0xc5a   :  { %v1522_v53 = vmul.f32 0.0078125, %v1517_v51  ;;  %v1529_v57 = vmul.f32 %v6872_v50, %v6872_v50  ;;  %v1531_v61 = vmul.f32 %v6875_v52, %v6875_v52 }
 0xc5c   :  { %v6880_v60 = vsub.f32 %v6863_v30, %v1522_v53  ;;  %1534 = vadd.xlane.f32.xlu1 %v1529_v57  ;;  %v1559_v53 = vrot.slane %v1511_v48, %v6617_v59  ;;  %v5847_v48 = vld [vmem:[#allocation9] sm:$0xff]  }
 0xc5e   :  { %v1530_v62 = vmul.f32 %v6880_v60, %v6880_v60 }
 0xc60   :  { %1538 = vadd.xlane.f32.xlu1 %v1531_v61  ;;  %1536 = vadd.xlane.f32.xlu0 %v1530_v62 }
 0xce1   :  { %v1533_v24 = vpop.xlane.xlu0 %1532 }
 0xce2   :  { %v1540_v25 = vmul.f32 0.0078125, %v1533_v24  ;;  %v5835_v24 = vld [vmem:[#allocation9 + $0x18] sm:$0xff]  }
 0xce4   :  { %v1544_v27 = vadd.f32 1e-05, %v1540_v25  ;;  %v5836_v25 = vld [vmem:[#allocation9 + $0x98] sm:$0xff]  }
 0xce5   :  { %v1535_v31 = vpop.xlane.xlu1 %1534 }
 0xce6   :  { %6049 = vrsqrt.f32 %v1544_v27  ;;  %v1541_v56 = vmul.f32 0.0078125, %v1535_v31  ;;  %v5837_v27 = vld [vmem:[#allocation9 + $0x50] sm:$0xff]  }
 0xce7   :  { %v5838_v31 = vld [vmem:[#allocation9 + $0xd0] sm:$0xff]  }
 0xce8   :  { %v1545_v32 = vadd.f32 1e-05, %v1541_v56  ;;  %v5839_v56 = vld [vmem:[#allocation9 + $0x10] sm:$0xff]  }
 0xce9   :  { %v1539_v47 = vpop.xlane.xlu1 %1538  ;;  %v1537_v33 = vpop.xlane.xlu0 %1536 }
 0xcea   :  { %6051 = vrsqrt.f32 %v1545_v32  ;;  %v1543_v34 = vmul.f32 0.0078125, %v1539_v47  ;;  %v1542_v44 = vmul.f32 0.0078125, %v1537_v33  ;;  %v5840_v32 = vld [vmem:[#allocation9 + $0x90] sm:$0xff]   ;;  %v5841_v47 = vld [vmem:[#allocation9 + $0x48] sm:$0xff]  }
 0xceb   :  { %v5842_v33 = vld [vmem:[#allocation9 + $0xc8] sm:$0xff]  }
 0xcec   :  { %v1547_v45 = vadd.f32 1e-05, %v1543_v34  ;;  %v1546_v46 = vadd.f32 1e-05, %v1542_v44  ;;  %v5843_v34 = vld [vmem:[#allocation9 + $0x8] sm:$0xff]  }
 0xced   :  { %v5844_v44 = vld [vmem:[#allocation9 + $0x88] sm:$0xff]  }
 0xcee   :  { %6053 = vrsqrt.f32 %v1547_v45  ;;  %v5845_v45 = vld [vmem:[#allocation9 + $0x40] sm:$0xff]  }
 0xcef   :  { %6055 = vrsqrt.f32 %v1546_v46  ;;  %v5846_v46 = vld [vmem:[#allocation9 + $0xc0] sm:$0xff]  }
 0xcf3   :  { %v6050_v49 = vpop.eup %6049 }
 0xcf4   :  { %v1552_v51 = vmul.f32 %v6050_v49, %v6867_v43  ;;  %v5848_v49 = vld [vmem:[#allocation9 + $0x80] sm:$0xff]  }
 0xcf6   :  { %v1560_v62 = vmul.f32 %v1559_v53, %v1552_v51  ;;  %v1606_v51 = vld [vmem:[%s7491_s9] sm:$0xf] }
 0xcf7   :  { %v6052_v57 = vpop.eup %6051 }
 0xcf8   :  { %v1553_v61 = vmul.f32 %v6052_v57, %v6872_v50  ;;  %v1568_v3 = vadd.f32 %v1567_v63, %v1560_v62  ;;  %v1611_v57 = vrot.slane %v1606_v51, %v6617_v59  ;;  %v6904_v62 = vrot.slane %v1606_v51, %v6625_v0 }
 0xcfa   :  { %v1561_v1 = vmul.f32 %v1559_v53, %v1553_v61  ;;  %v1619_v61 = vrot.slane %v1606_v51, %v6642_v38 }
 0xcfb   :  { %v6054_v2 = vpop.eup %6053 }
 0xcfc   :  { %v6056_v40 = vpop.eup %6055  ;;  %v1569_v4 = vadd.f32 %v1567_v63, %v1561_v1  ;;  %v1555_v26 = vmul.f32 %v6054_v2, %v6875_v52  ;;  %v5820_v52 = vld [vmem:[#allocation9 + $0xb8] sm:$0xff]  }
 0xcfd   :  { %v1554_v41 = vmul.f32 %v6056_v40, %v6880_v60  ;;  %v5821_v60 = vld [vmem:[#allocation9 + $0x70] sm:$0xff]  }
 0xcfe   :  { %v1572_v5 = vpack.c.bf16 %v1569_v4, %v1568_v3  ;;  %v1563_v55 = vmul.f32 %v1559_v53, %v1555_v26 }
 0xcff   :  { %v1562_v43 = vmul.f32 %v1559_v53, %v1554_v41  ;;  %v1622_v53 = vsub.s32 3, %v6614_v58 }
 0xd00   :  { %1821 = vmatmul.mubr.bf16.vlgmr.msra.gmra.mxu0 %v1572_v5  ;;  %1874 = vmatmul.mubr.bf16.vlgmr.msra.gmra.mxu1 %v1572_v5  ;;  %v1571_v7 = vadd.f32 %v1567_v63, %v1563_v55 }
 0xd01   :  { %1830 = vmatprep.mubr.bf16.mxu0 %v6407_v39  ;;  %1883 = vmatprep.mubr.bf16.mxu1 %v6407_v39  ;;  %v1570_v50 = vadd.f32 %v1567_v63, %v1562_v43  ;;  %v6908_v63 = vrot.slane %v1606_v51, %v1622_v53 }
 0xd02   :  { %5266 = vmatpush3.bf16.msra.mxu0 %v5819_v36  ;;  %5294 = vmatpush3.bf16.msra.mxu1 %v5820_v52 }
 0xd03   :  { %v1573_v8 = vpack.c.bf16 %v1571_v7, %v1570_v50  ;;  %5267 = vmatprep.subr.bf16.mxu0 %v5821_v60  ;;  %5295 = vmatprep.subr.bf16.mxu1 %v5822_v37 }
 0xd06   :  { %5268 = vmatpush3.bf16.msra.mxu0 %v5823_v12  ;;  %5296 = vmatpush3.bf16.msra.mxu1 %v5824_v13 }
 0xd07   :  { %5269 = vmatprep.subr.bf16.mxu0 %v5825_v42  ;;  %5297 = vmatprep.subr.bf16.mxu1 %v5826_v15 }
 0xd08   :  { %1831 = vmatmul.mubr.bf16.gmra.mxu0 %v1573_v8  ;;  %1884 = vmatmul.mubr.bf16.gmra.mxu1 %v1573_v8 }
 0xd0a   :  { %5270 = vmatpush3.bf16.msra.mxu0 %v5827_v16  ;;  %5298 = vmatpush3.bf16.msra.mxu1 %v5828_v17 }
 0xd0b   :  { %5271 = vmatprep.subr.bf16.mxu0 %v5829_v18  ;;  %5299 = vmatprep.subr.bf16.mxu1 %v5830_v11 }
 0xd0e   :  { %5272 = vmatpush3.bf16.msra.mxu0 %v5831_v20  ;;  %5300 = vmatpush3.bf16.msra.mxu1 %v5832_v21 }
 0xd0f   :  { %5273 = vmatprep.subr.bf16.mxu0 %v5833_v19  ;;  %5301 = vmatprep.subr.bf16.mxu1 %v5834_v23 }
 0xd12   :  { %5274 = vmatpush3.bf16.msra.mxu0 %v5835_v24  ;;  %5302 = vmatpush3.bf16.msra.mxu1 %v5836_v25 }
 0xd13   :  { %5275 = vmatprep.subr.bf16.mxu0 %v5837_v27  ;;  %5303 = vmatprep.subr.bf16.mxu1 %v5838_v31 }
 0xd16   :  { %5276 = vmatpush3.bf16.msra.mxu0 %v5839_v56  ;;  %5304 = vmatpush3.bf16.msra.mxu1 %v5840_v32 }
 0xd17   :  { %5277 = vmatprep.subr.bf16.mxu0 %v5841_v47  ;;  %5305 = vmatprep.subr.bf16.mxu1 %v5842_v33 }
 0xd1a   :  { %5278 = vmatpush3.bf16.msra.mxu0 %v5843_v34  ;;  %5306 = vmatpush3.bf16.msra.mxu1 %v5844_v44 }
 0xd1b   :  { %5279 = vmatprep.subr.bf16.mxu0 %v5845_v45  ;;  %5307 = vmatprep.subr.bf16.mxu1 %v5846_v46 }
 0xd1e   :  { %5280 = vmatpush3.bf16.msra.mxu0 %v5847_v48  ;;  %5308 = vmatpush3.bf16.msra.mxu1 %v5848_v49 }
 0xdc0   :  { %v1822_v1 = vpop.f32.mrf.mxu0  ;;  %v1875_v2 = vpop.f32.mrf.mxu1 }
 0xdc1   :  { %v6910_v40 = vadd.f32 %v1822_v1, %v1611_v57  ;;  %v6912_v3 = vadd.f32 %v1875_v2, %v1619_v61 }
 0xdc2   :  { %v1824_v4 = vpop.f32.mrf.mxu0  ;;  %v1877_v26 = vpop.f32.mrf.mxu1 }
 0xdc3   :  { %v4972_v41 = vmul.f32 -1.702, %v6910_v40  ;;  %v4974_v5 = vmul.f32 -1.702, %v6912_v3  ;;  %v6917_v55 = vadd.f32 %v1824_v4, %v6904_v62  ;;  %v6920_v43 = vadd.f32 %v1877_v26, %v6908_v63 }
 0xdc4   :  { %v1826_v50 = vpop.f32.mrf.mxu0  ;;  %v1879_v7 = vpop.f32.mrf.mxu1 }
 0xdc5   :  { %v1926_v8 = vmul.f32 1.442695, %v4972_v41  ;;  %v1930_v9 = vmul.f32 1.442695, %v4974_v5  ;;  %v4973_v35 = vmul.f32 -1.702, %v6917_v55  ;;  %v6923_v36 = vadd.f32 %v1826_v50, %v1611_v57 }
 0xdc6   :  { %v4975_v52 = vmul.f32 -1.702, %v6920_v43  ;;  %v6926_v60 = vadd.f32 %v1879_v7, %v1619_v61  ;;  %v1828_v37 = vpop.f32.mrf.mxu0  ;;  %v1881_v12 = vpop.f32.mrf.mxu1 }
 0xdc7   :  { %6057 = vpow2.f32 %v1926_v8  ;;  %v1928_v13 = vmul.f32 1.442695, %v4973_v35  ;;  %v4976_v42 = vmul.f32 -1.702, %v6923_v36  ;;  %v6930_v15 = vadd.f32 %v1828_v37, %v6904_v62 }
 0xdc8   :  { %6059 = vpow2.f32 %v1930_v9  ;;  %v1932_v16 = vmul.f32 1.442695, %v4975_v52  ;;  %v4978_v17 = vmul.f32 -1.702, %v6926_v60  ;;  %v6934_v18 = vadd.f32 %v1881_v12, %v6908_v63  ;;  %v1832_v11 = vpop.f32.mrf.mxu0  ;;  %v1885_v20 = vpop.f32.mrf.mxu1 }
 0xdc9   :  { %6061 = vpow2.f32 %v1928_v13  ;;  %v1934_v21 = vmul.f32 1.442695, %v4976_v42  ;;  %v4977_v19 = vmul.f32 -1.702, %v6930_v15  ;;  %v6937_v23 = vadd.f32 %v1832_v11, %v1611_v57 }
 0xdca   :  { %6063 = vpow2.f32 %v1932_v16  ;;  %v1938_v24 = vmul.f32 1.442695, %v4978_v17  ;;  %v4979_v25 = vmul.f32 -1.702, %v6934_v18  ;;  %v6940_v27 = vadd.f32 %v1885_v20, %v1619_v61  ;;  %v1834_v31 = vpop.f32.mrf.mxu0  ;;  %v1887_v56 = vpop.f32.mrf.mxu1 }
 0xdcb   :  { %6065 = vpow2.f32 %v1934_v21  ;;  %v1936_v32 = vmul.f32 1.442695, %v4977_v19  ;;  %v4980_v47 = vmul.f32 -1.702, %v6937_v23  ;;  %v6944_v33 = vadd.f32 %v1834_v31, %v6904_v62 }
 0xdcc   :  { %6067 = vpow2.f32 %v1938_v24  ;;  %v1940_v34 = vmul.f32 1.442695, %v4979_v25  ;;  %v4982_v44 = vmul.f32 -1.702, %v6940_v27  ;;  %v6948_v45 = vadd.f32 %v1887_v56, %v6908_v63  ;;  %v1836_v46 = vpop.f32.mrf.mxu0  ;;  %v1889_v48 = vpop.f32.mrf.mxu1 }
 0xdcd   :  { %6069 = vpow2.f32 %v1936_v32  ;;  %v1942_v49 = vmul.f32 1.442695, %v4980_v47  ;;  %v4981_v51 = vmul.f32 -1.702, %v6944_v33  ;;  %v6951_v1 = vadd.f32 %v1836_v46, %v1611_v57 }
 0xdce   :  { %6071 = vpow2.f32 %v1940_v34  ;;  %v1946_v2 = vmul.f32 1.442695, %v4982_v44  ;;  %v4983_v4 = vmul.f32 -1.702, %v6948_v45  ;;  %v6954_v26 = vadd.f32 %v1889_v48, %v1619_v61  ;;  %v1838_v41 = vpop.f32.mrf.mxu0  ;;  %v1891_v5 = vpop.f32.mrf.mxu1 }
 0xdcf   :  { %6073 = vpow2.f32 %v1942_v49  ;;  %v1944_v50 = vmul.f32 1.442695, %v4981_v51  ;;  %v4984_v7 = vmul.f32 -1.702, %v6951_v1  ;;  %v6958_v8 = vadd.f32 %v1838_v41, %v6904_v62 }
 0xdd0   :  { %6075 = vpow2.f32 %v1946_v2  ;;  %v1948_v9 = vmul.f32 1.442695, %v4983_v4  ;;  %v4986_v57 = vmul.f32 -1.702, %v6954_v26  ;;  %v6962_v35 = vadd.f32 %v1891_v5, %v6908_v63 }
 0xdd1   :  { %6077 = vpow2.f32 %v1944_v50  ;;  %v1950_v52 = vmul.f32 1.442695, %v4984_v7  ;;  %v4985_v61 = vmul.f32 -1.702, %v6958_v8 }
 0xdd2   :  { %6079 = vpow2.f32 %v1948_v9  ;;  %v1954_v37 = vmul.f32 1.442695, %v4986_v57  ;;  %v4987_v12 = vmul.f32 -1.702, %v6962_v35 }
 0xdd3   :  { %6081 = vpow2.f32 %v1950_v52  ;;  %v1952_v13 = vmul.f32 1.442695, %v4985_v61 }
 0xdd4   :  { %v6058_v42 = vpop.eup %6057  ;;  %6083 = vpow2.f32 %v1954_v37  ;;  %v1956_v62 = vmul.f32 1.442695, %v4987_v12 }
 0xdd5   :  { %v6060_v16 = vpop.eup %6059  ;;  %v1958_v17 = vadd.f32 1.0, %v6058_v42  ;;  %6085 = vpow2.f32 %v1952_v13 }
 0xdd6   :  { %v6062_v11 = vpop.eup %6061  ;;  %v1960_v20 = vadd.f32 1.0, %v6060_v16  ;;  %6087 = vpow2.f32 %v1956_v62 }
 0xdd7   :  { %v6064_v63 = vpop.eup %6063  ;;  %6089 = vrcp.f32 %v1958_v17  ;;  %v1959_v21 = vadd.f32 1.0, %v6062_v11 }
 0xdd8   :  { %v6066_v19 = vpop.eup %6065  ;;  %6091 = vrcp.f32 %v1960_v20  ;;  %v1961_v24 = vadd.f32 1.0, %v6064_v63 }
 0xdd9   :  { %v6068_v25 = vpop.eup %6067  ;;  %6093 = vrcp.f32 %v1959_v21  ;;  %v1962_v31 = vadd.f32 1.0, %v6066_v19 }
 0xdda   :  { %v6070_v56 = vpop.eup %6069  ;;  %6095 = vrcp.f32 %v1961_v24  ;;  %v1964_v32 = vadd.f32 1.0, %v6068_v25 }
 0xddb   :  { %v6072_v47 = vpop.eup %6071  ;;  %6097 = vrcp.f32 %v1962_v31  ;;  %v1963_v34 = vadd.f32 1.0, %v6070_v56 }
 0xddc   :  { %v6074_v44 = vpop.eup %6073  ;;  %6099 = vrcp.f32 %v1964_v32  ;;  %v1965_v46 = vadd.f32 1.0, %v6072_v47 }
 0xddd   :  { %v6076_v48 = vpop.eup %6075  ;;  %6101 = vrcp.f32 %v1963_v34  ;;  %v1966_v49 = vadd.f32 1.0, %v6074_v44 }
 0xdde   :  { %v6078_v51 = vpop.eup %6077  ;;  %6103 = vrcp.f32 %v1965_v46  ;;  %v1968_v2 = vadd.f32 1.0, %v6076_v48 }
 0xddf   :  { %v6080_v4 = vpop.eup %6079  ;;  %6105 = vrcp.f32 %v1966_v49  ;;  %v1967_v41 = vadd.f32 1.0, %v6078_v51 }
 0xde0   :  { %v6082_v5 = vpop.eup %6081  ;;  %6107 = vrcp.f32 %v1968_v2  ;;  %v1969_v50 = vadd.f32 1.0, %v6080_v4 }
 0xde1   :  { %v6084_v7 = vpop.eup %6083  ;;  %6109 = vrcp.f32 %v1967_v41  ;;  %v1970_v9 = vadd.f32 1.0, %v6082_v5 }
 0xde2   :  { %v6086_v57 = vpop.eup %6085  ;;  %6111 = vrcp.f32 %v1969_v50  ;;  %v1972_v52 = vadd.f32 1.0, %v6084_v7 }
 0xde3   :  { %v6088_v61 = vpop.eup %6087  ;;  %6113 = vrcp.f32 %v1970_v9  ;;  %v1971_v37 = vadd.f32 1.0, %v6086_v57 }
 0xde4   :  { %v6090_v12 = vpop.eup %6089  ;;  %6115 = vrcp.f32 %v1972_v52  ;;  %v1973_v13 = vadd.f32 1.0, %v6088_v61 }
 0xde5   :  { %v6092_v42 = vpop.eup %6091  ;;  %6117 = vrcp.f32 %v1971_v37  ;;  %v2006_v56 = vmul.f32 %v6090_v12, %v6910_v40 }
 0xde6   :  { %v6094_v62 = vpop.eup %6093  ;;  %6119 = vrcp.f32 %v1973_v13  ;;  %v2008_v44 = vmul.f32 %v6092_v42, %v6912_v3 }
 0xde7   :  { %v6096_v16 = vpop.eup %6095  ;;  %v2007_v19 = vmul.f32 %v6094_v62, %v6917_v55 }
 0xde8   :  { %v6098_v17 = vpop.eup %6097  ;;  %v2009_v32 = vmul.f32 %v6096_v16, %v6920_v43 }
 0xde9   :  { %v6100_v11 = vpop.eup %6099  ;;  %v2010_v63 = vmul.f32 %v6098_v17, %v6923_v36 }
 0xdea   :  { %v6102_v20 = vpop.eup %6101  ;;  %v2012_v24 = vmul.f32 %v6100_v11, %v6926_v60 }
 0xdeb   :  { %v6104_v21 = vpop.eup %6103  ;;  %v2011_v25 = vmul.f32 %v6102_v20, %v6930_v15  ;;  %v2022_v36 = vpack.c.bf16 %v2010_v63, %v2006_v56 }
 0xdec   :  { %v6106_v31 = vpop.eup %6105  ;;  %v2013_v47 = vmul.f32 %v6104_v21, %v6934_v18  ;;  %v2024_v55 = vpack.c.bf16 %v2012_v24, %v2008_v44 }
 0xded   :  { %v6108_v34 = vpop.eup %6107  ;;  %v2023_v46 = vpack.c.bf16 %v2011_v25, %v2007_v19  ;;  %v2014_v41 = vmul.f32 %v6106_v31, %v6937_v23  ;;  %v4988_v23 = vld [vmem:[%s7493_s11] ss:$0 sm:$0xff] }
 0xdee   :  { %v6110_v48 = vpop.eup %6109  ;;  %v2025_v49 = vpack.c.bf16 %v2013_v47, %v2009_v32  ;;  %v2016_v7 = vmul.f32 %v6108_v34, %v6940_v27 }
 0xdef   :  { %v6112_v51 = vpop.eup %6111  ;;  %2325 = vmatprep.mubr.bf16.mxu0 %v2023_v46  ;;  %v2015_v18 = vmul.f32 %v6110_v48, %v6944_v33 }
 0xdf0   :  { %v6114_v60 = vpop.eup %6113  ;;  %2374 = vmatprep.mubr.bf16.mxu1 %v2025_v49  ;;  %2326 = vmatmul.mubr.bf16.vlgmr.msra.gmra.mxu0 %v2022_v36  ;;  %v2017_v5 = vmul.f32 %v6112_v51, %v6948_v45 }
 0xdf1   :  { %v6116_v15 = vpop.eup %6115  ;;  %2375 = vmatmul.mubr.bf16.vlgmr.msra.gmra.mxu1 %v2024_v55  ;;  %v2018_v43 = vmul.f32 %v6114_v60, %v6951_v1 }
 0xdf2   :  { %v6118_v40 = vpop.eup %6117  ;;  %v2020_v3 = vmul.f32 %v6116_v15, %v6954_v26 }
 0xdf3   :  { %v6120_v2 = vpop.eup %6119  ;;  %v2019_v4 = vmul.f32 %v6118_v40, %v6958_v8  ;;  %v2026_v52 = vpack.c.bf16 %v2018_v43, %v2014_v41  ;;  %v5851_v40 = vld [vmem:[%s7485_s3 + $0x16c] ss:$12 sps:$4 sm:$0xff]  }
 0xdf4   :  { %v2021_v50 = vmul.f32 %v6120_v2, %v6962_v35  ;;  %v2028_v1 = vpack.c.bf16 %v2020_v3, %v2016_v7  ;;  %2638 = vmatprep.subr.bf16.mxu0 %v5851_v40 }
 0xdf5   :  { %v2027_v9 = vpack.c.bf16 %v2019_v4, %v2015_v18 }
 0xdf6   :  { %v2029_v57 = vpack.c.bf16 %v2021_v50, %v2017_v5 }
 0xdf7   :  { %2333 = vmatprep.mubr.bf16.mxu0 %v2027_v9 }
 0xdf8   :  { %2382 = vmatprep.mubr.bf16.mxu1 %v2029_v57  ;;  %2334 = vmatmul.mubr.bf16.gmra.mxu0 %v2026_v52 }
 0xdf9   :  { %2383 = vmatmul.mubr.bf16.gmra.mxu1 %v2028_v1  ;;  %2670 = vmatprep.mubr.bf16.mxu0 %v6407_v39 }
 0xeb0   :  { %v5281_v33 = vpop.f32.mrf.mxu0 }
 0xeb1   :  { %v5309_v26 = vpop.f32.mrf.mxu1 }
 0xeb2   :  { %v5282_v45 = vpop.f32.mrf.mxu0 }
 0xeb3   :  { %v5283_v8 = vadd.f32 %v5282_v45, %v5281_v33  ;;  %v5310_v35 = vpop.f32.mrf.mxu1  ;;  %v5857_v45 = vld [vmem:[%s7485_s3 + $0x13c] ss:$12 sps:$4 sm:$0xff]  }
 0xeb4   :  { %v5284_v27 = vpop.f32.mrf.mxu0  ;;  %v5311_v37 = vadd.f32 %v5310_v35, %v5309_v26  ;;  %v5854_v26 = vld [vmem:[%s7485_s3 + $0x154] ss:$12 sps:$4 sm:$0xff]   ;;  %v5855_v35 = vld [vmem:[%s7485_s3 + $0x138] ss:$12 sps:$4 sm:$0xff]  }
 0xeb5   :  { %v2328_v61 = vadd.f32 %v5283_v8, %v4988_v23  ;;  %v5312_v12 = vpop.f32.mrf.mxu1  ;;  %v5858_v8 = vld [vmem:[%s7485_s3 + $0x170] ss:$12 sps:$4 sm:$0xff]  }
 0xeb6   :  { %v5285_v13 = vpop.f32.mrf.mxu0  ;;  %5560 = vmatprep.subr.bf16.mxu1 %v5858_v8 }
 0xeb7   :  { %v2377_v42 = vadd.f32 %v5311_v37, %v2328_v61  ;;  %v5286_v62 = vadd.f32 %v5285_v13, %v5284_v27  ;;  %v5313_v16 = vpop.f32.mrf.mxu1  ;;  %5561 = vmatpush3.bf16.msra.mxu1 %v5858_v8  ;;  %v5861_v27 = vld [vmem:[%s7485_s3 + $0x124] ss:$12 sps:$4 sm:$0xff]   ;;  %v5859_v37 = vld [vmem:[%s7485_s3 + $0x120] ss:$12 sps:$4 sm:$0xff]  }
 0xeb8   :  { %v5287_v17 = vpop.f32.mrf.mxu0  ;;  %v5314_v20 = vadd.f32 %v5313_v16, %v5312_v12  ;;  %v5862_v61 = vld [vmem:[%s7485_s3 + $0x158] ss:$12 sps:$4 sm:$0xff]   ;;  %v5866_v13 = vld [vmem:[%s7485_s3 + $0x140] ss:$12 sps:$4 sm:$0xff]   ;;  %v5870_v16 = vld [vmem:[%s7485_s3 + $0x128] ss:$12 sps:$4 sm:$0xff]  }
 0xeb9   :  { %v2331_v11 = vadd.f32 %v5286_v62, %v4988_v23  ;;  %v5315_v63 = vpop.f32.mrf.mxu1  ;;  %v6987_v21 = vadd.f32 %v2377_v42, %v6848_v22  ;;  %5562 = vmatprep.subr.bf16.mxu1 %v5862_v61  ;;  %v5865_v12 = vld [vmem:[%s7485_s3 + $0x10c] ss:$12 sps:$4 sm:$0xff]   ;;  %v5863_v42 = vld [vmem:[%s7485_s3 + $0x108] ss:$12 sps:$4 sm:$0xff]  }
 0xeba   :  { %v5288_v19 = vpop.f32.mrf.mxu0  ;;  %v5869_v62 = vld [vmem:[%s7485_s3 + $0xf4] ss:$12 sps:$4 sm:$0xff]  }
 0xebb   :  { %v2380_v24 = vadd.f32 %v5314_v20, %v2331_v11  ;;  %v5289_v25 = vadd.f32 %v5288_v19, %v5287_v17  ;;  %v5316_v31 = vpop.f32.mrf.mxu1  ;;  %2397 = vadd.xlane.f32.xlu0 %v6987_v21  ;;  %5563 = vmatpush3.bf16.msra.mxu1 %v5862_v61  ;;  %v5867_v17 = vld [vmem:[%s7485_s3 + $0xf0] ss:$12 sps:$4 sm:$0xff]  }
 0xebc   :  { %v5290_v56 = vpop.f32.mrf.mxu0  ;;  %v5317_v47 = vadd.f32 %v5316_v31, %v5315_v63  ;;  %5564 = vmatprep.subr.bf16.mxu1 %v5866_v13  ;;  %v5873_v11 = vld [vmem:[%s7485_s3 + $0xdc] ss:$12 sps:$4 sm:$0xff]   ;;  %v5871_v63 = vld [vmem:[%s7485_s3 + $0xd8] ss:$12 sps:$4 sm:$0xff]   ;;  %v5879_v31 = vld [vmem:[%s7485_s3 + $0xe0] ss:$12 sps:$4 sm:$0xff]  }
 0xebd   :  { %v2336_v32 = vadd.f32 %v5289_v25, %v4988_v23  ;;  %v5318_v34 = vpop.f32.mrf.mxu1  ;;  %v6991_v44 = vadd.f32 %v2380_v24, %v6859_v29  ;;  %v5849_v29 = vld [vmem:[%s7485_s3 + $0x168] ss:$12 sps:$4 sm:$0xff]   ;;  %v5874_v20 = vld [vmem:[%s7485_s3 + $0x110] ss:$12 sps:$4 sm:$0xff]   ;;  %v5878_v24 = vld [vmem:[%s7485_s3 + $0xf8] ss:$12 sps:$4 sm:$0xff]  }
 0xebe   :  { %v5291_v46 = vpop.f32.mrf.mxu0  ;;  %2639 = vmatpush1.bf16.msra.mxu0 %v5849_v29  ;;  %v5877_v19 = vld [vmem:[%s7485_s3 + $0xc4] ss:$12 sps:$4 sm:$0xff]   ;;  %v5875_v25 = vld [vmem:[%s7485_s3 + $0xc0] ss:$12 sps:$4 sm:$0xff]  }
 0xebf   :  { %v2385_v48 = vadd.f32 %v5317_v47, %v2336_v32  ;;  %v5292_v36 = vadd.f32 %v5291_v46, %v5290_v56  ;;  %v5319_v49 = vpop.f32.mrf.mxu1  ;;  %2399 = vadd.xlane.f32.xlu1 %v6991_v44  ;;  %2640 = vmatprep.subr.bf16.mxu0 %v5854_v26  ;;  %v5880_v56 = vld [vmem:[%s7485_s3 + $0xc8] ss:$12 sps:$4 sm:$0xff]  }
 0xec0   :  { %v5320_v51 = vadd.f32 %v5319_v49, %v5318_v34  ;;  %5565 = vmatpush3.bf16.msra.mxu1 %v5866_v13 }
 0xec1   :  { %v2339_v22 = vadd.f32 %v5292_v36, %v4988_v23  ;;  %v6995_v55 = vadd.f32 %v2385_v48, %v6863_v30  ;;  %v5852_v23 = vld [vmem:[%s7485_s3 + $0x150] ss:$12 sps:$4 sm:$0xff]   ;;  %5566 = vmatprep.subr.bf16.mxu1 %v5870_v16 }
 0xec2   :  { %2641 = vmatpush1.bf16.msra.mxu0 %v5852_v23 }
 0xec3   :  { %v2388_v60 = vadd.f32 %v5320_v51, %v2339_v22  ;;  %2401 = vadd.xlane.f32.xlu0 %v6995_v55  ;;  %2642 = vmatprep.subr.bf16.mxu0 %v5857_v45 }
 0xec4   :  { %5567 = vmatpush3.bf16.msra.mxu1 %v5870_v16 }
 0xec5   :  { %v6999_v15 = vadd.f32 %v2388_v60, %v6857_v28  ;;  %5568 = vmatprep.subr.bf16.mxu1 %v5874_v20 }
 0xec6   :  { %2643 = vmatpush1.bf16.msra.mxu0 %v5855_v35 }
 0xec7   :  { %2403 = vadd.xlane.f32.xlu1 %v6999_v15  ;;  %2644 = vmatprep.subr.bf16.mxu0 %v5861_v27 }
 0xec8   :  { %5569 = vmatpush3.bf16.msra.mxu1 %v5874_v20 }
 0xec9   :  { %5570 = vmatprep.subr.bf16.mxu1 %v5878_v24 }
 0xeca   :  { %2645 = vmatpush1.bf16.msra.mxu0 %v5859_v37  ;;  %v5054_v37 = vld [vmem:[%s7486_s4 + $0x3] sm:$0x7] }
 0xecb   :  { %2646 = vmatprep.subr.bf16.mxu0 %v5865_v12  ;;  %v2498_v12 = vrot.slane %v5054_v37, %v6617_v59 }
 0xecc   :  { %5571 = vmatpush3.bf16.msra.mxu1 %v5878_v24 }
 0xecd   :  { %5572 = vmatprep.subr.bf16.mxu1 %v5879_v31 }
 0xece   :  { %2647 = vmatpush1.bf16.msra.mxu0 %v5863_v42 }
 0xecf   :  { %2648 = vmatprep.subr.bf16.mxu0 %v5869_v62 }
 0xed0   :  { %5573 = vmatpush3.bf16.msra.mxu1 %v5879_v31 }
 0xed1   :  { %5574 = vmatprep.subr.bf16.mxu1 %v5880_v56 }
 0xed2   :  { %2649 = vmatpush1.bf16.msra.mxu0 %v5867_v17 }
 0xed3   :  { %2650 = vmatprep.subr.bf16.mxu0 %v5873_v11 }
 0xed4   :  { %5575 = vmatpush3.bf16.msra.mxu1 %v5880_v56 }
 0xed6   :  { %2651 = vmatpush1.bf16.msra.mxu0 %v5871_v63  ;;  %v2506_v63 = vrot.slane %v5054_v37, %v6642_v38 }
 0xed7   :  { %2652 = vmatprep.subr.bf16.mxu0 %v5877_v19 }
 0xeda   :  { %2653 = vmatpush1.bf16.msra.mxu0 %v5875_v25  ;;  %v2502_v25 = vrot.slane %v5054_v37, %v6625_v0 }
 0xf44   :  { %v2398_v30 = vpop.xlane.xlu0 %2397 }
 0xf45   :  { %v2405_v43 = vmul.f32 0.0078125, %v2398_v30  ;;  %v5021_v30 = vld [vmem:[%s7484_s2 + $0x2] sm:$0x3] }
 0xf47   :  { %v7009_v2 = vsub.f32 %v6987_v21, %v2405_v43 }
 0xf48   :  { %v2400_v18 = vpop.xlane.xlu1 %2399 }
 0xf49   :  { %v2406_v28 = vmul.f32 0.0078125, %v2400_v18  ;;  %v2413_v3 = vmul.f32 %v7009_v2, %v7009_v2 }
 0xf4b   :  { %v7014_v4 = vsub.f32 %v6991_v44, %v2406_v28  ;;  %2417 = vadd.xlane.f32.xlu0 %v2413_v3  ;;  %v2444_v28 = vrot.slane %v5021_v30, %v6617_v59 }
 0xf4c   :  { %v2402_v41 = vpop.xlane.xlu0 %2401 }
 0xf4d   :  { %v2407_v5 = vmul.f32 0.0078125, %v2402_v41  ;;  %v2414_v50 = vmul.f32 %v7014_v4, %v7014_v4 }
 0xf4f   :  { %v7019_v7 = vsub.f32 %v6995_v55, %v2407_v5  ;;  %2419 = vadd.xlane.f32.xlu1 %v2414_v50  ;;  %v2452_v50 = vrot.slane %v5021_v30, %v6625_v0 }
 0xf50   :  { %v2404_v9 = vpop.xlane.xlu1 %2403 }
 0xf51   :  { %v2408_v57 = vmul.f32 0.0078125, %v2404_v9  ;;  %v2415_v52 = vmul.f32 %v7019_v7, %v7019_v7 }
 0xf53   :  { %v7024_v1 = vsub.f32 %v6999_v15, %v2408_v57  ;;  %2421 = vadd.xlane.f32.xlu0 %v2415_v52 }
 0xf55   :  { %v2416_v33 = vmul.f32 %v7024_v1, %v7024_v1 }
 0xf57   :  { %2423 = vadd.xlane.f32.xlu1 %v2416_v33 }
 0xfd4   :  { %v2418_v32 = vpop.xlane.xlu0 %2417 }
 0xfd5   :  { %v2425_v47 = vmul.f32 0.0078125, %v2418_v32 }
 0xfd7   :  { %v2429_v34 = vadd.f32 1e-05, %v2425_v47 }
 0xfd8   :  { %v2420_v46 = vpop.xlane.xlu1 %2419 }
 0xfd9   :  { %6121 = vrsqrt.f32 %v2429_v34  ;;  %v2426_v48 = vmul.f32 0.0078125, %v2420_v46 }
 0xfdb   :  { %v2430_v36 = vadd.f32 1e-05, %v2426_v48 }
 0xfdc   :  { %v2422_v49 = vpop.xlane.xlu0 %2421 }
 0xfdd   :  { %6123 = vrsqrt.f32 %v2430_v36  ;;  %v2427_v22 = vmul.f32 0.0078125, %v2422_v49 }
 0xfdf   :  { %v2431_v51 = vadd.f32 1e-05, %v2427_v22 }
 0xfe0   :  { %v2424_v60 = vpop.xlane.xlu1 %2423 }
 0xfe1   :  { %6125 = vrsqrt.f32 %v2431_v51  ;;  %v2428_v29 = vmul.f32 0.0078125, %v2424_v60 }
 0xfe3   :  { %v2432_v40 = vadd.f32 1e-05, %v2428_v29 }
 0xfe5   :  { %6127 = vrsqrt.f32 %v2432_v40 }
 0xfe6   :  { %v6122_v43 = vpop.eup %6121 }
 0xfe7   :  { %v2437_v18 = vmul.f32 %v6122_v43, %v7009_v2 }
 0xfe9   :  { %v2445_v5 = vmul.f32 %v2444_v28, %v2437_v18 }
 0xfea   :  { %v6124_v3 = vpop.eup %6123 }
 0xfeb   :  { %v2438_v41 = vmul.f32 %v6124_v3, %v7014_v4  ;;  %v2453_v52 = vadd.f32 %v2452_v50, %v2445_v5 }
 0xfed   :  { %v2446_v9 = vmul.f32 %v2444_v28, %v2438_v41 }
 0xfee   :  { %v6126_v57 = vpop.eup %6125 }
 0xfef   :  { %v2454_v33 = vadd.f32 %v2452_v50, %v2446_v9  ;;  %v2439_v26 = vmul.f32 %v6126_v57, %v7019_v7 }
 0xff1   :  { %v2457_v23 = vpack.c.bf16 %v2454_v33, %v2453_v52  ;;  %v2447_v8 = vmul.f32 %v2444_v28, %v2439_v26 }
 0xff2   :  { %v6128_v45 = vpop.eup %6127 }
 0xff3   :  { %2671 = vmatmul.mubr.bf16.vlgmr.msra.gmra.mxu0 %v2457_v23  ;;  %5576 = vmatprep.mubr.bf16.mxu1 %v2457_v23  ;;  %v2440_v2 = vmul.f32 %v6128_v45, %v7024_v1  ;;  %v2455_v4 = vadd.f32 %v2452_v50, %v2447_v8 }
 0xff4   :  { %2680 = vmatprep.mubr.bf16.mxu0 %v6407_v39 }
 0xff5   :  { %v2448_v35 = vmul.f32 %v2444_v28, %v2440_v2 }
 0xff7   :  { %v2456_v27 = vadd.f32 %v2452_v50, %v2448_v35 }
 0xff9   :  { %v2458_v61 = vpack.c.bf16 %v2456_v27, %v2455_v4 }
 0xffb   :  { %2681 = vmatmul.mubr.bf16.gmra.mxu0 %v2458_v61  ;;  %5577 = vmatmul.mubr.bf16.vlgmr.msra.gmra.mxu1 %v2458_v61 }
0x10b3   :  { %v2672_v7 = vpop.f32.mrf.mxu0 }
0x10b4   :  { %v2673_v62 = vadd.f32 %v2672_v7, %v2498_v12 }
0x10b5   :  { %v2674_v13 = vpop.f32.mrf.mxu0 }
0x10b6   :  { %v2675_v29 = vadd.f32 %v2674_v13, %v2502_v25 }
0x10b7   :  { %v2676_v42 = vpop.f32.mrf.mxu0 }
0x10b8   :  { %v2677_v1 = vadd.f32 %v2676_v42, %v2498_v12 }
0x10b9   :  { %v2678_v16 = vpop.f32.mrf.mxu0 }
0x10ba   :  { %v7108_v17 = vpack.c.bf16 %v2677_v1, %v2673_v62  ;;  %v2679_v34 = vadd.f32 %v2678_v16, %v2502_v25 }
0x10bb   :  { %v2682_v11 = vpop.f32.mrf.mxu0  ;;  %v5578_v20 = vpop.f32.mrf.mxu1 }
0x10bc   :  { %5584 = vmatprep.mubr.msk.bf16.mxu0 %vm499_vm0, %v7108_v17  ;;  %v2734_v32 = vadd.f32 %v5578_v20, %v2506_v63  ;;  %v7122_v43 = vpack.c.bf16 %v2679_v34, %v2675_v29  ;;  %v2683_v41 = vadd.f32 %v2682_v11, %v2498_v12 }
0x10bd   :  { %v2684_v19 = vpop.f32.mrf.mxu0  ;;  %v2725_v24 = vpop.f32.mrf.mxu1 }
0x10be   :  { %v2685_v46 = vadd.f32 %v2684_v19, %v2502_v25  ;;  %v2726_v49 = vadd.f32 %v2725_v24, %v2506_v63  ;;  %v2770_v28 = vsel %vm499_vm0, %v7122_v43, 0 }
0x10bf   :  { %v2686_v31 = vpop.f32.mrf.mxu0  ;;  %v5579_v56 = vpop.f32.mrf.mxu1 }
0x10c0   :  { %v2737_v47 = vadd.f32 %v5579_v56, %v2506_v63  ;;  %v2687_v3 = vadd.f32 %v2686_v31, %v2498_v12 }
0x10c1   :  { %v2688_v48 = vpop.f32.mrf.mxu0  ;;  %v2728_v36 = vpop.f32.mrf.mxu1 }
0x10c2   :  { %v7114_v22 = vpack.c.bf16 %v2737_v47, %v2734_v32  ;;  %v2689_v51 = vadd.f32 %v2688_v48, %v2502_v25  ;;  %v2729_v60 = vadd.f32 %v2728_v36, %v2506_v63  ;;  %v7134_v5 = vpack.c.bf16 %v2687_v3, %v2683_v41 }
0x10c4   :  { %v7116_v40 = vpack.c.bf16 %v2689_v51, %v2685_v46  ;;  %v7118_v30 = vpack.c.bf16 %v2729_v60, %v2726_v49  ;;  %5588 = vmatprep.subr.bf16.mxu1 %v7114_v22 }
0x10c5   :  { %5589 = vmatpush3.bf16.msra.mxu1 %v7114_v22 }
0x10c6   :  { %5704 = vmatprep.subr.msk.bf16.mxu0 %vm499_vm0, %v7116_v40  ;;  %5590 = vmatprep.subr.bf16.mxu1 %v7118_v30  ;;  %v2773_v18 = vsel %vm499_vm0, %v7116_v40, 0 }
0x10c7   :  { %5581 = vmatpush3.bf16.xpose.msra.mxu0 %v2773_v18 }
0x10c8   :  { %5705 = vmatprep.subr.msk.bf16.mxu0 %vm499_vm0, %v7122_v43 }
0x10c9   :  { %5591 = vmatpush3.bf16.msra.mxu1 %v7118_v30 }
0x10cf   :  { %5583 = vmatpush3.bf16.xpose.msra.mxu0 %v2770_v28 }
0x10d6   :  { %5585 = vmatmul.mubr.msk.bf16.vlgmr.msra.gmra.mxu0 %vm499_vm0, %v7134_v5 }
0x1196   :  { %v5586_v50 = vpop.f32.mrf.mxu0 }
0x1197   :  { %v2826_v26 = vsel %vm6679_vm8, %v5586_v50, -1e+30 }
0x1198   :  { %v2809_v9 = vpop.f32.mrf.mxu0  ;;  %v2834_v2 = vsel %vm499_vm0, %v2826_v26, -inf }
0x1199   :  { %v2824_v57 = vsel %vm6675_vm5, %v2809_v9, -1e+30 }
0x119a   :  { %v5587_v52 = vpop.f32.mrf.mxu0  ;;  %v2828_v33 = vsel %vm499_vm0, %v2824_v57, -inf }
0x119b   :  { %2829 = vmax.xlane.f32.xlu0 %v2828_v33  ;;  %v2827_v35 = vsel %vm6692_vm12, %v5587_v52, -1e+30 }
0x119c   :  { %v2812_v23 = vpop.f32.mrf.mxu0  ;;  %v2837_v4 = vsel %vm499_vm0, %v2827_v35, -inf }
0x119d   :  { %v2825_v45 = vsel %vm6686_vm11, %v2812_v23, -1e+30 }
0x119e   :  { %v2831_v8 = vsel %vm499_vm0, %v2825_v45, -inf }
0x119f   :  { %2835 = vmax.xlane.f32.xlu0 %v2834_v2  ;;  %2832 = vmax.xlane.f32.xlu1 %v2831_v8  ;;  %v5881_v2 = vld [vmem:[#allocation6 + $0x48] sm:$0xff]   ;;  %v5882_v8 = vld [vmem:[#allocation6 + $0x40] sm:$0xff]  }
0x11a3   :  { %2838 = vmax.xlane.f32.xlu1 %v2837_v4 }
0x1224   :  { %v2830_v27 = vpop.xlane.xlu0 %2829 }
0x1225   :  { %v2840_v61 = vsub.f32 %v2824_v57, %v2830_v27 }
0x1227   :  { %v2844_v42 = vmul.f32 1.442695, %v2840_v61 }
0x1228   :  { %v2836_v37 = vpop.xlane.xlu0 %2835  ;;  %v2833_v7 = vpop.xlane.xlu1 %2832 }
0x1229   :  { %v2842_v12 = vsub.f32 %v2826_v26, %v2836_v37  ;;  %v2841_v13 = vsub.f32 %v2825_v45, %v2833_v7 }
0x122b   :  { %v2848_v62 = vmul.f32 1.442695, %v2842_v12  ;;  %v2846_v1 = vmul.f32 1.442695, %v2841_v13 }
0x122c   :  { %v2839_v16 = vpop.xlane.xlu1 %2838 }
0x122d   :  { %6129 = vpow2.f32 %v2848_v62  ;;  %v2843_v11 = vsub.f32 %v2827_v35, %v2839_v16 }
0x122e   :  { %6131 = vpow2.f32 %v2846_v1 }
0x122f   :  { %6133 = vpow2.f32 %v2844_v42  ;;  %v2850_v20 = vmul.f32 1.442695, %v2843_v11 }
0x1231   :  { %6135 = vpow2.f32 %v2850_v20 }
0x123a   :  { %v6130_v63 = vpop.eup %6129 }
0x123b   :  { %v6132_v19 = vpop.eup %6131  ;;  %v2858_v24 = vsel %vm499_vm0, %v6130_v63, 0.0 }
0x123c   :  { %v6134_v25 = vpop.eup %6133  ;;  %2859 = vadd.xlane.f32.xlu0 %v2858_v24  ;;  %v2855_v31 = vsel %vm499_vm0, %v6132_v19, 0.0 }
0x123d   :  { %2856 = vadd.xlane.f32.xlu1 %v2855_v31  ;;  %v2852_v32 = vsel %vm499_vm0, %v6134_v25, 0.0 }
0x123e   :  { %v6136_v56 = vpop.eup %6135 }
0x123f   :  { %v2861_v47 = vsel %vm499_vm0, %v6136_v56, 0.0 }
0x1240   :  { %2853 = vadd.xlane.f32.xlu0 %v2852_v32 }
0x1241   :  { %2862 = vadd.xlane.f32.xlu1 %v2861_v47 }
0x1252   :  { %2939 = vrot.lane.b32.xlu1 %v7122_v43, %s6408_s10 }
0x1256   :  { %2933 = vrot.lane.b32.xlu1 %v7108_v17, %s6408_s10  ;;  %2941 = vrot.lane.b32.xlu0 %v7116_v40, %s6408_s10 }
0x125a   :  { %2935 = vrot.lane.b32.xlu1 %v7134_v5, %s6408_s10 }
0x12c5   :  { %v2860_v34 = vpop.xlane.xlu0 %2859 }
0x12c6   :  { %v2857_v46 = vpop.xlane.xlu1 %2856 }
0x12c7   :  { %6137 = vrcp.f32 %v2857_v46 }
0x12c8   :  { %6139 = vrcp.f32 %v2860_v34 }
0x12c9   :  { %v2854_v48 = vpop.xlane.xlu0 %2853 }
0x12ca   :  { %6141 = vrcp.f32 %v2854_v48  ;;  %v2863_v36 = vpop.xlane.xlu1 %2862 }
0x12cb   :  { %6143 = vrcp.f32 %v2863_v36 }
0x12cd   :  { %v2942_v49 = vpop.permute.xlu0 %2941 }
0x12ce   :  { %5706 = vmatprep.subr.msk.bf16.mxu1 %vm499_vm0, %v2942_v49  ;;  %v2940_v18 = vpop.permute.xlu1 %2939  ;;  %v2953_v33 = vsel %vm499_vm0, %v2942_v49, 0 }
0x12cf   :  { %v2950_v23 = vsel %vm499_vm0, %v2940_v18, 0 }
0x12d2   :  { %v2934_v26 = vpop.permute.xlu1 %2933 }
0x12d4   :  { %v6138_v51 = vpop.eup %6137 }
0x12d5   :  { %v6140_v60 = vpop.eup %6139  ;;  %v2869_v41 = vmul.f32 %v6138_v51, %v6132_v19 }
0x12d6   :  { %v2870_v50 = vmul.f32 %v6140_v60, %v6130_v63  ;;  %v2936_v45 = vpop.permute.xlu1 %2935 }
0x12d7   :  { %v6142_v29 = vpop.eup %6141 }
0x12d8   :  { %v6144_v28 = vpop.eup %6143  ;;  %v2868_v3 = vmul.f32 %v6142_v29, %v6134_v25 }
0x12d9   :  { %v2871_v9 = vmul.f32 %v6144_v28, %v6136_v56 }
0x12da   :  { %v2872_v57 = vpack.c.bf16 %v2869_v41, %v2868_v3 }
0x12db   :  { %v2873_v52 = vpack.c.bf16 %v2871_v9, %v2870_v50 }
0x12dc   :  { %5592 = vmatprep.mubr.msk.bf16.mxu1 %vm499_vm0, %v2872_v57 }
0x12dd   :  { %5593 = vmatmul.mubr.msk.bf16.vlgmr.msra.gmra.mxu1 %vm499_vm0, %v2873_v52 }
0x12de   :  { %5597 = vmatpush3.bf16.xpose.msra.mxu1 %v2953_v33  ;;  %5600 = vmatprep.mubr.msk.bf16.mxu1 %vm499_vm0, %v2934_v26 }
0x12df   :  { %5707 = vmatprep.subr.msk.bf16.mxu1 %vm499_vm0, %v2940_v18 }
0x12e6   :  { %5599 = vmatpush3.bf16.xpose.msra.mxu1 %v2950_v23 }
0x12e7   :  { %5620 = vmatprep.subr.bf16.mxu1 %v5881_v2 }
0x12ed   :  { %5601 = vmatmul.mubr.msk.bf16.vlgmr.msra.gmra.mxu1 %vm499_vm0, %v2936_v45 }
0x12ee   :  { %5621 = vmatpush3.bf16.msra.mxu1 %v5881_v2  ;;  %v5883_v2 = vld [vmem:[#allocation6 + $0x58] sm:$0xff]  }
0x12ef   :  { %5622 = vmatprep.subr.bf16.mxu1 %v5882_v8 }
0x12f2   :  { %5623 = vmatpush3.bf16.msra.mxu1 %v5882_v8 }
0x139d   :  { %v5594_v35 = vpop.f32.mrf.mxu1 }
0x139f   :  { %v2914_v4 = vpop.f32.mrf.mxu1 }
0x13a1   :  { %v5595_v27 = vpop.f32.mrf.mxu1 }
0x13a2   :  { %v2930_v7 = vpack.c.bf16 %v5595_v27, %v5594_v35 }
0x13a3   :  { %v2917_v61 = vpop.f32.mrf.mxu1 }
0x13a4   :  { %v2929_v37 = vpack.c.bf16 %v2917_v61, %v2914_v4 }
0x13a6   :  { %5624 = vmatprep.mubr.msk.bf16.mxu1 %vm499_vm0, %v2929_v37 }
0x13a7   :  { %5625 = vmatmul.mubr.msk.bf16.vlgmr.msra.gmra.mxu1 %vm499_vm0, %v2930_v7 }
0x13ad   :  { %v5602_v12 = vpop.f32.mrf.mxu1 }
0x13ae   :  { %v3006_v16 = vsel %vm6679_vm8, %v5602_v12, -1e+30 }
0x13af   :  { %v2989_v13 = vpop.f32.mrf.mxu1  ;;  %v3014_v63 = vsel %vm499_vm0, %v3006_v16, -inf }
0x13b0   :  { %v3004_v42 = vsel %vm6675_vm5, %v2989_v13, -1e+30  ;;  %v5884_v13 = vld [vmem:[#allocation6 + $0x50] sm:$0xff]  }
0x13b1   :  { %v5603_v62 = vpop.f32.mrf.mxu1  ;;  %v3008_v1 = vsel %vm499_vm0, %v3004_v42, -inf }
0x13b2   :  { %3009 = vmax.xlane.f32.xlu0 %v3008_v1  ;;  %v3007_v24 = vsel %vm6692_vm12, %v5603_v62, -1e+30 }
0x13b3   :  { %v2992_v11 = vpop.f32.mrf.mxu1  ;;  %v3017_v25 = vsel %vm499_vm0, %v3007_v24, -inf }
0x13b4   :  { %v3005_v20 = vsel %vm6686_vm11, %v2992_v11, -1e+30 }
0x13b5   :  { %v3011_v19 = vsel %vm499_vm0, %v3005_v20, -inf }
0x13b6   :  { %3015 = vmax.xlane.f32.xlu0 %v3014_v63  ;;  %3012 = vmax.xlane.f32.xlu1 %v3011_v19 }
0x13ba   :  { %3018 = vmax.xlane.f32.xlu0 %v3017_v25 }
0x143b   :  { %v3010_v31 = vpop.xlane.xlu0 %3009 }
0x143c   :  { %v3020_v56 = vsub.f32 %v3004_v42, %v3010_v31 }
0x143e   :  { %v3024_v46 = vmul.f32 1.442695, %v3020_v56 }
0x143f   :  { %v3016_v32 = vpop.xlane.xlu0 %3015  ;;  %v3013_v47 = vpop.xlane.xlu1 %3012 }
0x1440   :  { %v3022_v34 = vsub.f32 %v3006_v16, %v3016_v32  ;;  %v3021_v36 = vsub.f32 %v3005_v20, %v3013_v47 }
0x1442   :  { %v3028_v48 = vmul.f32 1.442695, %v3022_v34  ;;  %v3026_v60 = vmul.f32 1.442695, %v3021_v36 }
0x1443   :  { %v3019_v49 = vpop.xlane.xlu0 %3018 }
0x1444   :  { %6145 = vpow2.f32 %v3028_v48  ;;  %v3023_v51 = vsub.f32 %v3007_v24, %v3019_v49 }
0x1445   :  { %6147 = vpow2.f32 %v3024_v46 }
0x1446   :  { %v3030_v29 = vmul.f32 1.442695, %v3023_v51 }
0x1448   :  { %6149 = vpow2.f32 %v3030_v29 }
0x1449   :  { %6151 = vpow2.f32 %v3026_v60 }
0x1451   :  { %v6146_v18 = vpop.eup %6145 }
0x1452   :  { %v3038_v28 = vsel %vm499_vm0, %v6146_v18, 0.0  ;;  %v6148_v3 = vpop.eup %6147 }
0x1453   :  { %3039 = vadd.xlane.f32.xlu0 %v3038_v28  ;;  %v3032_v50 = vsel %vm499_vm0, %v6148_v3, 0.0 }
0x1455   :  { %v6150_v41 = vpop.eup %6149 }
0x1456   :  { %v3041_v9 = vsel %vm499_vm0, %v6150_v41, 0.0  ;;  %v6152_v57 = vpop.eup %6151 }
0x1457   :  { %3033 = vadd.xlane.f32.xlu0 %v3032_v50  ;;  %3042 = vadd.xlane.f32.xlu1 %v3041_v9  ;;  %v3035_v52 = vsel %vm499_vm0, %v6152_v57, 0.0 }
0x145b   :  { %3036 = vadd.xlane.f32.xlu1 %v3035_v52 }
0x146c   :  { %3056 = vrot.lane.b32.xlu1 %v7118_v30, %s6408_s10 }
0x146d   :  { %3058 = vrot.lane.b32.xlu0 %v7114_v22, %s6408_s10 }
0x1470   :  { %3259 = vrot.lane.b32.xlu1 %v7116_v40, %s6404_s8 }
0x1471   :  { %3253 = vrot.lane.b32.xlu0 %v7108_v17, %s6404_s8 }
0x1474   :  { %3257 = vrot.lane.b32.xlu1 %v7122_v43, %s6404_s8 }
0x1475   :  { %3512 = vrot.lane.b32.xlu0 %v7116_v40, %s6409_s29 }
0x1478   :  { %3255 = vrot.lane.b32.xlu1 %v7134_v5, %s6404_s8 }
0x1479   :  { %3506 = vrot.lane.b32.xlu0 %v7108_v17, %s6409_s29 }
0x147c   :  { %3510 = vrot.lane.b32.xlu1 %v7122_v43, %s6409_s29 }
0x1480   :  { %3508 = vrot.lane.b32.xlu1 %v7134_v5, %s6409_s29 }
0x14dc   :  { %v3040_v33 = vpop.xlane.xlu0 %3039 }
0x14e0   :  { %v3034_v26 = vpop.xlane.xlu0 %3033  ;;  %v3043_v23 = vpop.xlane.xlu1 %3042 }
0x14e1   :  { %6153 = vrcp.f32 %v3043_v23 }
0x14e2   :  { %6155 = vrcp.f32 %v3034_v26 }
0x14e3   :  { %6157 = vrcp.f32 %v3040_v33 }
0x14e4   :  { %v3059_v45 = vpop.permute.xlu0 %3058  ;;  %v3037_v40 = vpop.xlane.xlu1 %3036 }
0x14e5   :  { %6159 = vrcp.f32 %v3037_v40  ;;  %5604 = vmatprep.subr.bf16.mxu0 %v3059_v45 }
0x14e6   :  { %5605 = vmatpush3.bf16.msra.mxu0 %v3059_v45 }
0x14e8   :  { %v3057_v8 = vpop.permute.xlu1 %3056  ;;  %v3254_v19 = vpop.permute.xlu0 %3253 }
0x14e9   :  { %5606 = vmatprep.subr.bf16.mxu0 %v3057_v8 }
0x14ea   :  { %5607 = vmatpush3.bf16.msra.mxu0 %v3057_v8 }
0x14eb   :  { %5612 = vmatprep.subr.bf16.mxu0 %v5883_v2 }
0x14ec   :  { %v3260_v42 = vpop.permute.xlu1 %3259  ;;  %v3513_v56 = vpop.permute.xlu0 %3512 }
0x14ed   :  { %v3271_v24 = vsel %vm499_vm0, %v3260_v42, 0  ;;  %v3524_v47 = vsel %vm499_vm0, %v3513_v56, 0 }
0x14ee   :  { %v6154_v17 = vpop.eup %6153 }
0x14ef   :  { %v6156_v43 = vpop.eup %6155  ;;  %v3051_v4 = vmul.f32 %v6154_v17, %v6150_v41 }
0x14f0   :  { %v6158_v35 = vpop.eup %6157  ;;  %v3048_v27 = vmul.f32 %v6156_v43, %v6148_v3  ;;  %v3258_v25 = vpop.permute.xlu1 %3257 }
0x14f1   :  { %v3050_v37 = vmul.f32 %v6158_v35, %v6146_v18  ;;  %v3268_v31 = vsel %vm499_vm0, %v3258_v25, 0  ;;  %v3507_v34 = vpop.permute.xlu0 %3506 }
0x14f2   :  { %v6160_v5 = vpop.eup %6159 }
0x14f3   :  { %v3049_v61 = vmul.f32 %v6160_v5, %v6152_v57  ;;  %v3053_v12 = vpack.c.bf16 %v3051_v4, %v3050_v37 }
0x14f4   :  { %v3256_v32 = vpop.permute.xlu1 %3255 }
0x14f5   :  { %v3052_v7 = vpack.c.bf16 %v3049_v61, %v3048_v27 }
0x14f7   :  { %5608 = vmatprep.mubr.msk.bf16.mxu0 %vm499_vm0, %v3052_v7 }
0x14f8   :  { %5609 = vmatmul.mubr.msk.bf16.vlgmr.msra.gmra.mxu0 %vm499_vm0, %v3053_v12  ;;  %v3511_v46 = vpop.permute.xlu1 %3510 }
0x14f9   :  { %5613 = vmatpush3.bf16.msra.mxu0 %v5883_v2  ;;  %v3521_v48 = vsel %vm499_vm0, %v3511_v46, 0 }
0x14fa   :  { %5614 = vmatprep.subr.bf16.mxu0 %v5884_v13 }
0x14fc   :  { %v3509_v36 = vpop.permute.xlu1 %3508 }
0x14fd   :  { %5615 = vmatpush3.bf16.msra.mxu0 %v5884_v13 }
0x14fe   :  { %5708 = vmatprep.subr.msk.bf16.mxu0 %vm499_vm0, %v3260_v42 }
0x15b8   :  { %v5610_v62 = vpop.f32.mrf.mxu0 }
0x15ba   :  { %v3102_v1 = vpop.f32.mrf.mxu0 }
0x15bc   :  { %v5611_v16 = vpop.f32.mrf.mxu0 }
0x15bd   :  { %v3118_v63 = vpack.c.bf16 %v5611_v16, %v5610_v62 }
0x15be   :  { %v3105_v11 = vpop.f32.mrf.mxu0 }
0x15bf   :  { %v3117_v20 = vpack.c.bf16 %v3105_v11, %v3102_v1 }
0x15c1   :  { %5616 = vmatprep.mubr.msk.bf16.mxu0 %vm499_vm0, %v3117_v20 }
0x15c2   :  { %5617 = vmatmul.mubr.msk.bf16.vlgmr.msra.gmra.mxu0 %vm499_vm0, %v3118_v63 }
0x15c3   :  { %5629 = vmatpush3.bf16.xpose.msra.mxu0 %v3271_v24  ;;  %5632 = vmatprep.mubr.msk.bf16.mxu0 %vm499_vm0, %v3254_v19 }
0x15c4   :  { %5709 = vmatprep.subr.msk.bf16.mxu0 %vm499_vm0, %v3258_v25 }
0x15cb   :  { %5631 = vmatpush3.bf16.xpose.msra.mxu0 %v3268_v31 }
0x15cc   :  { %5710 = vmatprep.subr.msk.bf16.mxu0 %vm499_vm0, %v3513_v56 }
0x15d2   :  { %5633 = vmatmul.mubr.msk.bf16.vlgmr.msra.gmra.mxu0 %vm499_vm0, %v3256_v32 }
0x15d3   :  { %5653 = vmatpush3.bf16.xpose.msra.mxu0 %v3524_v47  ;;  %5656 = vmatprep.mubr.msk.bf16.mxu0 %vm499_vm0, %v3507_v34 }
0x15d4   :  { %5711 = vmatprep.subr.msk.bf16.mxu0 %vm499_vm0, %v3511_v46 }
0x15db   :  { %5655 = vmatpush3.bf16.xpose.msra.mxu0 %v3521_v48 }
0x15e2   :  { %5657 = vmatmul.mubr.msk.bf16.vlgmr.msra.gmra.mxu0 %vm499_vm0, %v3509_v36 }
0x15e3   :  { %4087 = vmatprep.mubr.bf16.mxu0 %v6407_v39 }
0x1682   :  { %v7225_v49 = vpop.f32.mrf.mxu0 }
0x1684   :  { %v7227_v51 = vpop.f32.mrf.mxu0 }
0x1686   :  { %v7229_v60 = vpop.f32.mrf.mxu0 }
0x1688   :  { %v7231_v29 = vpop.f32.mrf.mxu0 }
0x1692   :  { %v5634_v18 = vpop.f32.mrf.mxu0 }
0x1693   :  { %v3324_v9 = vsel %vm6679_vm8, %v5634_v18, -1e+30 }
0x1694   :  { %v3307_v28 = vpop.f32.mrf.mxu0  ;;  %v3332_v33 = vsel %vm499_vm0, %v3324_v9, -inf }
0x1695   :  { %v3322_v3 = vsel %vm6675_vm5, %v3307_v28, -1e+30 }
0x1696   :  { %v3326_v41 = vsel %vm499_vm0, %v3322_v3, -inf  ;;  %v5635_v50 = vpop.f32.mrf.mxu0 }
0x1697   :  { %3327 = vmax.xlane.f32.xlu0 %v3326_v41  ;;  %v3325_v23 = vsel %vm6692_vm12, %v5635_v50, -1e+30 }
0x1698   :  { %v3310_v57 = vpop.f32.mrf.mxu0  ;;  %v3335_v45 = vsel %vm499_vm0, %v3325_v23, -inf }
0x1699   :  { %v3323_v52 = vsel %vm6686_vm11, %v3310_v57, -1e+30 }
0x169a   :  { %v3329_v26 = vsel %vm499_vm0, %v3323_v52, -inf }
0x169b   :  { %3333 = vmax.xlane.f32.xlu0 %v3332_v33  ;;  %3330 = vmax.xlane.f32.xlu1 %v3329_v26 }
0x169f   :  { %3336 = vmax.xlane.f32.xlu0 %v3335_v45 }
0x16a2   :  { %v5658_v63 = vpop.f32.mrf.mxu0 }
0x16a3   :  { %v3577_v32 = vsel %vm6679_vm8, %v5658_v63, -1e+30  ;;  %v5885_v63 = vld [vmem:[#allocation6 + $0x68] sm:$0xff]  }
0x16a4   :  { %v3560_v19 = vpop.f32.mrf.mxu0  ;;  %v3585_v34 = vsel %vm499_vm0, %v3577_v32, -inf }
0x16a5   :  { %v3575_v47 = vsel %vm6675_vm5, %v3560_v19, -1e+30  ;;  %v5886_v19 = vld [vmem:[#allocation6 + $0x60] sm:$0xff]  }
0x16a6   :  { %v5659_v24 = vpop.f32.mrf.mxu0  ;;  %v3579_v46 = vsel %vm499_vm0, %v3575_v47, -inf }
0x16a7   :  { %v3578_v48 = vsel %vm6692_vm12, %v5659_v24, -1e+30  ;;  %v5626_v24 = vpop.f32.mrf.mxu1 }
0x16a8   :  { %v3563_v25 = vpop.f32.mrf.mxu0  ;;  %v3588_v10 = vsel %vm499_vm0, %v3578_v48, -inf }
0x16a9   :  { %v3576_v31 = vsel %vm6686_vm11, %v3563_v25, -1e+30  ;;  %v3238_v25 = vpop.f32.mrf.mxu1 }
0x16aa   :  { %v3582_v56 = vsel %vm499_vm0, %v3576_v31, -inf }
0x1720   :  { %v3328_v40 = vpop.xlane.xlu0 %3327 }
0x1721   :  { %v3338_v2 = vsub.f32 %v3322_v3, %v3328_v40 }
0x1723   :  { %v3342_v35 = vmul.f32 1.442695, %v3338_v2 }
0x1724   :  { %v3334_v8 = vpop.xlane.xlu0 %3333  ;;  %v3331_v17 = vpop.xlane.xlu1 %3330 }
0x1725   :  { %v3340_v43 = vsub.f32 %v3324_v9, %v3334_v8  ;;  %v3339_v4 = vsub.f32 %v3323_v52, %v3331_v17 }
0x1727   :  { %v3346_v5 = vmul.f32 1.442695, %v3340_v43  ;;  %v3344_v37 = vmul.f32 1.442695, %v3339_v4 }
0x1728   :  { %v3337_v27 = vpop.xlane.xlu0 %3336 }
0x1729   :  { %6161 = vpow2.f32 %v3346_v5  ;;  %v3341_v61 = vsub.f32 %v3325_v23, %v3337_v27 }
0x172a   :  { %6163 = vpow2.f32 %v3342_v35 }
0x172b   :  { %v3348_v7 = vmul.f32 1.442695, %v3341_v61 }
0x172d   :  { %6165 = vpow2.f32 %v3348_v7 }
0x172e   :  { %6167 = vpow2.f32 %v3344_v37 }
0x1736   :  { %v6162_v12 = vpop.eup %6161 }
0x1737   :  { %v3356_v13 = vsel %vm499_vm0, %v6162_v12, 0.0  ;;  %v6164_v42 = vpop.eup %6163 }
0x1738   :  { %3357 = vadd.xlane.f32.xlu0 %v3356_v13  ;;  %v3350_v1 = vsel %vm499_vm0, %v6164_v42, 0.0 }
0x173a   :  { %v6166_v62 = vpop.eup %6165 }
0x173b   :  { %v3359_v16 = vsel %vm499_vm0, %v6166_v62, 0.0  ;;  %v6168_v11 = vpop.eup %6167 }
0x173c   :  { %3351 = vadd.xlane.f32.xlu0 %v3350_v1  ;;  %3360 = vadd.xlane.f32.xlu1 %v3359_v16  ;;  %v3353_v20 = vsel %vm499_vm0, %v6168_v11, 0.0 }
0x1740   :  { %3354 = vadd.xlane.f32.xlu1 %v3353_v20 }
0x1751   :  { %3372 = vrot.lane.b32.xlu1 %v7118_v30, %s6404_s8 }
0x1752   :  { %3374 = vrot.lane.b32.xlu0 %v7114_v22, %s6404_s8  ;;  %s6412_s8 = smov [#allocation10]  }
0x1771   :  { %3583 = vmax.xlane.f32.xlu0 %v3582_v56 }
0x1775   :  { %3586 = vmax.xlane.f32.xlu0 %v3585_v34  ;;  %3580 = vmax.xlane.f32.xlu1 %v3579_v46 }
0x1779   :  { %3589 = vmax.xlane.f32.xlu1 %v3588_v10 }
0x17c1   :  { %v3358_v36 = vpop.xlane.xlu0 %3357 }
0x17c5   :  { %v3352_v18 = vpop.xlane.xlu0 %3351  ;;  %v3361_v54 = vpop.xlane.xlu1 %3360 }
0x17c6   :  { %6169 = vrcp.f32 %v3361_v54 }
0x17c7   :  { %6171 = vrcp.f32 %v3352_v18 }
0x17c8   :  { %6173 = vrcp.f32 %v3358_v36 }
0x17c9   :  { %v3375_v6 = vpop.permute.xlu0 %3374  ;;  %v3355_v28 = vpop.xlane.xlu1 %3354 }
0x17ca   :  { %6175 = vrcp.f32 %v3355_v28  ;;  %5636 = vmatprep.subr.bf16.mxu1 %v3375_v6 }
0x17cb   :  { %5637 = vmatpush3.bf16.msra.mxu1 %v3375_v6 }
0x17cd   :  { %v3373_v3 = vpop.permute.xlu1 %3372 }
0x17ce   :  { %5638 = vmatprep.subr.bf16.mxu1 %v3373_v3 }
0x17cf   :  { %5639 = vmatpush3.bf16.msra.mxu1 %v3373_v3 }
0x17d0   :  { %5644 = vmatprep.subr.bf16.mxu1 %v5885_v63 }
0x17d3   :  { %v6170_v14 = vpop.eup %6169 }
0x17d4   :  { %v6172_v41 = vpop.eup %6171  ;;  %v3369_v57 = vmul.f32 %v6170_v14, %v6166_v62 }
0x17d5   :  { %v6174_v50 = vpop.eup %6173  ;;  %v3366_v52 = vmul.f32 %v6172_v41, %v6164_v42 }
0x17d6   :  { %v3368_v26 = vmul.f32 %v6174_v50, %v6162_v12 }
0x17d7   :  { %v6176_v9 = vpop.eup %6175 }
0x17d8   :  { %v3367_v33 = vmul.f32 %v6176_v9, %v6168_v11  ;;  %v3371_v45 = vpack.c.bf16 %v3369_v57, %v3368_v26 }
0x17da   :  { %v3370_v23 = vpack.c.bf16 %v3367_v33, %v3366_v52 }
0x17dc   :  { %5640 = vmatprep.mubr.msk.bf16.mxu1 %vm499_vm0, %v3370_v23  ;;  %v5887_v23 = vld [vmem:[#allocation6 + $0x78] sm:$0xff]  }
0x17dd   :  { %5641 = vmatmul.mubr.msk.bf16.vlgmr.msra.gmra.mxu1 %vm499_vm0, %v3371_v45  ;;  %v5888_v45 = vld [vmem:[#allocation6 + $0x70] sm:$0xff]  }
0x17de   :  { %5645 = vmatpush3.bf16.msra.mxu1 %v5885_v63 }
0x17df   :  { %5646 = vmatprep.subr.bf16.mxu1 %v5886_v19 }
0x17e2   :  { %5647 = vmatpush3.bf16.msra.mxu1 %v5886_v19  ;;  %v5112_v19 = vld [vmem:[%s7488_s6 + $0x1] ss:$0 sm:$0xff]  ;;  %s4852_s6 = sshll.u32 %s6412_s8, 4  ;;  %s4853_s6 = int_to_ptr.vmem [resolvable:$true] %s4852_s6 }
0x17e3   :  { %s6349_s10 = scalar_lea.vmem %s4853_s6, 512  ;;  %p6354_p7 = scmp.lt.s32.totalorder %s4853_s6, %s4853_s6 }
0x17e4   :  { %p6350_p6 = scmp.ne.s32.totalorder %s4853_s6, %s6349_s10  ;;  %p6355_p8 = scmp.lt.s32.totalorder %s6349_s10, %s6349_s10 }
0x17e6   :  { %p6356_p9 = por %p6355_p8, %p6354_p7 }
0x17e8   :  { %p6357_p10 = pnand %p6356_p9, %p6350_p6 }
0x17fa   :  { %v3584_v40 = vpop.xlane.xlu0 %3583 }
0x17fb   :  { %v3592_v35 = vsub.f32 %v3576_v31, %v3584_v40  ;;  %v5627_v31 = vpop.f32.mrf.mxu1  ;;  %v3247_v40 = vadd.f32 %v5626_v24, %v7225_v49 }
0x17fd   :  { %v3597_v37 = vmul.f32 1.442695, %v3592_v35  ;;  %v3241_v56 = vpop.f32.mrf.mxu1  ;;  %v3250_v35 = vadd.f32 %v5627_v31, %v7229_v60 }
0x17fe   :  { %v3587_v2 = vpop.xlane.xlu0 %3586  ;;  %v3581_v8 = vpop.xlane.xlu1 %3580 }
0x17ff   :  { %v3593_v17 = vsub.f32 %v3577_v32, %v3587_v2  ;;  %v3591_v43 = vsub.f32 %v3575_v47, %v3581_v8  ;;  %v3239_v8 = vadd.f32 %v3238_v25, %v7227_v51 }
0x1801   :  { %v3599_v5 = vmul.f32 1.442695, %v3593_v17  ;;  %v3595_v4 = vmul.f32 1.442695, %v3591_v43 }
0x1802   :  { %v3590_v27 = vpop.xlane.xlu1 %3589 }
0x1803   :  { %6177 = vpow2.f32 %v3599_v5  ;;  %v3594_v61 = vsub.f32 %v3578_v48, %v3590_v27  ;;  %v3242_v27 = vadd.f32 %v3241_v56, %v7231_v29 }
0x1804   :  { %6179 = vpow2.f32 %v3595_v4 }
0x1805   :  { %v3601_v7 = vmul.f32 1.442695, %v3594_v61 }
0x1807   :  { %6181 = vpow2.f32 %v3601_v7 }
0x1808   :  { %6183 = vpow2.f32 %v3597_v37 }
0x1810   :  { %v6178_v12 = vpop.eup %6177 }
0x1811   :  { %v3609_v13 = vsel %vm499_vm0, %v6178_v12, 0.0  ;;  %v6180_v42 = vpop.eup %6179 }
0x1812   :  { %3610 = vadd.xlane.f32.xlu0 %v3609_v13  ;;  %v3603_v1 = vsel %vm499_vm0, %v6180_v42, 0.0 }
0x1814   :  { %v6182_v62 = vpop.eup %6181 }
0x1815   :  { %v3612_v16 = vsel %vm499_vm0, %v6182_v62, 0.0  ;;  %v6184_v11 = vpop.eup %6183 }
0x1816   :  { %3604 = vadd.xlane.f32.xlu0 %v3603_v1  ;;  %3613 = vadd.xlane.f32.xlu1 %v3612_v16  ;;  %v3606_v20 = vsel %vm499_vm0, %v6184_v11, 0.0 }
0x181a   :  { %3607 = vadd.xlane.f32.xlu1 %v3606_v20 }
0x182b   :  { %3625 = vrot.lane.b32.xlu1 %v7118_v30, %s6409_s29 }
0x182c   :  { %3627 = vrot.lane.b32.xlu0 %v7114_v22, %s6409_s29 }
0x189b   :  { %v3611_v32 = vpop.xlane.xlu0 %3610 }
0x189d   :  { %v5642_v47 = vpop.f32.mrf.mxu1 }
0x189f   :  { %v3418_v34 = vpop.f32.mrf.mxu1  ;;  %v3605_v46 = vpop.xlane.xlu0 %3604 }
0x18a0   :  { %v3614_v48 = vpop.xlane.xlu1 %3613 }
0x18a1   :  { %v5643_v10 = vpop.f32.mrf.mxu1  ;;  %6185 = vrcp.f32 %v3614_v48  ;;  %v5891_v48 = vld [vmem:[#allocation7 + $0x1e4] ss:$16 sps:$4 sm:$0xff]  }
0x18a2   :  { %6187 = vrcp.f32 %v3605_v46  ;;  %v3434_v6 = vpack.c.bf16 %v5643_v10, %v5642_v47  ;;  %v5892_v10 = vld [vmem:[#allocation7 + $0x1e8] ss:$16 sps:$4 sm:$0xff]   ;;  %4055 = vmatprep.subr.bf16.mxu0 %v5891_v48 }
0x18a3   :  { %v3421_v36 = vpop.f32.mrf.mxu1  ;;  %v3628_v18 = vpop.permute.xlu0 %3627  ;;  %6189 = vrcp.f32 %v3611_v32 }
0x18a4   :  { %v3433_v54 = vpack.c.bf16 %v3421_v36, %v3418_v34  ;;  %v3608_v30 = vpop.xlane.xlu1 %3607  ;;  %5660 = vmatprep.subr.bf16.mxu1 %v3628_v18 }
0x18a5   :  { %6191 = vrcp.f32 %v3608_v30 }
0x18a6   :  { %5648 = vmatprep.mubr.msk.bf16.mxu1 %vm499_vm0, %v3433_v54 }
0x18a7   :  { %5649 = vmatmul.mubr.msk.bf16.vlgmr.msra.gmra.mxu1 %vm499_vm0, %v3434_v6 }
0x18a8   :  { %5661 = vmatpush3.bf16.msra.mxu1 %v3628_v18  ;;  %v3626_v22 = vpop.permute.xlu1 %3625 }
0x18a9   :  { %5662 = vmatprep.subr.bf16.mxu1 %v3626_v22 }
0x18ac   :  { %5663 = vmatpush3.bf16.msra.mxu1 %v3626_v22 }
0x18ad   :  { %5668 = vmatprep.subr.bf16.mxu1 %v5887_v23 }
0x18ae   :  { %v6186_v28 = vpop.eup %6185 }
0x18af   :  { %v6188_v3 = vpop.eup %6187  ;;  %v3622_v50 = vmul.f32 %v6186_v28, %v6182_v62 }
0x18b0   :  { %v6190_v14 = vpop.eup %6189  ;;  %v3619_v9 = vmul.f32 %v6188_v3, %v6180_v42 }
0x18b1   :  { %v3621_v52 = vmul.f32 %v6190_v14, %v6178_v12 }
0x18b2   :  { %v6192_v41 = vpop.eup %6191 }
0x18b3   :  { %v3620_v57 = vmul.f32 %v6192_v41, %v6184_v11  ;;  %v3624_v26 = vpack.c.bf16 %v3622_v50, %v3621_v52 }
0x18b5   :  { %v3623_v33 = vpack.c.bf16 %v3620_v57, %v3619_v9 }
0x18b7   :  { %5664 = vmatprep.mubr.msk.bf16.mxu1 %vm499_vm0, %v3623_v33 }
0x18b8   :  { %5665 = vmatmul.mubr.msk.bf16.vlgmr.msra.gmra.mxu1 %vm499_vm0, %v3624_v26  ;;  %v5897_v26 = vld [vmem:[#allocation7 + $0x1c4] ss:$16 sps:$4 sm:$0xff]  }
0x18b9   :  { %5669 = vmatpush3.bf16.msra.mxu1 %v5887_v23  ;;  %v5900_v23 = vld [vmem:[#allocation7 + $0x1cc] ss:$16 sps:$4 sm:$0xff]  }
0x18ba   :  { %5670 = vmatprep.subr.bf16.mxu1 %v5888_v45 }
0x18bd   :  { %5671 = vmatpush3.bf16.msra.mxu1 %v5888_v45  ;;  %v5895_v45 = vld [vmem:[#allocation7 + $0x1c0] ss:$16 sps:$4 sm:$0xff]  }
0x1967   :  { %v5650_v2 = vpop.f32.mrf.mxu1 }
0x1968   :  { %v3504_v17 = vadd.f32 %v5650_v2, %v3247_v40  ;;  %v5898_v40 = vld [vmem:[#allocation7 + $0x1c8] ss:$16 sps:$4 sm:$0xff]   ;;  %v5903_v2 = vld [vmem:[#allocation7 + $0x1a4] ss:$16 sps:$4 sm:$0xff]  }
0x1969   :  { %v3487_v43 = vpop.f32.mrf.mxu1 }
0x196a   :  { %v3502_v5 = vadd.f32 %v3487_v43, %v3239_v8  ;;  %v5906_v8 = vld [vmem:[#allocation7 + $0x1ac] ss:$16 sps:$4 sm:$0xff]   ;;  %v5904_v43 = vld [vmem:[#allocation7 + $0x1a8] ss:$16 sps:$4 sm:$0xff]  }
0x196b   :  { %v5651_v4 = vpop.f32.mrf.mxu1 }
0x196c   :  { %v3505_v61 = vadd.f32 %v5651_v4, %v3250_v35  ;;  %v5909_v35 = vld [vmem:[#allocation7 + $0x184] ss:$16 sps:$4 sm:$0xff]   ;;  %v5907_v4 = vld [vmem:[#allocation7 + $0x180] ss:$16 sps:$4 sm:$0xff]  }
0x196d   :  { %v3490_v37 = vpop.f32.mrf.mxu1 }
0x196e   :  { %v3503_v7 = vadd.f32 %v3490_v37, %v3242_v27  ;;  %v5910_v27 = vld [vmem:[#allocation7 + $0x188] ss:$16 sps:$4 sm:$0xff]   ;;  %v5915_v37 = vld [vmem:[#allocation7 + $0x164] ss:$16 sps:$4 sm:$0xff]  }
0x1978   :  { %v5666_v12 = vpop.f32.mrf.mxu1 }
0x197a   :  { %v3671_v13 = vpop.f32.mrf.mxu1 }
0x197c   :  { %v5667_v42 = vpop.f32.mrf.mxu1 }
0x197d   :  { %v3687_v49 = vpack.c.bf16 %v5667_v42, %v5666_v12  ;;  %v5918_v12 = vld [vmem:[#allocation7 + $0x16c] ss:$16 sps:$4 sm:$0xff]  }
0x197e   :  { %v3674_v62 = vpop.f32.mrf.mxu1  ;;  %v5924_v42 = vld [vmem:[#allocation7 + $0x14c] ss:$16 sps:$4 sm:$0xff]  }
0x197f   :  { %v3686_v1 = vpack.c.bf16 %v3674_v62, %v3671_v13  ;;  %v5921_v13 = vld [vmem:[#allocation7 + $0x144] ss:$16 sps:$4 sm:$0xff]   ;;  %v5919_v62 = vld [vmem:[#allocation7 + $0x140] ss:$16 sps:$4 sm:$0xff]  }
0x1981   :  { %5672 = vmatprep.mubr.msk.bf16.mxu1 %vm499_vm0, %v3686_v1  ;;  %v5922_v1 = vld [vmem:[#allocation7 + $0x148] ss:$16 sps:$4 sm:$0xff]  }
0x1982   :  { %5673 = vmatmul.mubr.msk.bf16.vlgmr.msra.gmra.mxu1 %vm499_vm0, %v3687_v49  ;;  %v5927_v49 = vld [vmem:[#allocation7 + $0x124] ss:$16 sps:$4 sm:$0xff]  }
0x1983   :  { %4140 = vmatprep.mubr.bf16.mxu1 %v6407_v39 }
0x1a42   :  { %v5674_v51 = vpop.f32.mrf.mxu1 }
0x1a43   :  { %v3757_v24 = vadd.f32 %v5674_v51, %v3504_v17  ;;  %v5901_v17 = vld [vmem:[#allocation7 + $0x1a0] ss:$16 sps:$4 sm:$0xff]   ;;  %v5930_v51 = vld [vmem:[#allocation7 + $0x12c] ss:$16 sps:$4 sm:$0xff]  }
0x1a44   :  { %v3740_v60 = vpop.f32.mrf.mxu1 }
0x1a45   :  { %v3755_v16 = vadd.f32 %v3740_v60, %v3502_v5  ;;  %v3761_v47 = vadd.f32 %v3757_v24, %v6995_v55  ;;  %v5912_v5 = vld [vmem:[#allocation7 + $0x18c] ss:$16 sps:$4 sm:$0xff]   ;;  %v5925_v60 = vld [vmem:[#allocation7 + $0x120] ss:$16 sps:$4 sm:$0xff]  }
0x1a46   :  { %v5675_v11 = vpop.f32.mrf.mxu1 }
0x1a47   :  { %v3759_v29 = vadd.f32 %v3755_v16, %v6987_v21  ;;  %v3758_v20 = vadd.f32 %v5675_v11, %v3505_v61  ;;  %v7302_v46 = vadd.f32 %v5112_v19, %v3761_v47  ;;  %v5913_v61 = vld [vmem:[#allocation7 + $0x160] ss:$16 sps:$4 sm:$0xff]   ;;  %v5928_v16 = vld [vmem:[#allocation7 + $0x128] ss:$16 sps:$4 sm:$0xff]   ;;  %v5933_v11 = vld [vmem:[#allocation7 + $0x104] ss:$16 sps:$4 sm:$0xff]  }
0x1a48   :  { %v3743_v63 = vpop.f32.mrf.mxu1 }
0x1a49   :  { %v3762_v25 = vadd.f32 %v3758_v20, %v6999_v15  ;;  %v3756_v31 = vadd.f32 %v3743_v63, %v3503_v7  ;;  %v7291_v56 = vadd.f32 %v5112_v19, %v3759_v29  ;;  %v5889_v15 = vld [vmem:[#allocation7 + $0x1e0] ss:$16 sps:$4 sm:$0xff]   ;;  %v5916_v7 = vld [vmem:[#allocation7 + $0x168] ss:$16 sps:$4 sm:$0xff]   ;;  %v5936_v29 = vld [vmem:[#allocation7 + $0x10c] ss:$16 sps:$4 sm:$0xff]  }
0x1a4a   :  { %4056 = vmatpush1.bf16.msra.mxu0 %v5889_v15  ;;  %v5931_v20 = vld [vmem:[#allocation7 + $0x100] ss:$16 sps:$4 sm:$0xff]   ;;  %v5934_v63 = vld [vmem:[#allocation7 + $0x108] ss:$16 sps:$4 sm:$0xff]  }
0x1a4b   :  { %v3760_v32 = vadd.f32 %v3756_v31, %v6991_v44  ;;  %3777 = vadd.xlane.f32.xlu1 %v7291_v56  ;;  %v7296_v34 = vadd.f32 %v5112_v19, %v3762_v25  ;;  %v5894_v44 = vld [vmem:[#allocation7 + $0x1ec] ss:$16 sps:$4 sm:$0xff]   ;;  %4057 = vmatprep.subr.bf16.mxu0 %v5897_v26 }
0x1a4c   :  { %4108 = vmatprep.subr.bf16.mxu1 %v5894_v44 }
0x1a4d   :  { %v7298_v21 = vadd.f32 %v5112_v19, %v3760_v32  ;;  %4109 = vmatpush1.bf16.msra.mxu1 %v5892_v10 }
0x1a4e   :  { %4110 = vmatprep.subr.bf16.mxu1 %v5900_v23  ;;  %4058 = vmatpush1.bf16.msra.mxu0 %v5895_v45 }
0x1a4f   :  { %3783 = vadd.xlane.f32.xlu1 %v7296_v34  ;;  %3779 = vadd.xlane.f32.xlu0 %v7298_v21 }
0x1a50   :  { %4059 = vmatprep.subr.bf16.mxu0 %v5903_v2 }
0x1a51   :  { %4111 = vmatpush1.bf16.msra.mxu1 %v5898_v40 }
0x1a52   :  { %4112 = vmatprep.subr.bf16.mxu1 %v5906_v8  ;;  %4060 = vmatpush1.bf16.msra.mxu0 %v5901_v17 }
0x1a53   :  { %3781 = vadd.xlane.f32.xlu0 %v7302_v46  ;;  %4061 = vmatprep.subr.bf16.mxu0 %v5909_v35 }
0x1a55   :  { %4113 = vmatpush1.bf16.msra.mxu1 %v5904_v43 }
0x1a56   :  { %4114 = vmatprep.subr.bf16.mxu1 %v5912_v5  ;;  %4062 = vmatpush1.bf16.msra.mxu0 %v5907_v4  ;;  %v5937_v5 = vld [vmem:[#allocation9 + $0x178] sm:$0xff]  }
0x1a57   :  { %4063 = vmatprep.subr.bf16.mxu0 %v5915_v37  ;;  %v5938_v4 = vld [vmem:[#allocation9 + $0x1f8] sm:$0xff]   ;;  %v5943_v37 = vld [vmem:[#allocation9 + $0x130] sm:$0xff]  }
0x1a59   :  { %4115 = vmatpush1.bf16.msra.mxu1 %v5910_v27  ;;  %v5939_v27 = vld [vmem:[#allocation9 + $0x138] sm:$0xff]  }
0x1a5a   :  { %4116 = vmatprep.subr.bf16.mxu1 %v5918_v12  ;;  %4064 = vmatpush1.bf16.msra.mxu0 %v5913_v61  ;;  %v5942_v61 = vld [vmem:[#allocation9 + $0x1f0] sm:$0xff]   ;;  %v5946_v12 = vld [vmem:[#allocation9 + $0x1e8] sm:$0xff]  }
0x1a5b   :  { %4065 = vmatprep.subr.bf16.mxu0 %v5921_v13  ;;  %v5947_v13 = vld [vmem:[#allocation9 + $0x128] sm:$0xff]  }
0x1a5d   :  { %4117 = vmatpush1.bf16.msra.mxu1 %v5916_v7  ;;  %v5944_v7 = vld [vmem:[#allocation9 + $0x1b0] sm:$0xff]  }
0x1a5e   :  { %4118 = vmatprep.subr.bf16.mxu1 %v5924_v42  ;;  %4066 = vmatpush1.bf16.msra.mxu0 %v5919_v62  ;;  %v5948_v42 = vld [vmem:[#allocation9 + $0x1a8] sm:$0xff]   ;;  %v5949_v62 = vld [vmem:[#allocation9 + $0x160] sm:$0xff]  }
0x1a5f   :  { %4067 = vmatprep.subr.bf16.mxu0 %v5927_v49  ;;  %v5951_v49 = vld [vmem:[#allocation9 + $0x120] sm:$0xff]  }
0x1a61   :  { %4119 = vmatpush1.bf16.msra.mxu1 %v5922_v1  ;;  %v5950_v1 = vld [vmem:[#allocation9 + $0x1e0] sm:$0xff]  }
0x1a62   :  { %4120 = vmatprep.subr.bf16.mxu1 %v5930_v51  ;;  %4068 = vmatpush1.bf16.msra.mxu0 %v5925_v60  ;;  %v5952_v51 = vld [vmem:[#allocation9 + $0x1a0] sm:$0xff]   ;;  %v5953_v60 = vld [vmem:[#allocation9 + $0x158] sm:$0xff]  }
0x1a63   :  { %4069 = vmatprep.subr.bf16.mxu0 %v5933_v11  ;;  %v5955_v11 = vld [vmem:[#allocation9 + $0x118] sm:$0xff]  }
0x1a65   :  { %4121 = vmatpush1.bf16.msra.mxu1 %v5928_v16  ;;  %v5954_v16 = vld [vmem:[#allocation9 + $0x1d8] sm:$0xff]  }
0x1a66   :  { %4122 = vmatprep.subr.bf16.mxu1 %v5936_v29  ;;  %4070 = vmatpush1.bf16.msra.mxu0 %v5931_v20  ;;  %v5956_v29 = vld [vmem:[#allocation9 + $0x198] sm:$0xff]   ;;  %v5957_v20 = vld [vmem:[#allocation9 + $0x150] sm:$0xff]  }
0x1a67   :  { %5379 = vmatprep.subr.bf16.mxu0 %v5937_v5 }
0x1a69   :  { %4123 = vmatpush1.bf16.msra.mxu1 %v5934_v63  ;;  %v5958_v63 = vld [vmem:[#allocation9 + $0x1d0] sm:$0xff]  }
0x1a6a   :  { %5407 = vmatprep.subr.bf16.mxu1 %v5938_v4 }
0x1ad4   :  { %v3778_v55 = vpop.xlane.xlu1 %3777 }
0x1ad5   :  { %v3785_v36 = vmul.f32 0.0078125, %v3778_v55 }
0x1ad7   :  { %v7306_v18 = vsub.f32 %v7291_v56, %v3785_v36 }
0x1ad8   :  { %v3784_v54 = vpop.xlane.xlu1 %3783  ;;  %v3780_v30 = vpop.xlane.xlu0 %3779 }
0x1ad9   :  { %v3788_v6 = vmul.f32 0.0078125, %v3784_v54  ;;  %v3786_v22 = vmul.f32 0.0078125, %v3780_v30  ;;  %v3793_v28 = vmul.f32 %v7306_v18, %v7306_v18  ;;  %v5113_v54 = vld [vmem:[%s7489_s7 + $0x2] sm:$0x3] }
0x1adb   :  { %v7311_v3 = vsub.f32 %v7298_v21, %v3786_v22  ;;  %3797 = vadd.xlane.f32.xlu0 %v3793_v28  ;;  %v7314_v41 = vsub.f32 %v7296_v34, %v3788_v6  ;;  %v3824_v22 = vrot.slane %v5113_v54, %v6617_v59 }
0x1adc   :  { %v3782_v14 = vpop.xlane.xlu0 %3781 }
0x1add   :  { %v3787_v50 = vmul.f32 0.0078125, %v3782_v14  ;;  %v3794_v9 = vmul.f32 %v7311_v3, %v7311_v3  ;;  %v3796_v52 = vmul.f32 %v7314_v41, %v7314_v41 }
0x1adf   :  { %v7319_v57 = vsub.f32 %v7302_v46, %v3787_v50  ;;  %3799 = vadd.xlane.f32.xlu1 %v3794_v9  ;;  %v3832_v9 = vrot.slane %v5113_v54, %v6625_v0 }
0x1ae1   :  { %v3795_v33 = vmul.f32 %v7319_v57, %v7319_v57 }
0x1ae3   :  { %3803 = vadd.xlane.f32.xlu1 %v3796_v52  ;;  %3801 = vadd.xlane.f32.xlu0 %v3795_v33 }
0x1b64   :  { %v3798_v19 = vpop.xlane.xlu0 %3797 }
0x1b65   :  { %v3805_v24 = vmul.f32 0.0078125, %v3798_v19  ;;  %v5959_v19 = vld [vmem:[#allocation9 + $0x110] sm:$0xff]  }
0x1b67   :  { %v3809_v25 = vadd.f32 1e-05, %v3805_v24  ;;  %v5960_v24 = vld [vmem:[#allocation9 + $0x190] sm:$0xff]  }
0x1b68   :  { %v3800_v31 = vpop.xlane.xlu1 %3799 }
0x1b69   :  { %6193 = vrsqrt.f32 %v3809_v25  ;;  %v3806_v32 = vmul.f32 0.0078125, %v3800_v31  ;;  %v5961_v25 = vld [vmem:[#allocation9 + $0x148] sm:$0xff]  }
0x1b6a   :  { %v5962_v31 = vld [vmem:[#allocation9 + $0x1c8] sm:$0xff]  }
0x1b6b   :  { %v3810_v47 = vadd.f32 1e-05, %v3806_v32  ;;  %v5963_v32 = vld [vmem:[#allocation9 + $0x108] sm:$0xff]  }
0x1b6c   :  { %v3804_v15 = vpop.xlane.xlu1 %3803  ;;  %v3802_v48 = vpop.xlane.xlu0 %3801 }
0x1b6d   :  { %6195 = vrsqrt.f32 %v3810_v47  ;;  %v3808_v10 = vmul.f32 0.0078125, %v3804_v15  ;;  %v3807_v44 = vmul.f32 0.0078125, %v3802_v48  ;;  %v5964_v47 = vld [vmem:[#allocation9 + $0x188] sm:$0xff]   ;;  %v5965_v15 = vld [vmem:[#allocation9 + $0x140] sm:$0xff]  }
0x1b6e   :  { %v5966_v48 = vld [vmem:[#allocation9 + $0x1c0] sm:$0xff]  }
0x1b6f   :  { %v3812_v55 = vadd.f32 1e-05, %v3808_v10  ;;  %v3811_v36 = vadd.f32 1e-05, %v3807_v44  ;;  %v5967_v10 = vld [vmem:[#allocation9 + $0x100] sm:$0xff]  }
0x1b70   :  { %v5968_v44 = vld [vmem:[#allocation9 + $0x180] sm:$0xff]  }
0x1b71   :  { %6197 = vrsqrt.f32 %v3812_v55  ;;  %v5114_v55 = vld [vmem:[%s7491_s9 + $0x4] sm:$0xf] }
0x1b72   :  { %6199 = vrsqrt.f32 %v3811_v36  ;;  %v3878_v36 = vrot.slane %v5114_v55, %v6617_v59  ;;  %v3886_v54 = vrot.slane %v5114_v55, %v6642_v38 }
0x1b76   :  { %v6194_v30 = vpop.eup %6193 }
0x1b77   :  { %v3817_v6 = vmul.f32 %v6194_v30, %v7306_v18  ;;  %v7342_v30 = vrot.slane %v5114_v55, %v6625_v0 }
0x1b79   :  { %v3825_v50 = vmul.f32 %v3824_v22, %v3817_v6  ;;  %v7346_v6 = vrot.slane %v5114_v55, %v1622_v53 }
0x1b7a   :  { %v6196_v28 = vpop.eup %6195 }
0x1b7b   :  { %v3818_v14 = vmul.f32 %v6196_v28, %v7311_v3  ;;  %v3833_v23 = vadd.f32 %v3832_v9, %v3825_v50 }
0x1b7d   :  { %v3826_v52 = vmul.f32 %v3824_v22, %v3818_v14 }
0x1b7e   :  { %v6198_v33 = vpop.eup %6197 }
0x1b7f   :  { %v6200_v26 = vpop.eup %6199  ;;  %v3834_v45 = vadd.f32 %v3832_v9, %v3826_v52  ;;  %v3820_v40 = vmul.f32 %v6198_v33, %v7314_v41  ;;  %v5940_v41 = vld [vmem:[#allocation9 + $0x1b8] sm:$0xff]  }
0x1b80   :  { %v3819_v2 = vmul.f32 %v6200_v26, %v7319_v57  ;;  %v5941_v57 = vld [vmem:[#allocation9 + $0x170] sm:$0xff]  }
0x1b81   :  { %v3837_v8 = vpack.c.bf16 %v3834_v45, %v3833_v23  ;;  %v3828_v17 = vmul.f32 %v3824_v22, %v3820_v40 }
0x1b82   :  { %v3827_v18 = vmul.f32 %v3824_v22, %v3819_v2 }
0x1b83   :  { %4088 = vmatmul.mubr.bf16.vlgmr.msra.gmra.mxu0 %v3837_v8  ;;  %4141 = vmatmul.mubr.bf16.vlgmr.msra.gmra.mxu1 %v3837_v8  ;;  %v3836_v43 = vadd.f32 %v3832_v9, %v3828_v17 }
0x1b84   :  { %4097 = vmatprep.mubr.bf16.mxu0 %v6407_v39  ;;  %4150 = vmatprep.mubr.bf16.mxu1 %v6407_v39  ;;  %v3835_v3 = vadd.f32 %v3832_v9, %v3827_v18  ;;  %v5945_v39 = vld [vmem:[#allocation9 + $0x168] sm:$0xff]  }
0x1b85   :  { %5380 = vmatpush3.bf16.msra.mxu0 %v5939_v27  ;;  %5408 = vmatpush3.bf16.msra.mxu1 %v5940_v41 }
0x1b86   :  { %v3838_v35 = vpack.c.bf16 %v3836_v43, %v3835_v3  ;;  %5381 = vmatprep.subr.bf16.mxu0 %v5941_v57  ;;  %5409 = vmatprep.subr.bf16.mxu1 %v5942_v61 }
0x1b89   :  { %5382 = vmatpush3.bf16.msra.mxu0 %v5943_v37  ;;  %5410 = vmatpush3.bf16.msra.mxu1 %v5944_v7 }
0x1b8a   :  { %5383 = vmatprep.subr.bf16.mxu0 %v5945_v39  ;;  %5411 = vmatprep.subr.bf16.mxu1 %v5946_v12 }
0x1b8b   :  { %4098 = vmatmul.mubr.bf16.gmra.mxu0 %v3838_v35  ;;  %4151 = vmatmul.mubr.bf16.gmra.mxu1 %v3838_v35 }
0x1b8d   :  { %5384 = vmatpush3.bf16.msra.mxu0 %v5947_v13  ;;  %5412 = vmatpush3.bf16.msra.mxu1 %v5948_v42 }
0x1b8e   :  { %5385 = vmatprep.subr.bf16.mxu0 %v5949_v62  ;;  %5413 = vmatprep.subr.bf16.mxu1 %v5950_v1 }
0x1b91   :  { %5386 = vmatpush3.bf16.msra.mxu0 %v5951_v49  ;;  %5414 = vmatpush3.bf16.msra.mxu1 %v5952_v51 }
0x1b92   :  { %5387 = vmatprep.subr.bf16.mxu0 %v5953_v60  ;;  %5415 = vmatprep.subr.bf16.mxu1 %v5954_v16 }
0x1b95   :  { %5388 = vmatpush3.bf16.msra.mxu0 %v5955_v11  ;;  %5416 = vmatpush3.bf16.msra.mxu1 %v5956_v29 }
0x1b96   :  { %5389 = vmatprep.subr.bf16.mxu0 %v5957_v20  ;;  %5417 = vmatprep.subr.bf16.mxu1 %v5958_v63 }
0x1b99   :  { %5390 = vmatpush3.bf16.msra.mxu0 %v5959_v19  ;;  %5418 = vmatpush3.bf16.msra.mxu1 %v5960_v24 }
0x1b9a   :  { %5391 = vmatprep.subr.bf16.mxu0 %v5961_v25  ;;  %5419 = vmatprep.subr.bf16.mxu1 %v5962_v31 }
0x1b9d   :  { %5392 = vmatpush3.bf16.msra.mxu0 %v5963_v32  ;;  %5420 = vmatpush3.bf16.msra.mxu1 %v5964_v47 }
0x1b9e   :  { %5393 = vmatprep.subr.bf16.mxu0 %v5965_v15  ;;  %5421 = vmatprep.subr.bf16.mxu1 %v5966_v48 }
0x1ba1   :  { %5394 = vmatpush3.bf16.msra.mxu0 %v5967_v10  ;;  %5422 = vmatpush3.bf16.msra.mxu1 %v5968_v44 }
0x1c43   :  { %v4089_v22 = vpop.f32.mrf.mxu0  ;;  %v4142_v28 = vpop.f32.mrf.mxu1 }
0x1c44   :  { %v7348_v14 = vadd.f32 %v4089_v22, %v3878_v36  ;;  %v7350_v50 = vadd.f32 %v4142_v28, %v3886_v54 }
0x1c45   :  { %v4091_v9 = vpop.f32.mrf.mxu0  ;;  %v4144_v52 = vpop.f32.mrf.mxu1 }
0x1c46   :  { %v5147_v33 = vmul.f32 -1.702, %v7348_v14  ;;  %v5149_v26 = vmul.f32 -1.702, %v7350_v50  ;;  %v7355_v38 = vadd.f32 %v4091_v9, %v7342_v30  ;;  %v7358_v23 = vadd.f32 %v4144_v52, %v7346_v6 }
0x1c47   :  { %v4093_v58 = vpop.f32.mrf.mxu0  ;;  %v4146_v53 = vpop.f32.mrf.mxu1 }
0x1c48   :  { %v4193_v45 = vmul.f32 1.442695, %v5147_v33  ;;  %v4197_v40 = vmul.f32 1.442695, %v5149_v26  ;;  %v5148_v2 = vmul.f32 -1.702, %v7355_v38  ;;  %v7361_v8 = vadd.f32 %v4093_v58, %v3878_v36 }
0x1c49   :  { %v5150_v17 = vmul.f32 -1.702, %v7358_v23  ;;  %v7364_v18 = vadd.f32 %v4146_v53, %v3886_v54  ;;  %v4095_v3 = vpop.f32.mrf.mxu0  ;;  %v4148_v43 = vpop.f32.mrf.mxu1 }
0x1c4a   :  { %6201 = vpow2.f32 %v4193_v45  ;;  %v4195_v35 = vmul.f32 1.442695, %v5148_v2  ;;  %v5151_v5 = vmul.f32 -1.702, %v7361_v8  ;;  %v7368_v4 = vadd.f32 %v4095_v3, %v7342_v30 }
0x1c4b   :  { %6203 = vpow2.f32 %v4197_v40  ;;  %v4199_v27 = vmul.f32 1.442695, %v5150_v17  ;;  %v5153_v41 = vmul.f32 -1.702, %v7364_v18  ;;  %v7372_v57 = vadd.f32 %v4148_v43, %v7346_v6  ;;  %v4099_v61 = vpop.f32.mrf.mxu0  ;;  %v4152_v37 = vpop.f32.mrf.mxu1 }
0x1c4c   :  { %6205 = vpow2.f32 %v4195_v35  ;;  %v4201_v7 = vmul.f32 1.442695, %v5151_v5  ;;  %v5152_v39 = vmul.f32 -1.702, %v7368_v4  ;;  %v7375_v12 = vadd.f32 %v4099_v61, %v3878_v36 }
0x1c4d   :  { %6207 = vpow2.f32 %v4199_v27  ;;  %v4205_v13 = vmul.f32 1.442695, %v5153_v41  ;;  %v5154_v42 = vmul.f32 -1.702, %v7372_v57  ;;  %v7378_v62 = vadd.f32 %v4152_v37, %v3886_v54  ;;  %v4101_v1 = vpop.f32.mrf.mxu0  ;;  %v4154_v49 = vpop.f32.mrf.mxu1 }
0x1c4e   :  { %6209 = vpow2.f32 %v4201_v7  ;;  %v4203_v51 = vmul.f32 1.442695, %v5152_v39  ;;  %v5155_v60 = vmul.f32 -1.702, %v7375_v12  ;;  %v7382_v16 = vadd.f32 %v4101_v1, %v7342_v30 }
0x1c4f   :  { %6211 = vpow2.f32 %v4205_v13  ;;  %v4207_v11 = vmul.f32 1.442695, %v5154_v42  ;;  %v5157_v29 = vmul.f32 -1.702, %v7378_v62  ;;  %v7386_v20 = vadd.f32 %v4154_v49, %v7346_v6  ;;  %v4103_v63 = vpop.f32.mrf.mxu0  ;;  %v4156_v19 = vpop.f32.mrf.mxu1 }
0x1c50   :  { %6213 = vpow2.f32 %v4203_v51  ;;  %v4209_v24 = vmul.f32 1.442695, %v5155_v60  ;;  %v5156_v25 = vmul.f32 -1.702, %v7382_v16  ;;  %v7389_v31 = vadd.f32 %v4103_v63, %v3878_v36 }
0x1c51   :  { %6215 = vpow2.f32 %v4207_v11  ;;  %v4213_v32 = vmul.f32 1.442695, %v5157_v29  ;;  %v5158_v47 = vmul.f32 -1.702, %v7386_v20  ;;  %v7392_v15 = vadd.f32 %v4156_v19, %v3886_v54  ;;  %v4105_v48 = vpop.f32.mrf.mxu0  ;;  %v4158_v10 = vpop.f32.mrf.mxu1 }
0x1c52   :  { %6217 = vpow2.f32 %v4209_v24  ;;  %v4211_v44 = vmul.f32 1.442695, %v5156_v25  ;;  %v5159_v55 = vmul.f32 -1.702, %v7389_v31  ;;  %v7396_v22 = vadd.f32 %v4105_v48, %v7342_v30 }
0x1c53   :  { %6219 = vpow2.f32 %v4213_v32  ;;  %v4215_v28 = vmul.f32 1.442695, %v5158_v47  ;;  %v5161_v36 = vmul.f32 -1.702, %v7392_v15  ;;  %v7400_v9 = vadd.f32 %v4158_v10, %v7346_v6 }
0x1c54   :  { %6221 = vpow2.f32 %v4211_v44  ;;  %v4217_v52 = vmul.f32 1.442695, %v5159_v55  ;;  %v5160_v54 = vmul.f32 -1.702, %v7396_v22 }
0x1c55   :  { %6223 = vpow2.f32 %v4215_v28  ;;  %v4221_v33 = vmul.f32 1.442695, %v5161_v36  ;;  %v5162_v26 = vmul.f32 -1.702, %v7400_v9 }
0x1c56   :  { %6225 = vpow2.f32 %v4217_v52  ;;  %v4219_v58 = vmul.f32 1.442695, %v5160_v54 }
0x1c57   :  { %v6202_v53 = vpop.eup %6201  ;;  %6227 = vpow2.f32 %v4221_v33  ;;  %v4223_v30 = vmul.f32 1.442695, %v5162_v26 }
0x1c58   :  { %v6204_v45 = vpop.eup %6203  ;;  %v4225_v40 = vadd.f32 1.0, %v6202_v53  ;;  %6229 = vpow2.f32 %v4219_v58 }
0x1c59   :  { %v6206_v2 = vpop.eup %6205  ;;  %v4227_v17 = vadd.f32 1.0, %v6204_v45  ;;  %6231 = vpow2.f32 %v4223_v30 }
0x1c5a   :  { %v6208_v6 = vpop.eup %6207  ;;  %6233 = vrcp.f32 %v4225_v40  ;;  %v4226_v3 = vadd.f32 1.0, %v6206_v2 }
0x1c5b   :  { %v6210_v43 = vpop.eup %6209  ;;  %6235 = vrcp.f32 %v4227_v17  ;;  %v4228_v35 = vadd.f32 1.0, %v6208_v6 }
0x1c5c   :  { %v6212_v5 = vpop.eup %6211  ;;  %6237 = vrcp.f32 %v4226_v3  ;;  %v4229_v27 = vadd.f32 1.0, %v6210_v43 }
0x1c5d   :  { %v6214_v41 = vpop.eup %6213  ;;  %6239 = vrcp.f32 %v4228_v35  ;;  %v4231_v61 = vadd.f32 1.0, %v6212_v5 }
0x1c5e   :  { %v6216_v37 = vpop.eup %6215  ;;  %6241 = vrcp.f32 %v4229_v27  ;;  %v4230_v7 = vadd.f32 1.0, %v6214_v41 }
0x1c5f   :  { %v6218_v39 = vpop.eup %6217  ;;  %6243 = vrcp.f32 %v4231_v61  ;;  %v4232_v13 = vadd.f32 1.0, %v6216_v37 }
0x1c60   :  { %v6220_v42 = vpop.eup %6219  ;;  %6245 = vrcp.f32 %v4230_v7  ;;  %v4233_v1 = vadd.f32 1.0, %v6218_v39 }
0x1c61   :  { %v6222_v49 = vpop.eup %6221  ;;  %6247 = vrcp.f32 %v4232_v13  ;;  %v4235_v51 = vadd.f32 1.0, %v6220_v42 }
0x1c62   :  { %v6224_v60 = vpop.eup %6223  ;;  %6249 = vrcp.f32 %v4233_v1  ;;  %v4234_v11 = vadd.f32 1.0, %v6222_v49 }
0x1c63   :  { %v6226_v29 = vpop.eup %6225  ;;  %6251 = vrcp.f32 %v4235_v51  ;;  %v4236_v63 = vadd.f32 1.0, %v6224_v60 }
0x1c64   :  { %v6228_v19 = vpop.eup %6227  ;;  %6253 = vrcp.f32 %v4234_v11  ;;  %v4237_v24 = vadd.f32 1.0, %v6226_v29 }
0x1c65   :  { %v6230_v25 = vpop.eup %6229  ;;  %6255 = vrcp.f32 %v4236_v63  ;;  %v4239_v32 = vadd.f32 1.0, %v6228_v19 }
0x1c66   :  { %v6232_v47 = vpop.eup %6231  ;;  %6257 = vrcp.f32 %v4237_v24  ;;  %v4238_v48 = vadd.f32 1.0, %v6230_v25 }
0x1c67   :  { %v6234_v10 = vpop.eup %6233  ;;  %6259 = vrcp.f32 %v4239_v32  ;;  %v4240_v44 = vadd.f32 1.0, %v6232_v47 }
0x1c68   :  { %v6236_v55 = vpop.eup %6235  ;;  %6261 = vrcp.f32 %v4238_v48  ;;  %v4273_v2 = vmul.f32 %v6234_v10, %v7348_v14 }
0x1c69   :  { %v6238_v28 = vpop.eup %6237  ;;  %6263 = vrcp.f32 %v4240_v44  ;;  %v4275_v43 = vmul.f32 %v6236_v55, %v7350_v50 }
0x1c6a   :  { %v6240_v36 = vpop.eup %6239  ;;  %v4274_v53 = vmul.f32 %v6238_v28, %v7355_v38 }
0x1c6b   :  { %v6242_v52 = vpop.eup %6241  ;;  %v4276_v17 = vmul.f32 %v6240_v36, %v7358_v23 }
0x1c6c   :  { %v6244_v54 = vpop.eup %6243  ;;  %v4277_v26 = vmul.f32 %v6242_v52, %v7361_v8 }
0x1c6d   :  { %v6246_v33 = vpop.eup %6245  ;;  %v4279_v30 = vmul.f32 %v6244_v54, %v7364_v18 }
0x1c6e   :  { %v6248_v58 = vpop.eup %6247  ;;  %v4278_v45 = vmul.f32 %v6246_v33, %v7368_v4  ;;  %v4289_v8 = vpack.c.bf16 %v4277_v26, %v4273_v2 }
0x1c6f   :  { %v6250_v40 = vpop.eup %6249  ;;  %v4280_v6 = vmul.f32 %v6248_v58, %v7372_v57  ;;  %v4291_v38 = vpack.c.bf16 %v4279_v30, %v4275_v43 }
0x1c70   :  { %v6252_v3 = vpop.eup %6251  ;;  %v4290_v35 = vpack.c.bf16 %v4278_v45, %v4274_v53  ;;  %v4281_v7 = vmul.f32 %v6250_v40, %v7375_v12  ;;  %v5164_v12 = vld [vmem:[%s7493_s11 + $0x1] ss:$0 sm:$0xff] }
0x1c71   :  { %v6254_v5 = vpop.eup %6253  ;;  %v4292_v27 = vpack.c.bf16 %v4280_v6, %v4276_v17  ;;  %v4283_v42 = vmul.f32 %v6252_v3, %v7378_v62 }
0x1c72   :  { %v6256_v41 = vpop.eup %6255  ;;  %4594 = vmatprep.mubr.bf16.mxu0 %v4290_v35  ;;  %v4282_v57 = vmul.f32 %v6254_v5, %v7382_v16 }
0x1c73   :  { %v6258_v18 = vpop.eup %6257  ;;  %4643 = vmatprep.mubr.bf16.mxu1 %v4292_v27  ;;  %4595 = vmatmul.mubr.bf16.vlgmr.msra.gmra.mxu0 %v4289_v8  ;;  %v4284_v39 = vmul.f32 %v6256_v41, %v7386_v20 }
0x1c74   :  { %v6260_v4 = vpop.eup %6259  ;;  %4644 = vmatmul.mubr.bf16.vlgmr.msra.gmra.mxu1 %v4291_v38  ;;  %v4285_v23 = vmul.f32 %v6258_v18, %v7389_v31 }
0x1c75   :  { %v6262_v14 = vpop.eup %6261  ;;  %v4287_v50 = vmul.f32 %v6260_v4, %v7392_v15 }
0x1c76   :  { %v6264_v61 = vpop.eup %6263  ;;  %v4286_v37 = vmul.f32 %v6262_v14, %v7396_v22  ;;  %v4293_v51 = vpack.c.bf16 %v4285_v23, %v4281_v7  ;;  %v6410_v7 = vmov 0.0  }
0x1c77   :  { %v4288_v13 = vmul.f32 %v6264_v61, %v7400_v9  ;;  %v4295_v31 = vpack.c.bf16 %v4287_v50, %v4283_v42  ;;  %5676 = vmatprep.subr.bf16.mxu0 %v6410_v7  ;;  %v5972_v42 = vld [vmem:[%s7495_s13 + $0x20] sm:$0xff]  }
0x1c78   :  { %v4294_v1 = vpack.c.bf16 %v4286_v37, %v4282_v57  ;;  %v5969_v37 = vld [vmem:[%s7495_s13 + $0x38] sm:$0xff]  }
0x1c79   :  { %v4296_v49 = vpack.c.bf16 %v4288_v13, %v4284_v39  ;;  %5677 = vmatpush3.bf16.msra.mxu0 %v5969_v37  ;;  %v5970_v39 = vld [vmem:[%s7495_s13 + $0x30] sm:$0xff]   ;;  %v5971_v13 = vld [vmem:[%s7495_s13 + $0x28] sm:$0xff]  }
0x1c7a   :  { %4602 = vmatprep.mubr.bf16.mxu0 %v4294_v1  ;;  %5678 = vmatprep.subr.bf16.mxu0 %v6410_v7  ;;  %v5973_v1 = vld [vmem:[%s7495_s13 + $0x18] sm:$0xff]  }
0x1c7b   :  { %4651 = vmatprep.mubr.bf16.mxu1 %v4296_v49  ;;  %4603 = vmatmul.mubr.bf16.gmra.mxu0 %v4293_v51  ;;  %v5974_v49 = vld [vmem:[%s7495_s13 + $0x10] sm:$0xff]   ;;  %v5975_v51 = vld [vmem:[%s7495_s13 + $0x8] sm:$0xff]  }
0x1c7c   :  { %4652 = vmatmul.mubr.bf16.gmra.mxu1 %v4295_v31  ;;  %5692 = vmatprep.mubr.msk.bf16.mxu0 %vm6411_vm13, %v6410_v7  ;;  %v5976_v31 = vld [vmem:[%s7495_s13] sm:$0xff]   ;;  %s4729_s13 = sld [smem:[#allocation2]] }
0x1c7d   :  { %5679 = vmatpush3.bf16.msra.mxu0 %v5970_v39 }
0x1c7e   :  { %5680 = vmatprep.subr.bf16.mxu0 %v6410_v7 }
0x1c81   :  { %5681 = vmatpush3.bf16.msra.mxu0 %v5971_v13 }
0x1c82   :  { %5682 = vmatprep.subr.bf16.mxu0 %v6410_v7  ;;  %s4730_s4 = scalar_lea.vmem [#allocation10], %s4729_s13 }
0x1c85   :  { %5683 = vmatpush3.bf16.msra.mxu0 %v5972_v42 }
0x1c86   :  { %5684 = vmatprep.subr.bf16.mxu0 %v6410_v7 }
0x1c89   :  { %5685 = vmatpush3.bf16.msra.mxu0 %v5973_v1 }
0x1c8a   :  { %5686 = vmatprep.subr.bf16.mxu0 %v6410_v7 }
0x1c8d   :  { %5687 = vmatpush3.bf16.msra.mxu0 %v5974_v49 }
0x1c8e   :  { %5688 = vmatprep.subr.bf16.mxu0 %v6410_v7 }
0x1c91   :  { %5689 = vmatpush3.bf16.msra.mxu0 %v5975_v51 }
0x1c92   :  { %5690 = vmatprep.subr.bf16.mxu0 %v6410_v7 }
0x1c95   :  { %5691 = vmatpush3.bf16.msra.mxu0 %v5976_v31 }
0x1d33   :  { %v5395_v16 = vpop.f32.mrf.mxu0 }
0x1d34   :  { %v5423_v15 = vpop.f32.mrf.mxu1 }
0x1d35   :  { %v5396_v22 = vpop.f32.mrf.mxu0 }
0x1d36   :  { %v5397_v20 = vadd.f32 %v5396_v22, %v5395_v16  ;;  %v5424_v60 = vpop.f32.mrf.mxu1 }
0x1d37   :  { %v5398_v9 = vpop.f32.mrf.mxu0  ;;  %v5425_v62 = vadd.f32 %v5424_v60, %v5423_v15 }
0x1d38   :  { %v4597_v11 = vadd.f32 %v5397_v20, %v5164_v12  ;;  %v5426_v29 = vpop.f32.mrf.mxu1 }
0x1d39   :  { %v5399_v63 = vpop.f32.mrf.mxu0 }
0x1d3a   :  { %v4646_v19 = vadd.f32 %v5425_v62, %v4597_v11  ;;  %v5400_v24 = vadd.f32 %v5399_v63, %v5398_v9  ;;  %v5427_v25 = vpop.f32.mrf.mxu1 }
0x1d3b   :  { %v5401_v32 = vpop.f32.mrf.mxu0  ;;  %v5428_v48 = vadd.f32 %v5427_v25, %v5426_v29 }
0x1d3c   :  { %v4600_v47 = vadd.f32 %v5400_v24, %v5164_v12  ;;  %v5429_v10 = vpop.f32.mrf.mxu1  ;;  %v4660_v44 = vadd.f32 %v4646_v19, %v7291_v56  ;;  %v4664_v19 = vld [vmem:[%s7494_s12] sm:$0x3]  ;;  %s5197_s12 = sld [smem:[#allocation2 + $0x1]] }
0x1d3d   :  { %v5402_v55 = vpop.f32.mrf.mxu0  ;;  %v4712_v25 = vrot.slane %v4664_v19, %v6617_v59 }
0x1d3e   :  { %v4649_v28 = vadd.f32 %v5428_v48, %v4600_v47  ;;  %v5403_v36 = vadd.f32 %v5402_v55, %v5401_v32  ;;  %v5430_v52 = vpop.f32.mrf.mxu1  ;;  %4665 = vadd.xlane.f32.xlu0 %v4660_v44  ;;  %v4720_v47 = vrot.slane %v4664_v19, %v6625_v0 }
0x1d3f   :  { %v5404_v54 = vpop.f32.mrf.mxu0  ;;  %v5431_v26 = vadd.f32 %v5430_v52, %v5429_v10 }
0x1d40   :  { %v4605_v33 = vadd.f32 %v5403_v36, %v5164_v12  ;;  %v5432_v58 = vpop.f32.mrf.mxu1  ;;  %v4661_v53 = vadd.f32 %v4649_v28, %v7298_v21 }
0x1d41   :  { %v5405_v30 = vpop.f32.mrf.mxu0 }
0x1d42   :  { %v4654_v45 = vadd.f32 %v5431_v26, %v4605_v33  ;;  %v5406_v40 = vadd.f32 %v5405_v30, %v5404_v54  ;;  %v5433_v2 = vpop.f32.mrf.mxu1  ;;  %4667 = vadd.xlane.f32.xlu1 %v4661_v53  ;;  %s4881_s27 = scalar_lea.vmem [#allocation10], %s5197_s12 }
0x1d43   :  { %v5434_v6 = vadd.f32 %v5433_v2, %v5432_v58 }
0x1d44   :  { %v4608_v17 = vadd.f32 %v5406_v40, %v5164_v12  ;;  %v4662_v56 = vadd.f32 %v4654_v45, %v7302_v46 }
0x1d46   :  { %v4657_v3 = vadd.f32 %v5434_v6, %v4608_v17  ;;  %4669 = vadd.xlane.f32.xlu0 %v4662_v56 }
0x1d48   :  { %v4663_v43 = vadd.f32 %v4657_v3, %v7296_v34 }
0x1d4a   :  { %4671 = vadd.xlane.f32.xlu1 %v4663_v43 }
0x1dc7   :  { %v4666_v35 = vpop.xlane.xlu0 %4665 }
0x1dc8   :  { %v4673_v5 = vmul.f32 0.0078125, %v4666_v35 }
0x1dca   :  { %v7427_v8 = vsub.f32 %v4660_v44, %v4673_v5 }
0x1dcb   :  { %v4668_v27 = vpop.xlane.xlu1 %4667 }
0x1dcc   :  { %v4674_v21 = vmul.f32 0.0078125, %v4668_v27  ;;  %v4681_v41 = vmul.f32 %v7427_v8, %v7427_v8 }
0x1dce   :  { %v7431_v38 = vsub.f32 %v4661_v53, %v4674_v21  ;;  %4685 = vadd.xlane.f32.xlu0 %v4681_v41 }
0x1dcf   :  { %v4670_v18 = vpop.xlane.xlu0 %4669 }
0x1dd0   :  { %v4675_v4 = vmul.f32 0.0078125, %v4670_v18  ;;  %v4682_v46 = vmul.f32 %v7431_v38, %v7431_v38 }
0x1dd2   :  { %v7435_v14 = vsub.f32 %v4662_v56, %v4675_v4  ;;  %4687 = vadd.xlane.f32.xlu1 %v4682_v46 }
0x1dd3   :  { %v4672_v34 = vpop.xlane.xlu1 %4671 }
0x1dd4   :  { %v4676_v23 = vmul.f32 0.0078125, %v4672_v34  ;;  %v4683_v61 = vmul.f32 %v7435_v14, %v7435_v14 }
0x1dd6   :  { %v7439_v57 = vsub.f32 %v4663_v43, %v4676_v23  ;;  %4689 = vadd.xlane.f32.xlu0 %v4683_v61 }
0x1dd8   :  { %v4684_v50 = vmul.f32 %v7439_v57, %v7439_v57 }
0x1dda   :  { %4691 = vadd.xlane.f32.xlu1 %v4684_v50 }
0x1e57   :  { %v4686_v16 = vpop.xlane.xlu0 %4685 }
0x1e58   :  { %v4693_v15 = vmul.f32 0.0078125, %v4686_v16 }
0x1e5a   :  { %v4697_v12 = vadd.f32 1e-05, %v4693_v15 }
0x1e5b   :  { %v4688_v22 = vpop.xlane.xlu1 %4687 }
0x1e5c   :  { %6265 = vrsqrt.f32 %v4697_v12  ;;  %v4694_v20 = vmul.f32 0.0078125, %v4688_v22 }
0x1e5e   :  { %v4698_v60 = vadd.f32 1e-05, %v4694_v20 }
0x1e5f   :  { %v4690_v9 = vpop.xlane.xlu0 %4689 }
0x1e60   :  { %6267 = vrsqrt.f32 %v4698_v60  ;;  %v4695_v11 = vmul.f32 0.0078125, %v4690_v9 }
0x1e62   :  { %v4699_v62 = vadd.f32 1e-05, %v4695_v11 }
0x1e63   :  { %v4692_v29 = vpop.xlane.xlu1 %4691 }
0x1e64   :  { %6269 = vrsqrt.f32 %v4699_v62  ;;  %v4696_v63 = vmul.f32 0.0078125, %v4692_v29 }
0x1e66   :  { %v4700_v24 = vadd.f32 1e-05, %v4696_v63 }
0x1e68   :  { %6271 = vrsqrt.f32 %v4700_v24 }
0x1e69   :  { %v6266_v32 = vpop.eup %6265 }
0x1e6a   :  { %v4705_v48 = vmul.f32 %v6266_v32, %v7427_v8 }
0x1e6c   :  { %v4713_v10 = vmul.f32 %v4712_v25, %v4705_v48 }
0x1e6d   :  { %v6268_v44 = vpop.eup %6267 }
0x1e6e   :  { %v4721_v55 = vadd.f32 %v4720_v47, %v4713_v10  ;;  %v4706_v28 = vmul.f32 %v6268_v44, %v7431_v38 }
0x1e70   :  { %4725 = vst [vmem:[#allocation10] sm:$0xff] %v4721_v55  ;;  %v4714_v36 = vmul.f32 %v4712_v25, %v4706_v28 }
0x1e71   :  { %v6270_v52 = vpop.eup %6269 }
0x1e72   :  { %v4722_v54 = vadd.f32 %v4720_v47, %v4714_v36  ;;  %v4707_v33 = vmul.f32 %v6270_v52, %v7435_v14 }
0x1e74   :  { %4726 = vst [vmem:[#allocation10 + $0x8] sm:$0xff] %v4722_v54  ;;  %v4715_v26 = vmul.f32 %v4712_v25, %v4707_v33 }
0x1e75   :  { %v6272_v59 = vpop.eup %6271 }
0x1e76   :  { %v4723_v58 = vadd.f32 %v4720_v47, %v4715_v26  ;;  %v4708_v53 = vmul.f32 %v6272_v59, %v7439_v57 }
0x1e78   :  { %4727 = vst [vmem:[#allocation10 + $0x10] sm:$0xff] %v4723_v58  ;;  %v4716_v0 = vmul.f32 %v4712_v25, %v4708_v53 }
0x1e7a   :  { %v4724_v30 = vadd.f32 %v4720_v47, %v4716_v0 }
0x1e7c   :  { %4728 = vst [vmem:[#allocation10 + $0x18] sm:$0xff] %v4724_v30 }
0x1e83   :  { %v5198_v45 = vld [vmem:[%s4881_s27 + $0x10] sm:$0x1]  ;;  %v4731_v2 = vld [vmem:[%s4730_s4] sm:$0x1] }
0x1e84   :  { %v4737_v40 = vrot.slane %v5198_v45, 7 }
0x1e86   :  { %v4740_v17 = vsel %vm4739_vm14, %v4731_v2, %v4737_v40 }
0x1e87   :  { %v4741_v6 = vpack.c.bf16 %v4740_v17, %v4740_v17 }
0x1e89   :  { %5693 = vmatmul.mubr.bf16.vlgmr.msra.gmra.mxu0 %v4741_v6 }
0x1e8a   :  { %6360 = shalt.err (!%p6357_p10)
}
0x1e8b   :  { %s6413_s7 = smov 128   ;;  %s6414_s29 = smov 8  }
0x1e8c   :  { %4858 = dma.vmem_to_hbm [thread:$0]  %s4853_s6, 512, %s7496_s14, [#allocation4], %s6413_s7, %s6413_s7, %s6414_s29  }
0x1e8d   :  { %s6415_s11 = smov [#allocation11]  }
0x1e8e   :  { %s4865_s0 = sshll.u32 %s6415_s11, 4  ;;  %s4866_s0 = int_to_ptr.vmem [resolvable:$true] %s4865_s0 }
0x1e8f   :  { %s6369_s30 = scalar_lea.vmem %s4866_s0, 32  ;;  %p6374_p12 = scmp.lt.s32.totalorder %s4866_s0, %s4866_s0 }
0x1e90   :  { %p6370_p11 = scmp.ne.s32.totalorder %s4866_s0, %s6369_s30  ;;  %p6375_p13 = scmp.lt.s32.totalorder %s6369_s30, %s6369_s30 }
0x1e92   :  { %p6376_p0 = por %p6375_p13, %p6374_p12 }
0x1e94   :  { %p6377_p1 = pnand %p6376_p0, %p6370_p11 }
0x1f49   :  { %v4840_v56 = vpop.f32.mrf.mxu0 }
0x1f4a   :  { %4846 = vst [vmem:[#allocation11] sm:$0x3] %v4840_v56 }
0x1f4b   :  { %v5694_v3 = vpop.f32.mrf.mxu0 }
0x1f4c   :  { %6380 = shalt.err (!%p6377_p1)
}
0x1f4d   :  { %4868 = dma.vmem_to_hbm [thread:$0]  %s4866_s0, 32, %s7497_s15, [#allocation12]   ;;  %v4843_v43 = vpop.f32.mrf.mxu0 }
0x1f4f   :  { %v5695_v35 = vpop.f32.mrf.mxu0 }
0x1f50   :  { %6395 = dma.done.wait [#allocation4], 512  }
0x1f51   :  { %6396 = vsyncadd [#allocation4], 4294966784 }
0x1f52   :  { %6397 = dma.done.wait [#allocation12], 32  }
0x1f53   :  { %6398 = vsyncadd [#allocation12], 4294967264 }
0x1f54   :  { %4875 = vsyncpa [#allocation3], 1 }
0x1f55   :  { %4876 = vsyncpa [#allocation8], 1 }
0x1f56   :  { %4877 = vsyncpa [#allocation4], 1 }
0x1f57   :  { %4878 = vsyncpa [#allocation12], 1 }
0x1f58   :  { %4879 = vsyncpa [#allocation5], 1 }

</bundles_post_ra>
